<compile_context>
chip_gen: v6e
topology: v6e:2x2x1
jax: 0.10.0
libtpu: 0.0.40
codegen_flags: <defaults>
</compile_context>

<pallas_src>
import numpy as np
import jax
import jax.numpy as jnp
from jax.experimental import pallas as pl
from jax.experimental.pallas import tpu as pltpu

# ---------------------------------------------------------------------------
# Model dimensions (net == 0): conv1 1->2, conv2 2->4, fc 144->1.
# fc1.in_features = 144 = 4*6*6  =>  input spatial size is 24x24.
# ---------------------------------------------------------------------------
H = W = 24
C1, C2 = 2, 4
FC_IN = 144                      # C2 * 6 * 6

# Lane-aligned layout constants.
N_IN = H * W                     # 576 flattened input pixels
ONES1 = N_IN                     # constant-1 column of x  (carries conv1 bias)
K1_PAD = 640                     # x columns padded to a multiple of 128
BLK1 = 384                       # conv1 pool-tap block (pad of C1*12*12 = 288)
ONES2 = C1 * 12 * 12             # 288: constant-1 column of p1 (carries conv2 bias)
BLK2 = 256                       # conv2 pool-tap block (pad of C2*6*6 = 144)
ONES3 = C2 * 6 * 6               # 144: constant-1 column of p2 (carries fc bias)


# ----------------- host-side constant folding (once per model) --------------
def _fold_conv_pool(w, b, h_in, w_in, in_cols, ones_in_col, blk_pad, ones_out_col):
    """Fold a 3x3 pad-1 conv (PyTorch cross-correlation) + bias + the 2x2
    max-pool column permutation into one matrix with 128-lane-aligned
    pool-tap column blocks.

    Input columns : ci*(h_in*w_in) + y*w_in + x, plus a constant-1 column at
                    `ones_in_col` (this conv's bias rides on that row).
    Output columns: o*blk_pad + co*n_o + i*w_o + j   (o = 2*oy + ox pool tap).
                    Column `ones_out_col` of every tap block is built to yield
                    exactly 1.0 after relu+pool (carries the NEXT layer's bias).
    All remaining pad columns are identically zero.
    """
    co_n, ci_n = w.shape[:2]
    n_in = h_in * w_in
    h_o, w_o = h_in // 2, w_in // 2
    n_o = h_o * w_o
    assert co_n * n_o <= ones_out_col < blk_pad
    W_fold = np.zeros((in_cols, 4 * blk_pad), np.float32)
    for oy in range(2):
        for ox in range(2):
            o = 2 * oy + ox
            # constant-1 output column (for the next layer's bias)
            W_fold[ones_in_col, o * blk_pad + ones_out_col] = 1.0
            for co in range(co_n):
                for i in range(h_o):
                    for j in range(w_o):
                        col = o * blk_pad + co * n_o + i * w_o + j
                        W_fold[ones_in_col, col] = b[co]        # bias via 1-col
                        yy, xx = 2 * i + oy, 2 * j + ox
                        for ci in range(ci_n):
                            for ky in range(3):
                                sy = yy + ky - 1
                                if not 0 <= sy < h_in:
                                    continue
                                for kx in range(3):
                                    sx = xx + kx - 1
                                    if 0 <= sx < w_in:
                                        W_fold[ci * n_in + sy * w_in + sx,
                                               col] += w[co, ci, ky, kx]
    return W_fold


def prepare_facenet_params(params):
    """Fold model weights into kernel constants. Call once per parameter set."""
    w1, b1, w2, b2, fcw, fcb = [np.asarray(p, np.float32) for p in params]
    W1 = _fold_conv_pool(w1, b1, H, W, K1_PAD, ONES1, BLK1, ONES2)          # (640, 1536)
    W2 = _fold_conv_pool(w2, b2, H // 2, W // 2, BLK1, ONES2, BLK2, ONES3)  # (384, 1024)
    FCW = np.zeros((BLK2, 1), np.float32)
    FCW[:FC_IN, 0] = fcw.reshape(-1)
    FCW[ONES3, 0] = fcb.reshape(-1)[0]
    return dict(
        w1=jnp.asarray(W1, jnp.bfloat16),
        w2=jnp.asarray(W2, jnp.bfloat16),
        fcw=jnp.asarray(FCW, jnp.float32),
    )


# --------------------------------- kernel ----------------------------------
def facenet_kernel(x_ref, w1_ref, w2_ref, fcw_ref, out_ref):
    # x_ref : (TILE_B, 640) bf16      w1_ref : (640, 1536) bf16
    # w2_ref: (384, 1024)  bf16       fcw_ref: (256, 1)    f32
    # ---- conv1 (+bias, folded) + relu; columns are pool-tap-major, 128-aligned
    y1 = jnp.dot(x_ref[...], w1_ref[...], preferred_element_type=jnp.float32)
    y1 = jnp.maximum(y1, 0.0)
    # ---- 2x2 max-pool: elementwise max of the four lane-aligned tap blocks
    p1 = jnp.maximum(jnp.maximum(y1[:, 0 * BLK1:1 * BLK1], y1[:, 1 * BLK1:2 * BLK1]),
                     jnp.maximum(y1[:, 2 * BLK1:3 * BLK1], y1[:, 3 * BLK1:4 * BLK1]))
    # ---- conv2 (+bias, folded) + relu
    y2 = jnp.dot(p1.astype(jnp.bfloat16), w2_ref[...],
                 preferred_element_type=jnp.float32)
    y2 = jnp.maximum(y2, 0.0)
    # ---- 2x2 max-pool
    p2 = jnp.maximum(jnp.maximum(y2[:, 0 * BLK2:1 * BLK2], y2[:, 1 * BLK2:2 * BLK2]),
                     jnp.maximum(y2[:, 2 * BLK2:3 * BLK2], y2[:, 3 * BLK2:4 * BLK2]))
    # ---- fc1 (144 -> 1, bias folded into the constant-1 column): tiny MXU matmul
    out_ref[...] = jnp.dot(p2, fcw_ref[...], preferred_element_type=jnp.float32)


# -------------------------------- wrapper -----------------------------------
def _round_up(n, m):
    return (n + m - 1) // m * m


def facenet_forward(x, prepared, tile_b=256):
    """x: (batch, 1, 24, 24) float32 NCHW.  Returns (batch, 1) float32."""
    batch = x.shape[0]
    x_flat = x.reshape(batch, N_IN).astype(jnp.float32)
    ones = jnp.ones((batch, 1), jnp.float32)                  # carries conv1 bias
    x_in = jnp.concatenate([x_flat, ones], axis=-1)           # (batch, 577)
    x_in = jnp.pad(x_in, ((0, 0), (0, K1_PAD - N_IN - 1)))    # lane-pad K to 640

    tb = min(tile_b, _round_up(batch, 16))   # >=16 rows for bf16 sublane packing
    batch_p = _round_up(batch, tb)
    if batch_p != batch:
        x_in = jnp.pad(x_in, ((0, batch_p - batch), (0, 0)))
    x_in = x_in.astype(jnp.bfloat16)         # halve input DMA; cast once host-side

    w1, w2, fcw = prepared["w1"], prepared["w2"], prepared["fcw"]
    flops = 2 * batch_p * (K1_PAD * 4 * BLK1 + BLK1 * 4 * BLK2 + BLK2)
    bytes_accessed = int(x_in.size * 2 + w1.size * 2 + w2.size * 2
                         + fcw.size * 4 + batch_p * 4)

    out = pl.pallas_call(
        facenet_kernel,
        out_shape=jax.ShapeDtypeStruct((batch_p, 1), jnp.float32),
        grid_spec=pltpu.PrefetchScalarGridSpec(
            num_scalar_prefetch=0,
            grid=(batch_p // tb,),
            in_specs=[
                pl.BlockSpec((tb, K1_PAD), lambda i: (i, 0)),         # x tile
                pl.BlockSpec((K1_PAD, 4 * BLK1), lambda i: (0, 0)),   # W1 resident
                pl.BlockSpec((BLK1, 4 * BLK2), lambda i: (0, 0)),     # W2 resident
                pl.BlockSpec((BLK2, 1), lambda i: (0, 0)),            # fc resident
            ],
            out_specs=pl.BlockSpec((tb, 1), lambda i: (i, 0)),
        ),
        compiler_params=pltpu.CompilerParams(
            dimension_semantics=("parallel",)),   # v7x: batch tiles across 2 TCs
        cost_estimate=pl.CostEstimate(flops=flops, transcendentals=0,
                                      bytes_accessed=bytes_accessed),
    )(x_in, w1, w2, fcw)
    return out[:batch]


# ------------------------- pure-JAX reference -------------------------------
def facenet_reference(x, params):
    w1, b1, w2, b2, fcw, fcb = params

    def conv(h, w, b):
        y = jax.lax.conv_general_dilated(
            h, w, window_strides=(1, 1), padding=((1, 1), (1, 1)),
            dimension_numbers=("NCHW", "OIHW", "NCHW"))
        return y + b[None, :, None, None]

    def pool(h):
        return jax.lax.reduce_window(
            h, -jnp.inf, jax.lax.max,
            window_dimensions=(1, 1, 2, 2), window_strides=(1, 1, 2, 2),
            padding="VALID")

    h = pool(jax.nn.relu(conv(x, w1, b1)))
    h = pool(jax.nn.relu(conv(h, w2, b2)))
    h = h.reshape(h.shape[0], -1)              # matches torch .view(-1, 144)
    return h @ fcw.T + fcb


# ----------------------------------- main ------------------------------------
if __name__ == "__main__":
    key = jax.random.PRNGKey(0)
    kx, k1, k2, k3, k4, k5, k6, kx2 = jax.random.split(key, 8)

    # deterministic synthetic parameters (same shapes as nn.Module net=0)
    w1 = jax.random.normal(k1, (C1, 1, 3, 3), dtype=jnp.float32) * 0.2
    b1 = jax.random.normal(k2, (C1,), dtype=jnp.float32) * 0.1
    w2 = jax.random.normal(k3, (C2, C1, 3, 3), dtype=jnp.float32) * 0.2
    b2 = jax.random.normal(k4, (C2,), dtype=jnp.float32) * 0.1
    fcw = jax.random.normal(k5, (1, FC_IN), dtype=jnp.float32) * 0.08
    fcb = jax.random.normal(k6, (1,), dtype=jnp.float32) * 0.1
    params = (w1, b1, w2, b2, fcw, fcb)

    prepared = prepare_facenet_params(params)     # fold constants once

    # primary check: the module's natural small batch
    x = jax.random.normal(kx, (2, 1, H, W), dtype=jnp.float32)
    out = jax.block_until_ready(facenet_forward(x, prepared))
    ref = jax.block_until_ready(facenet_reference(x, params))
    assert out.shape == (2, 1), out.shape
    np.testing.assert_allclose(np.asarray(out), np.asarray(ref),
                               rtol=2e-2, atol=2e-2)

    # secondary check: exercise the multi-tile batch grid + batch-row padding
    xb = jax.random.normal(kx2, (40, 1, H, W), dtype=jnp.float32)
    outb = jax.block_until_ready(facenet_forward(xb, prepared, tile_b=16))
    refb = jax.block_until_ready(facenet_reference(xb, params))
    np.testing.assert_allclose(np.asarray(outb), np.asarray(refb),
                               rtol=2e-2, atol=2e-2)

    print("KERNEL_OK")
</pallas_src>

<mosaic_0001>
module attributes {stable_mosaic.version = 11 : i64} {
  func.func @facenet_kernel(%arg0: i32, %arg1: memref<16x640xbf16, #tpu.memory_space<vmem>>, %arg2: memref<640x1536xbf16, #tpu.memory_space<vmem>>, %arg3: memref<384x1024xbf16, #tpu.memory_space<vmem>>, %arg4: memref<256x1xf32, #tpu.memory_space<vmem>>, %arg5: memref<16x1xf32, #tpu.memory_space<vmem>>) attributes {dimension_semantics = [#tpu.dimension_semantics<parallel>], iteration_bounds = array<i64: 1>, scalar_prefetch = 0 : i64, scratch_operands = 0 : i64, tpu.core_type = #tpu.core_type<tc>, window_params = [{transform_indices = @transform_0, window_bounds = array<i64: 16, 640>}, {pipeline_mode = #tpu.pipeline_mode<synchronous>, transform_indices = @transform_1, window_bounds = array<i64: 640, 1536>}, {pipeline_mode = #tpu.pipeline_mode<synchronous>, transform_indices = @transform_2, window_bounds = array<i64: 384, 1024>}, {pipeline_mode = #tpu.pipeline_mode<synchronous>, transform_indices = @transform_3, window_bounds = array<i64: 256, 1>}, {transform_indices = @transform_4, window_bounds = array<i64: 16, 1>}]} {
    %c0 = arith.constant 0 : index
    %c0_0 = arith.constant 0 : index
    %0 = vector.load %arg1[%c0, %c0_0] : memref<16x640xbf16, #tpu.memory_space<vmem>>, vector<16x640xbf16>
    %c0_1 = arith.constant 0 : index
    %c0_2 = arith.constant 0 : index
    %1 = vector.load %arg2[%c0_1, %c0_2] : memref<640x1536xbf16, #tpu.memory_space<vmem>>, vector<640x1536xbf16>
    %cst = arith.constant dense<0.000000e+00> : vector<16x1536xf32>
    %2 = tpu.matmul %0, %1, %cst {dimension_numbers = #tpu.dot_dimension_numbers<[1], [0], [0], [1], [0, 0, 1, 1], [], []>} : vector<16x640xbf16>, vector<640x1536xbf16>, vector<16x1536xf32> -> vector<16x1536xf32>
    %cst_3 = arith.constant 0.000000e+00 : f32
    %3 = vector.broadcast %cst_3 : f32 to vector<16x1536xf32>
    %4 = arith.maximumf %2, %3 : vector<16x1536xf32>
    %5 = vector.extract_strided_slice %4 {offsets = [0, 0], sizes = [16, 384], strides = [1, 1]} : vector<16x1536xf32> to vector<16x384xf32>
    %6 = vector.extract_strided_slice %4 {offsets = [0, 384], sizes = [16, 384], strides = [1, 1]} : vector<16x1536xf32> to vector<16x384xf32>
    %7 = arith.maximumf %5, %6 : vector<16x384xf32>
    %8 = vector.extract_strided_slice %4 {offsets = [0, 768], sizes = [16, 384], strides = [1, 1]} : vector<16x1536xf32> to vector<16x384xf32>
    %9 = vector.extract_strided_slice %4 {offsets = [0, 1152], sizes = [16, 384], strides = [1, 1]} : vector<16x1536xf32> to vector<16x384xf32>
    %10 = arith.maximumf %8, %9 : vector<16x384xf32>
    %11 = arith.maximumf %7, %10 : vector<16x384xf32>
    %12 = arith.truncf %11 : vector<16x384xf32> to vector<16x384xbf16>
    %c0_4 = arith.constant 0 : index
    %c0_5 = arith.constant 0 : index
    %13 = vector.load %arg3[%c0_4, %c0_5] : memref<384x1024xbf16, #tpu.memory_space<vmem>>, vector<384x1024xbf16>
    %cst_6 = arith.constant dense<0.000000e+00> : vector<16x1024xf32>
    %14 = tpu.matmul %12, %13, %cst_6 {dimension_numbers = #tpu.dot_dimension_numbers<[1], [0], [0], [1], [0, 0, 1, 1], [], []>} : vector<16x384xbf16>, vector<384x1024xbf16>, vector<16x1024xf32> -> vector<16x1024xf32>
    %cst_7 = arith.constant 0.000000e+00 : f32
    %15 = vector.broadcast %cst_7 : f32 to vector<16x1024xf32>
    %16 = arith.maximumf %14, %15 : vector<16x1024xf32>
    %17 = vector.extract_strided_slice %16 {offsets = [0, 0], sizes = [16, 256], strides = [1, 1]} : vector<16x1024xf32> to vector<16x256xf32>
    %18 = vector.extract_strided_slice %16 {offsets = [0, 256], sizes = [16, 256], strides = [1, 1]} : vector<16x1024xf32> to vector<16x256xf32>
    %19 = arith.maximumf %17, %18 : vector<16x256xf32>
    %20 = vector.extract_strided_slice %16 {offsets = [0, 512], sizes = [16, 256], strides = [1, 1]} : vector<16x1024xf32> to vector<16x256xf32>
    %21 = vector.extract_strided_slice %16 {offsets = [0, 768], sizes = [16, 256], strides = [1, 1]} : vector<16x1024xf32> to vector<16x256xf32>
    %22 = arith.maximumf %20, %21 : vector<16x256xf32>
    %23 = arith.maximumf %19, %22 : vector<16x256xf32>
    %c0_8 = arith.constant 0 : index
    %c0_9 = arith.constant 0 : index
    %24 = vector.load %arg4[%c0_8, %c0_9] : memref<256x1xf32, #tpu.memory_space<vmem>>, vector<256x1xf32>
    %cst_10 = arith.constant dense<0.000000e+00> : vector<16x1xf32>
    %25 = tpu.matmul %23, %24, %cst_10 {dimension_numbers = #tpu.dot_dimension_numbers<[1], [0], [0], [1], [0, 0, 1, 1], [], []>} : vector<16x256xf32>, vector<256x1xf32>, vector<16x1xf32> -> vector<16x1xf32>
    %c0_11 = arith.constant 0 : index
    %c0_12 = arith.constant 0 : index
    %26 = vector.load %arg5[%c0_11, %c0_12] : memref<16x1xf32, #tpu.memory_space<vmem>>, vector<16x1xf32>
    tpu.vector_store %arg5[%c0_11, %c0_12], %25 {strides = array<i32>} : memref<16x1xf32, #tpu.memory_space<vmem>>, vector<16x1xf32>,
    return
  }
  func.func @transform_0(%arg0: i32) -> (i32, i32) {
    %c0_i32 = arith.constant 0 : i32
    %c0_i32_0 = arith.constant 0 : i32
    return %arg0, %c0_i32 : i32, i32
  }
  func.func @transform_1(%arg0: i32) -> (i32, i32) {
    %c0_i32 = arith.constant 0 : i32
    %c0_i32_0 = arith.constant 0 : i32
    %c0_i32_1 = arith.constant 0 : i32
    return %c0_i32, %c0_i32_0 : i32, i32
  }
  func.func @transform_2(%arg0: i32) -> (i32, i32) {
    %c0_i32 = arith.constant 0 : i32
    %c0_i32_0 = arith.constant 0 : i32
    %c0_i32_1 = arith.constant 0 : i32
    return %c0_i32, %c0_i32_0 : i32, i32
  }
  func.func @transform_3(%arg0: i32) -> (i32, i32) {
    %c0_i32 = arith.constant 0 : i32
    %c0_i32_0 = arith.constant 0 : i32
    %c0_i32_1 = arith.constant 0 : i32
    return %c0_i32, %c0_i32_0 : i32, i32
  }
  func.func @transform_4(%arg0: i32) -> (i32, i32) {
    %c0_i32 = arith.constant 0 : i32
    %c0_i32_0 = arith.constant 0 : i32
    return %arg0, %c0_i32 : i32, i32
  }
}

</mosaic_0001>

<bundles_post_ra>
// kernel: tpu_custom_call.1
= control target key start
LH: loop header
LB: loop body
LE: loop exit
PB: predicated region body
PF: predicated region fallthrough
CT: control target
= control target key end

     0   :  { %9 = vsyncpa [#allocation3], 0  ;;  %s7355_s0 = inlined_call_operand.hbm [shape: bf16[16,640], index: 0, kind: input, shape index: {}]   ;;  %s7356_s1 = inlined_call_operand.hbm [shape: bf16[640,1536], index: 1, kind: input, shape index: {}]   ;;  %s7357_s2 = inlined_call_operand.hbm [shape: bf16[384,1024], index: 2, kind: input, shape index: {}]   ;;  %s7358_s3 = inlined_call_operand.vmem [shape: f32[256,1], index: 3, kind: input, shape index: {}]   ;;  %s7359_s4 = inlined_call_operand.vmem [shape: f32[16,1], index: 4, kind: output, shape index: {}]  }
   0x1   :  { %10 = vsyncpa [#allocation5], 0  ;;  %s6986_s15 = smov [#allocation4]  }
   0x2   :  { %s28_s16 = sshll.u32 %s6986_s15, 4  ;;  %s29_s16 = int_to_ptr.vmem [resolvable:$true] %s28_s16 }
   0x3   :  { %s6930_s17 = scalar_lea.vmem %s29_s16, 61440  ;;  %p6935_p1 = scmp.lt.s32.totalorder %s29_s16, %s29_s16 }
   0x4   :  { %p6931_p0 = scmp.ne.s32.totalorder %s29_s16, %s6930_s17  ;;  %p6936_p2 = scmp.lt.s32.totalorder %s6930_s17, %s6930_s17 }
   0x6   :  { %p6937_p3 = por %p6936_p2, %p6935_p1 }
   0x8   :  { %p6938_p4 = pnand %p6937_p3, %p6931_p0 }
   0xa   :  { %6941 = shalt.err (!%p6938_p4)
}
   0xb   :  { %s6987_s18 = smov 768   ;;  %s6988_s19 = smov 48  }
   0xc   :  { %34 = dma.hbm_to_vmem [thread:$0]  %s7356_s1, 61440, %s29_s16, [#allocation5], %s6987_s18, %s6987_s18, %s6988_s19  }
   0xd   :  { %s6989_s22 = smov [#allocation2]  }
   0xe   :  { %s16_s23 = sshll.u32 %s6989_s22, 4  ;;  %s17_s23 = int_to_ptr.vmem [resolvable:$true] %s16_s23 }
   0xf   :  { %s6950_s24 = scalar_lea.vmem %s17_s23, 640  ;;  %p6955_p6 = scmp.lt.s32.totalorder %s17_s23, %s17_s23 }
  0x10   :  { %p6951_p5 = scmp.ne.s32.totalorder %s17_s23, %s6950_s24  ;;  %p6956_p7 = scmp.lt.s32.totalorder %s6950_s24, %s6950_s24 }
  0x12   :  { %p6957_p8 = por %p6956_p7, %p6955_p6 }
  0x14   :  { %p6958_p9 = pnand %p6957_p8, %p6951_p5 }
  0x16   :  { %6961 = shalt.err (!%p6958_p9)
}
  0x17   :  { %s6990_s25 = smov 320   ;;  %s6991_s26 = smov 20  }
  0x18   :  { %22 = dma.hbm_to_vmem [thread:$0]  %s7355_s0, 640, %s17_s23, [#allocation3], %s6990_s25, %s6990_s25, %s6991_s26  }
  0x19   :  { %s6992_s29 = smov [#allocation6]  }
  0x1a   :  { %s40_s30 = sshll.u32 %s6992_s29, 4  ;;  %s41_s30 = int_to_ptr.vmem [resolvable:$true] %s40_s30 }
  0x1b   :  { %s6970_s1 = scalar_lea.vmem %s41_s30, 24576  ;;  %p6975_p11 = scmp.lt.s32.totalorder %s41_s30, %s41_s30 }
  0x1c   :  { %p6971_p10 = scmp.ne.s32.totalorder %s41_s30, %s6970_s1  ;;  %p6976_p12 = scmp.lt.s32.totalorder %s6970_s1, %s6970_s1 }
  0x1e   :  { %p6977_p13 = por %p6976_p12, %p6975_p11 }
  0x20   :  { %p6978_p0 = pnand %p6977_p13, %p6971_p10 }
  0x22   :  { %6981 = shalt.err (!%p6978_p0)
}
  0x23   :  { %s6993_s5 = smov 512   ;;  %s6994_s6 = smov 32  }
  0x24   :  { %46 = dma.hbm_to_vmem [thread:$0]  %s7357_s2, 24576, %s41_s30, [#allocation5], %s6993_s5, %s6993_s5, %s6994_s6  }
  0x25   :  { %6982 = dma.done.wait [#allocation3], 640  }
  0x26   :  { %6983 = vsyncadd [#allocation3], 4294966656 }
  0x27   :  { %6984 = dma.done.wait [#allocation5], 86016  }
  0x28   :  { %6985 = vsyncadd [#allocation5], 4294881280  ;;  %v6187_v0 = vld [vmem:[#allocation4 + $0x2a4] ss:$48 sps:$4 sm:$0xff]   ;;  %v6191_v2 = vld [vmem:[#allocation4 + $0x2a0] ss:$48 sps:$4 sm:$0xff]  }
  0x29   :  { %v6189_v1 = vld [vmem:[#allocation4 + $0x8a4] ss:$48 sps:$4 sm:$0xff]   ;;  %2971 = vmatprep.subr.bf16.mxu0 %v6187_v0  ;;  %v6192_v3 = vld [vmem:[#allocation4 + $0x8a0] ss:$48 sps:$4 sm:$0xff]   ;;  %vm5421_vm0 = vcmask 7168  }
  0x2a   :  { %3014 = vmatprep.subr.bf16.mxu1 %v6189_v1  ;;  %v6193_v4 = vld [vmem:[#allocation4 + $0x244] ss:$48 sps:$4 sm:$0xff]   ;;  %2972 = vmatpush1.bf16.msra.mxu0 %v6191_v2  ;;  %v6197_v6 = vld [vmem:[#allocation4 + $0x240] ss:$48 sps:$4 sm:$0xff]  }
  0x2b   :  { %3015 = vmatpush1.bf16.msra.mxu1 %v6192_v3  ;;  %v6195_v5 = vld [vmem:[#allocation4 + $0x844] ss:$48 sps:$4 sm:$0xff]   ;;  %2973 = vmatprep.subr.bf16.mxu0 %v6193_v4  ;;  %v6198_v7 = vld [vmem:[#allocation4 + $0x840] ss:$48 sps:$4 sm:$0xff]   ;;  %v6294_v3 = vld [vmem:[#allocation4 + $0x2ac] ss:$48 sps:$4 sm:$0xff]  }
  0x2c   :  { %3016 = vmatprep.subr.bf16.mxu1 %v6195_v5  ;;  %v6199_v8 = vld [vmem:[#allocation4 + $0x1e4] ss:$48 sps:$4 sm:$0xff]   ;;  %v6203_v10 = vld [vmem:[#allocation4 + $0x1e0] ss:$48 sps:$4 sm:$0xff]   ;;  %v7036_v4 = vld [vmem:[#allocation2] ss:$20 sps:$4 sm:$0xff]  }
  0x2d   :  { %v6201_v9 = vld [vmem:[#allocation4 + $0x7e4] ss:$48 sps:$4 sm:$0xff]   ;;  %v6204_v11 = vld [vmem:[#allocation4 + $0x7e0] ss:$48 sps:$4 sm:$0xff]  }
  0x2e   :  { %2974 = vmatpush1.bf16.msra.mxu0 %v6197_v6  ;;  %v6205_v12 = vld [vmem:[#allocation4 + $0x184] ss:$48 sps:$4 sm:$0xff]   ;;  %v6209_v14 = vld [vmem:[#allocation4 + $0x180] ss:$48 sps:$4 sm:$0xff]  }
  0x2f   :  { %3017 = vmatpush1.bf16.msra.mxu1 %v6198_v7  ;;  %2975 = vmatprep.subr.bf16.mxu0 %v6199_v8  ;;  %v6207_v13 = vld [vmem:[#allocation4 + $0x784] ss:$48 sps:$4 sm:$0xff]   ;;  %v6210_v15 = vld [vmem:[#allocation4 + $0x780] ss:$48 sps:$4 sm:$0xff]   ;;  %v6292_v7 = vld [vmem:[#allocation4 + $0x2a8] ss:$48 sps:$4 sm:$0xff]  }
  0x30   :  { %3018 = vmatprep.subr.bf16.mxu1 %v6201_v9  ;;  %v6211_v16 = vld [vmem:[#allocation4 + $0x124] ss:$48 sps:$4 sm:$0xff]   ;;  %v6215_v18 = vld [vmem:[#allocation4 + $0x120] ss:$48 sps:$4 sm:$0xff]   ;;  %v6300_v9 = vld [vmem:[#allocation4 + $0x24c] ss:$48 sps:$4 sm:$0xff]  }
  0x31   :  { %v6213_v17 = vld [vmem:[#allocation4 + $0x724] ss:$48 sps:$4 sm:$0xff]   ;;  %v6216_v19 = vld [vmem:[#allocation4 + $0x720] ss:$48 sps:$4 sm:$0xff]  }
  0x32   :  { %2976 = vmatpush1.bf16.msra.mxu0 %v6203_v10  ;;  %v6217_v20 = vld [vmem:[#allocation4 + $0xc4] ss:$48 sps:$4 sm:$0xff]   ;;  %v6221_v22 = vld [vmem:[#allocation4 + $0xc0] ss:$48 sps:$4 sm:$0xff]  }
  0x33   :  { %3019 = vmatpush1.bf16.msra.mxu1 %v6204_v11  ;;  %2977 = vmatprep.subr.bf16.mxu0 %v6205_v12  ;;  %v6219_v21 = vld [vmem:[#allocation4 + $0x6c4] ss:$48 sps:$4 sm:$0xff]   ;;  %v6222_v23 = vld [vmem:[#allocation4 + $0x6c0] ss:$48 sps:$4 sm:$0xff]   ;;  %v6298_v11 = vld [vmem:[#allocation4 + $0x248] ss:$48 sps:$4 sm:$0xff]  }
  0x34   :  { %3020 = vmatprep.subr.bf16.mxu1 %v6207_v13  ;;  %v6223_v24 = vld [vmem:[#allocation4 + $0x64] ss:$48 sps:$4 sm:$0xff]   ;;  %v6227_v26 = vld [vmem:[#allocation4 + $0x60] ss:$48 sps:$4 sm:$0xff]   ;;  %v6306_v13 = vld [vmem:[#allocation4 + $0x1ec] ss:$48 sps:$4 sm:$0xff]  }
  0x35   :  { %v6225_v25 = vld [vmem:[#allocation4 + $0x664] ss:$48 sps:$4 sm:$0xff]   ;;  %v6228_v27 = vld [vmem:[#allocation4 + $0x660] ss:$48 sps:$4 sm:$0xff]  }
  0x36   :  { %2978 = vmatpush1.bf16.msra.mxu0 %v6209_v14  ;;  %v6229_v28 = vld [vmem:[#allocation4 + $0x4] ss:$48 sps:$4 sm:$0xff]   ;;  %v6233_v30 = vld [vmem:[#allocation4] ss:$48 sps:$4 sm:$0xff]   ;;  %v7360_v14 = vmov 0  }
  0x37   :  { %3021 = vmatpush1.bf16.msra.mxu1 %v6210_v15  ;;  %2979 = vmatprep.subr.bf16.mxu0 %v6211_v16  ;;  %v6231_v29 = vld [vmem:[#allocation4 + $0x604] ss:$48 sps:$4 sm:$0xff]   ;;  %v6234_v31 = vld [vmem:[#allocation4 + $0x600] ss:$48 sps:$4 sm:$0xff]   ;;  %v6304_v16 = vld [vmem:[#allocation4 + $0x1e8] ss:$48 sps:$4 sm:$0xff]  }
  0x38   :  { %3022 = vmatprep.subr.bf16.mxu1 %v6213_v17  ;;  %v6235_v32 = vld [vmem:[#allocation4 + $0x5a4] ss:$48 sps:$4 sm:$0xff]   ;;  %v6239_v34 = vld [vmem:[#allocation4 + $0x5a0] ss:$48 sps:$4 sm:$0xff]  }
  0x39   :  { %v6237_v33 = vld [vmem:[#allocation4 + $0xba4] ss:$48 sps:$4 sm:$0xff]   ;;  %v6240_v35 = vld [vmem:[#allocation4 + $0xba0] ss:$48 sps:$4 sm:$0xff]  }
  0x3a   :  { %2980 = vmatpush1.bf16.msra.mxu0 %v6215_v18  ;;  %v6241_v36 = vld [vmem:[#allocation4 + $0x544] ss:$48 sps:$4 sm:$0xff]   ;;  %v6245_v38 = vld [vmem:[#allocation4 + $0x540] ss:$48 sps:$4 sm:$0xff]   ;;  %v6312_v18 = vld [vmem:[#allocation4 + $0x18c] ss:$48 sps:$4 sm:$0xff]  }
  0x3b   :  { %3023 = vmatpush1.bf16.msra.mxu1 %v6216_v19  ;;  %2981 = vmatprep.subr.bf16.mxu0 %v6217_v20  ;;  %v6243_v37 = vld [vmem:[#allocation4 + $0xb44] ss:$48 sps:$4 sm:$0xff]   ;;  %v6246_v39 = vld [vmem:[#allocation4 + $0xb40] ss:$48 sps:$4 sm:$0xff]   ;;  %v6310_v20 = vld [vmem:[#allocation4 + $0x188] ss:$48 sps:$4 sm:$0xff]  }
  0x3c   :  { %3024 = vmatprep.subr.bf16.mxu1 %v6219_v21  ;;  %v6247_v40 = vld [vmem:[#allocation4 + $0x4e4] ss:$48 sps:$4 sm:$0xff]   ;;  %v6251_v42 = vld [vmem:[#allocation4 + $0x4e0] ss:$48 sps:$4 sm:$0xff]  }
  0x3d   :  { %v6249_v41 = vld [vmem:[#allocation4 + $0xae4] ss:$48 sps:$4 sm:$0xff]   ;;  %v6252_v43 = vld [vmem:[#allocation4 + $0xae0] ss:$48 sps:$4 sm:$0xff]  }
  0x3e   :  { %2982 = vmatpush1.bf16.msra.mxu0 %v6221_v22  ;;  %v6253_v44 = vld [vmem:[#allocation4 + $0x484] ss:$48 sps:$4 sm:$0xff]   ;;  %v6257_v46 = vld [vmem:[#allocation4 + $0x480] ss:$48 sps:$4 sm:$0xff]   ;;  %v6318_v22 = vld [vmem:[#allocation4 + $0x12c] ss:$48 sps:$4 sm:$0xff]  }
  0x3f   :  { %3025 = vmatpush1.bf16.msra.mxu1 %v6222_v23  ;;  %2983 = vmatprep.subr.bf16.mxu0 %v6223_v24  ;;  %v6255_v45 = vld [vmem:[#allocation4 + $0xa84] ss:$48 sps:$4 sm:$0xff]   ;;  %v6258_v47 = vld [vmem:[#allocation4 + $0xa80] ss:$48 sps:$4 sm:$0xff]   ;;  %v6316_v24 = vld [vmem:[#allocation4 + $0x128] ss:$48 sps:$4 sm:$0xff]  }
  0x40   :  { %3026 = vmatprep.subr.bf16.mxu1 %v6225_v25  ;;  %v7030_v48 = vld [vmem:[#allocation2 + $0x4] ss:$20 sps:$4 sm:$0xff]   ;;  %v6259_v49 = vld [vmem:[#allocation4 + $0x424] ss:$48 sps:$4 sm:$0xff]  }
  0x41   :  { %v7032_v50 = vld [vmem:[#allocation2 + $0xc] ss:$20 sps:$4 sm:$0xff]   ;;  %3003 = vmatprep.mubr.bf16.mxu0 %v7030_v48  ;;  %v6263_v52 = vld [vmem:[#allocation4 + $0x420] ss:$48 sps:$4 sm:$0xff]  }
  0x42   :  { %2984 = vmatpush1.bf16.msra.mxu0 %v6227_v26  ;;  %v6261_v51 = vld [vmem:[#allocation4 + $0xa24] ss:$48 sps:$4 sm:$0xff]   ;;  %3046 = vmatprep.mubr.bf16.mxu1 %v7032_v50  ;;  %v6264_v53 = vld [vmem:[#allocation4 + $0xa20] ss:$48 sps:$4 sm:$0xff]   ;;  %v6324_v26 = vld [vmem:[#allocation4 + $0xcc] ss:$48 sps:$4 sm:$0xff]  }
  0x43   :  { %3027 = vmatpush1.bf16.msra.mxu1 %v6228_v27  ;;  %2985 = vmatprep.subr.bf16.mxu0 %v6229_v28  ;;  %v6265_v54 = vld [vmem:[#allocation4 + $0x3c4] ss:$48 sps:$4 sm:$0xff]   ;;  %v6269_v56 = vld [vmem:[#allocation4 + $0x3c0] ss:$48 sps:$4 sm:$0xff]   ;;  %v6322_v28 = vld [vmem:[#allocation4 + $0xc8] ss:$48 sps:$4 sm:$0xff]  }
  0x44   :  { %3028 = vmatprep.subr.bf16.mxu1 %v6231_v29  ;;  %v6267_v55 = vld [vmem:[#allocation4 + $0x9c4] ss:$48 sps:$4 sm:$0xff]   ;;  %v6270_v57 = vld [vmem:[#allocation4 + $0x9c0] ss:$48 sps:$4 sm:$0xff]  }
  0x45   :  { %v6271_v58 = vld [vmem:[#allocation4 + $0x364] ss:$48 sps:$4 sm:$0xff]   ;;  %v6275_v60 = vld [vmem:[#allocation4 + $0x360] ss:$48 sps:$4 sm:$0xff]  }
  0x46   :  { %2986 = vmatpush1.bf16.msra.mxu0 %v6233_v30  ;;  %v6273_v59 = vld [vmem:[#allocation4 + $0x964] ss:$48 sps:$4 sm:$0xff]   ;;  %v6276_v61 = vld [vmem:[#allocation4 + $0x960] ss:$48 sps:$4 sm:$0xff]   ;;  %v6330_v30 = vld [vmem:[#allocation4 + $0x6c] ss:$48 sps:$4 sm:$0xff]  }
  0x47   :  { %3029 = vmatpush1.bf16.msra.mxu1 %v6234_v31  ;;  %2987 = vmatprep.subr.bf16.mxu0 %v6235_v32  ;;  %v6277_v62 = vld [vmem:[#allocation4 + $0x304] ss:$48 sps:$4 sm:$0xff]   ;;  %v6281_v0 = vld [vmem:[#allocation4 + $0x300] ss:$48 sps:$4 sm:$0xff]   ;;  %v6328_v32 = vld [vmem:[#allocation4 + $0x68] ss:$48 sps:$4 sm:$0xff]  }
  0x48   :  { %3030 = vmatprep.subr.bf16.mxu1 %v6237_v33  ;;  %v6279_v63 = vld [vmem:[#allocation4 + $0x904] ss:$48 sps:$4 sm:$0xff]   ;;  %v6282_v1 = vld [vmem:[#allocation4 + $0x900] ss:$48 sps:$4 sm:$0xff]  }
  0x49   :  { %v6291_v2 = vld [vmem:[#allocation4 + $0xea4] ss:$48 sps:$4 sm:$0xff]   ;;  %v6289_v6 = vld [vmem:[#allocation4 + $0xea0] ss:$48 sps:$4 sm:$0xff]  }
  0x4a   :  { %2988 = vmatpush2.bf16.msra.mxu0 %v6239_v34  ;;  %v7038_v5 = vld [vmem:[#allocation2 + $0x8] ss:$20 sps:$4 sm:$0xff]   ;;  %v6336_v34 = vld [vmem:[#allocation4 + $0xc] ss:$48 sps:$4 sm:$0xff]  }
  0x4b   :  { %3031 = vmatpush2.bf16.msra.mxu1 %v6240_v35  ;;  %2989 = vmatprep.subr.bf16.mxu0 %v6241_v36  ;;  %v6297_v8 = vld [vmem:[#allocation4 + $0xe44] ss:$48 sps:$4 sm:$0xff]   ;;  %v6295_v10 = vld [vmem:[#allocation4 + $0xe40] ss:$48 sps:$4 sm:$0xff]   ;;  %v6334_v36 = vld [vmem:[#allocation4 + $0x8] ss:$48 sps:$4 sm:$0xff]  }
  0x4c   :  { %3032 = vmatprep.subr.bf16.mxu1 %v6243_v37  ;;  %v6303_v12 = vld [vmem:[#allocation4 + $0xde4] ss:$48 sps:$4 sm:$0xff]   ;;  %v6301_v15 = vld [vmem:[#allocation4 + $0xde0] ss:$48 sps:$4 sm:$0xff]   ;;  %v6340_v37 = vld [vmem:[#allocation4 + $0x5ac] ss:$48 sps:$4 sm:$0xff]  }
  0x4d   :  { %v6309_v17 = vld [vmem:[#allocation4 + $0xd84] ss:$48 sps:$4 sm:$0xff]   ;;  %v6307_v19 = vld [vmem:[#allocation4 + $0xd80] ss:$48 sps:$4 sm:$0xff]  }
  0x4e   :  { %2990 = vmatpush2.bf16.msra.mxu0 %v6245_v38  ;;  %v6315_v21 = vld [vmem:[#allocation4 + $0xd24] ss:$48 sps:$4 sm:$0xff]   ;;  %v6313_v23 = vld [vmem:[#allocation4 + $0xd20] ss:$48 sps:$4 sm:$0xff]   ;;  %v6343_v38 = vld [vmem:[#allocation4 + $0x8ac] ss:$48 sps:$4 sm:$0xff]  }
  0x4f   :  { %3033 = vmatpush2.bf16.msra.mxu1 %v6246_v39  ;;  %2991 = vmatprep.subr.bf16.mxu0 %v6247_v40  ;;  %v6321_v25 = vld [vmem:[#allocation4 + $0xcc4] ss:$48 sps:$4 sm:$0xff]   ;;  %v6319_v27 = vld [vmem:[#allocation4 + $0xcc0] ss:$48 sps:$4 sm:$0xff]   ;;  %v7044_v39 = vld [vmem:[#allocation2 + $0x10] ss:$20 sps:$4 sm:$0xff]  }
  0x50   :  { %3034 = vmatprep.subr.bf16.mxu1 %v6249_v41  ;;  %v6327_v29 = vld [vmem:[#allocation4 + $0xc64] ss:$48 sps:$4 sm:$0xff]   ;;  %v6325_v31 = vld [vmem:[#allocation4 + $0xc60] ss:$48 sps:$4 sm:$0xff]   ;;  %v6338_v40 = vld [vmem:[#allocation4 + $0x5a8] ss:$48 sps:$4 sm:$0xff]  }
  0x51   :  { %v6333_v33 = vld [vmem:[#allocation4 + $0xc04] ss:$48 sps:$4 sm:$0xff]   ;;  %v6331_v35 = vld [vmem:[#allocation4 + $0xc00] ss:$48 sps:$4 sm:$0xff]   ;;  %v6341_v41 = vld [vmem:[#allocation4 + $0x8a8] ss:$48 sps:$4 sm:$0xff]  }
  0x52   :  { %2992 = vmatpush2.bf16.msra.mxu0 %v6251_v42  ;;  %v6346_v42 = vld [vmem:[#allocation4 + $0x54c] ss:$48 sps:$4 sm:$0xff]  }
  0x53   :  { %3035 = vmatpush2.bf16.msra.mxu1 %v6252_v43  ;;  %2993 = vmatprep.subr.bf16.mxu0 %v6253_v44  ;;  %v6349_v43 = vld [vmem:[#allocation4 + $0x84c] ss:$48 sps:$4 sm:$0xff]   ;;  %v6344_v44 = vld [vmem:[#allocation4 + $0x548] ss:$48 sps:$4 sm:$0xff]  }
  0x54   :  { %3036 = vmatprep.subr.bf16.mxu1 %v6255_v45  ;;  %v6347_v45 = vld [vmem:[#allocation4 + $0x848] ss:$48 sps:$4 sm:$0xff]  }
  0x56   :  { %2994 = vmatpush2.bf16.msra.mxu0 %v6257_v46  ;;  %v6352_v46 = vld [vmem:[#allocation4 + $0x4ec] ss:$48 sps:$4 sm:$0xff]  }
  0x57   :  { %3037 = vmatpush2.bf16.msra.mxu1 %v6258_v47  ;;  %2995 = vmatprep.subr.bf16.mxu0 %v6259_v49  ;;  %v6355_v47 = vld [vmem:[#allocation4 + $0x7ec] ss:$48 sps:$4 sm:$0xff]   ;;  %v6350_v49 = vld [vmem:[#allocation4 + $0x4e8] ss:$48 sps:$4 sm:$0xff]  }
  0x58   :  { %3038 = vmatprep.subr.bf16.mxu1 %v6261_v51  ;;  %v6353_v51 = vld [vmem:[#allocation4 + $0x7e8] ss:$48 sps:$4 sm:$0xff]  }
  0x5a   :  { %2996 = vmatpush2.bf16.msra.mxu0 %v6263_v52  ;;  %v6358_v52 = vld [vmem:[#allocation4 + $0x48c] ss:$48 sps:$4 sm:$0xff]  }
  0x5b   :  { %3039 = vmatpush2.bf16.msra.mxu1 %v6264_v53  ;;  %2997 = vmatprep.subr.bf16.mxu0 %v6265_v54  ;;  %v6361_v53 = vld [vmem:[#allocation4 + $0x78c] ss:$48 sps:$4 sm:$0xff]   ;;  %v6356_v54 = vld [vmem:[#allocation4 + $0x488] ss:$48 sps:$4 sm:$0xff]  }
  0x5c   :  { %3040 = vmatprep.subr.bf16.mxu1 %v6267_v55  ;;  %v6359_v55 = vld [vmem:[#allocation4 + $0x788] ss:$48 sps:$4 sm:$0xff]  }
  0x5e   :  { %2998 = vmatpush2.bf16.msra.mxu0 %v6269_v56  ;;  %v6364_v56 = vld [vmem:[#allocation4 + $0x42c] ss:$48 sps:$4 sm:$0xff]  }
  0x5f   :  { %3041 = vmatpush2.bf16.msra.mxu1 %v6270_v57  ;;  %2999 = vmatprep.subr.bf16.mxu0 %v6271_v58  ;;  %v6367_v57 = vld [vmem:[#allocation4 + $0x72c] ss:$48 sps:$4 sm:$0xff]   ;;  %v6362_v58 = vld [vmem:[#allocation4 + $0x428] ss:$48 sps:$4 sm:$0xff]  }
  0x60   :  { %3042 = vmatprep.subr.bf16.mxu1 %v6273_v59  ;;  %v6365_v59 = vld [vmem:[#allocation4 + $0x728] ss:$48 sps:$4 sm:$0xff]  }
  0x62   :  { %3000 = vmatpush2.bf16.msra.mxu0 %v6275_v60  ;;  %v6370_v60 = vld [vmem:[#allocation4 + $0x3cc] ss:$48 sps:$4 sm:$0xff]  }
  0x63   :  { %3043 = vmatpush2.bf16.msra.mxu1 %v6276_v61  ;;  %3001 = vmatprep.subr.bf16.mxu0 %v6277_v62  ;;  %v6373_v61 = vld [vmem:[#allocation4 + $0x6cc] ss:$48 sps:$4 sm:$0xff]   ;;  %v6368_v62 = vld [vmem:[#allocation4 + $0x3c8] ss:$48 sps:$4 sm:$0xff]  }
  0x64   :  { %3044 = vmatprep.subr.bf16.mxu1 %v6279_v63  ;;  %v6371_v63 = vld [vmem:[#allocation4 + $0x6c8] ss:$48 sps:$4 sm:$0xff]  }
  0x66   :  { %3002 = vmatpush2.bf16.msra.mxu0 %v6281_v0  ;;  %v6376_v0 = vld [vmem:[#allocation4 + $0x36c] ss:$48 sps:$4 sm:$0xff]  }
  0x67   :  { %3045 = vmatpush2.bf16.msra.mxu1 %v6282_v1  ;;  %3057 = vmatprep.subr.bf16.mxu0 %v6291_v2  ;;  %v6379_v1 = vld [vmem:[#allocation4 + $0x66c] ss:$48 sps:$4 sm:$0xff]   ;;  %v6374_v2 = vld [vmem:[#allocation4 + $0x368] ss:$48 sps:$4 sm:$0xff]  }
  0x68   :  { %3100 = vmatprep.subr.bf16.mxu1 %v6294_v3  ;;  %v6377_v3 = vld [vmem:[#allocation4 + $0x668] ss:$48 sps:$4 sm:$0xff]  }
  0x69   :  { %3004 = vmatmul.mubr.bf16.vlgmr.msra.gmra.mxu0 %v7036_v4 }
  0x6a   :  { %3047 = vmatmul.mubr.bf16.vlgmr.msra.gmra.mxu1 %v7038_v5  ;;  %3058 = vmatpush1.bf16.msra.mxu0 %v6289_v6  ;;  %v6382_v6 = vld [vmem:[#allocation4 + $0x30c] ss:$48 sps:$4 sm:$0xff]  }
  0x6b   :  { %3101 = vmatpush1.bf16.msra.mxu1 %v6292_v7  ;;  %3059 = vmatprep.subr.bf16.mxu0 %v6297_v8  ;;  %v6385_v7 = vld [vmem:[#allocation4 + $0x60c] ss:$48 sps:$4 sm:$0xff]   ;;  %v6380_v8 = vld [vmem:[#allocation4 + $0x308] ss:$48 sps:$4 sm:$0xff]  }
  0x6c   :  { %3102 = vmatprep.subr.bf16.mxu1 %v6300_v9  ;;  %3089 = vmatprep.mubr.bf16.mxu0 %v7360_v14  ;;  %v6383_v9 = vld [vmem:[#allocation4 + $0x608] ss:$48 sps:$4 sm:$0xff]  }
  0x6d   :  { %3132 = vmatprep.mubr.bf16.mxu1 %v7030_v48 }
  0x6e   :  { %3060 = vmatpush1.bf16.msra.mxu0 %v6295_v10  ;;  %v6388_v10 = vld [vmem:[#allocation4 + $0xbac] ss:$48 sps:$4 sm:$0xff]  }
  0x6f   :  { %3103 = vmatpush1.bf16.msra.mxu1 %v6298_v11  ;;  %3061 = vmatprep.subr.bf16.mxu0 %v6303_v12  ;;  %v6391_v11 = vld [vmem:[#allocation4 + $0xeac] ss:$48 sps:$4 sm:$0xff]   ;;  %v6386_v12 = vld [vmem:[#allocation4 + $0xba8] ss:$48 sps:$4 sm:$0xff]  }
  0x70   :  { %3104 = vmatprep.subr.bf16.mxu1 %v6306_v13  ;;  %v6389_v13 = vld [vmem:[#allocation4 + $0xea8] ss:$48 sps:$4 sm:$0xff]  }
  0x72   :  { %3062 = vmatpush1.bf16.msra.mxu0 %v6301_v15  ;;  %v6394_v15 = vld [vmem:[#allocation4 + $0xb4c] ss:$48 sps:$4 sm:$0xff]  }
  0x73   :  { %3105 = vmatpush1.bf16.msra.mxu1 %v6304_v16  ;;  %3063 = vmatprep.subr.bf16.mxu0 %v6309_v17  ;;  %v6397_v16 = vld [vmem:[#allocation4 + $0xe4c] ss:$48 sps:$4 sm:$0xff]   ;;  %v6392_v17 = vld [vmem:[#allocation4 + $0xb48] ss:$48 sps:$4 sm:$0xff]  }
  0x74   :  { %3106 = vmatprep.subr.bf16.mxu1 %v6312_v18  ;;  %v6395_v18 = vld [vmem:[#allocation4 + $0xe48] ss:$48 sps:$4 sm:$0xff]  }
  0x76   :  { %3064 = vmatpush1.bf16.msra.mxu0 %v6307_v19  ;;  %v6400_v19 = vld [vmem:[#allocation4 + $0xaec] ss:$48 sps:$4 sm:$0xff]  }
  0x77   :  { %3107 = vmatpush1.bf16.msra.mxu1 %v6310_v20  ;;  %3065 = vmatprep.subr.bf16.mxu0 %v6315_v21  ;;  %v6403_v20 = vld [vmem:[#allocation4 + $0xdec] ss:$48 sps:$4 sm:$0xff]   ;;  %v6398_v21 = vld [vmem:[#allocation4 + $0xae8] ss:$48 sps:$4 sm:$0xff]  }
  0x78   :  { %3108 = vmatprep.subr.bf16.mxu1 %v6318_v22  ;;  %v6401_v22 = vld [vmem:[#allocation4 + $0xde8] ss:$48 sps:$4 sm:$0xff]  }
  0x7a   :  { %3066 = vmatpush1.bf16.msra.mxu0 %v6313_v23  ;;  %v6406_v23 = vld [vmem:[#allocation4 + $0xa8c] ss:$48 sps:$4 sm:$0xff]  }
  0x7b   :  { %3109 = vmatpush1.bf16.msra.mxu1 %v6316_v24  ;;  %3067 = vmatprep.subr.bf16.mxu0 %v6321_v25  ;;  %v6409_v24 = vld [vmem:[#allocation4 + $0xd8c] ss:$48 sps:$4 sm:$0xff]   ;;  %v6404_v25 = vld [vmem:[#allocation4 + $0xa88] ss:$48 sps:$4 sm:$0xff]  }
  0x7c   :  { %3110 = vmatprep.subr.bf16.mxu1 %v6324_v26  ;;  %v6412_v26 = vld [vmem:[#allocation4 + $0xa2c] ss:$48 sps:$4 sm:$0xff]  }
  0x7e   :  { %3068 = vmatpush1.bf16.msra.mxu0 %v6319_v27  ;;  %v6415_v27 = vld [vmem:[#allocation4 + $0xd2c] ss:$48 sps:$4 sm:$0xff]  }
  0x7f   :  { %3111 = vmatpush1.bf16.msra.mxu1 %v6322_v28  ;;  %3069 = vmatprep.subr.bf16.mxu0 %v6327_v29  ;;  %v6410_v28 = vld [vmem:[#allocation4 + $0xa28] ss:$48 sps:$4 sm:$0xff]  }
  0x80   :  { %3112 = vmatprep.subr.bf16.mxu1 %v6330_v30  ;;  %v6413_v29 = vld [vmem:[#allocation4 + $0xd28] ss:$48 sps:$4 sm:$0xff]   ;;  %v6418_v30 = vld [vmem:[#allocation4 + $0x9cc] ss:$48 sps:$4 sm:$0xff]  }
  0x82   :  { %3070 = vmatpush1.bf16.msra.mxu0 %v6325_v31  ;;  %v6421_v31 = vld [vmem:[#allocation4 + $0xccc] ss:$48 sps:$4 sm:$0xff]  }
  0x83   :  { %3113 = vmatpush1.bf16.msra.mxu1 %v6328_v32  ;;  %3071 = vmatprep.subr.bf16.mxu0 %v6333_v33  ;;  %v6416_v32 = vld [vmem:[#allocation4 + $0x9c8] ss:$48 sps:$4 sm:$0xff]  }
  0x84   :  { %3114 = vmatprep.subr.bf16.mxu1 %v6336_v34  ;;  %v6419_v33 = vld [vmem:[#allocation4 + $0xcc8] ss:$48 sps:$4 sm:$0xff]   ;;  %v6424_v34 = vld [vmem:[#allocation4 + $0x96c] ss:$48 sps:$4 sm:$0xff]  }
  0x86   :  { %3072 = vmatpush1.bf16.msra.mxu0 %v6331_v35  ;;  %v6427_v35 = vld [vmem:[#allocation4 + $0xc6c] ss:$48 sps:$4 sm:$0xff]  }
  0x87   :  { %3115 = vmatpush1.bf16.msra.mxu1 %v6334_v36  ;;  %3143 = vmatprep.subr.bf16.mxu0 %v6343_v38  ;;  %v6422_v36 = vld [vmem:[#allocation4 + $0x968] ss:$48 sps:$4 sm:$0xff]   ;;  %v6430_v38 = vld [vmem:[#allocation4 + $0x90c] ss:$48 sps:$4 sm:$0xff]  }
  0x88   :  { %3116 = vmatprep.subr.bf16.mxu1 %v6340_v37  ;;  %v6425_v37 = vld [vmem:[#allocation4 + $0xc68] ss:$48 sps:$4 sm:$0xff]  }
  0x89   :  { %3090 = vmatmul.mubr.bf16.vlgmr.msra.gmra.mxu0 %v7044_v39 }
  0x8a   :  { %3144 = vmatpush1.bf16.msra.mxu0 %v6341_v41  ;;  %3175 = vmatprep.mubr.bf16.mxu0 %v7032_v50  ;;  %v6428_v41 = vld [vmem:[#allocation4 + $0x908] ss:$48 sps:$4 sm:$0xff]  }
  0x8b   :  { %3117 = vmatpush2.bf16.msra.mxu1 %v6338_v40  ;;  %3145 = vmatprep.subr.bf16.mxu0 %v6349_v43  ;;  %v6433_v40 = vld [vmem:[#allocation4 + $0xc0c] ss:$48 sps:$4 sm:$0xff]   ;;  %v6436_v43 = vld [vmem:[#allocation4 + $0x2b4] ss:$48 sps:$4 sm:$0xff]  }
  0x8c   :  { %3118 = vmatprep.subr.bf16.mxu1 %v6346_v42  ;;  %v6431_v42 = vld [vmem:[#allocation4 + $0xc08] ss:$48 sps:$4 sm:$0xff]  }
  0x8e   :  { %3146 = vmatpush1.bf16.msra.mxu0 %v6347_v45  ;;  %v6434_v45 = vld [vmem:[#allocation4 + $0x2b0] ss:$48 sps:$4 sm:$0xff]  }
  0x8f   :  { %3119 = vmatpush2.bf16.msra.mxu1 %v6344_v44  ;;  %3147 = vmatprep.subr.bf16.mxu0 %v6355_v47  ;;  %v6439_v44 = vld [vmem:[#allocation4 + $0x8b4] ss:$48 sps:$4 sm:$0xff]  }
  0x90   :  { %3120 = vmatprep.subr.bf16.mxu1 %v6352_v46  ;;  %v6437_v46 = vld [vmem:[#allocation4 + $0x8b0] ss:$48 sps:$4 sm:$0xff]   ;;  %v6442_v47 = vld [vmem:[#allocation4 + $0x254] ss:$48 sps:$4 sm:$0xff]  }
  0x92   :  { %3148 = vmatpush1.bf16.msra.mxu0 %v6353_v51  ;;  %v6440_v51 = vld [vmem:[#allocation4 + $0x250] ss:$48 sps:$4 sm:$0xff]  }
  0x93   :  { %3121 = vmatpush2.bf16.msra.mxu1 %v6350_v49  ;;  %3149 = vmatprep.subr.bf16.mxu0 %v6361_v53  ;;  %v6445_v49 = vld [vmem:[#allocation4 + $0x854] ss:$48 sps:$4 sm:$0xff]  }
  0x94   :  { %3122 = vmatprep.subr.bf16.mxu1 %v6358_v52  ;;  %v6443_v52 = vld [vmem:[#allocation4 + $0x850] ss:$48 sps:$4 sm:$0xff]   ;;  %v6448_v53 = vld [vmem:[#allocation4 + $0x1f4] ss:$48 sps:$4 sm:$0xff]  }
  0x96   :  { %3150 = vmatpush1.bf16.msra.mxu0 %v6359_v55  ;;  %v6446_v55 = vld [vmem:[#allocation4 + $0x1f0] ss:$48 sps:$4 sm:$0xff]  }
  0x97   :  { %3123 = vmatpush2.bf16.msra.mxu1 %v6356_v54  ;;  %3151 = vmatprep.subr.bf16.mxu0 %v6367_v57  ;;  %v6451_v54 = vld [vmem:[#allocation4 + $0x7f4] ss:$48 sps:$4 sm:$0xff]  }
  0x98   :  { %3124 = vmatprep.subr.bf16.mxu1 %v6364_v56  ;;  %v6449_v56 = vld [vmem:[#allocation4 + $0x7f0] ss:$48 sps:$4 sm:$0xff]   ;;  %v6454_v57 = vld [vmem:[#allocation4 + $0x194] ss:$48 sps:$4 sm:$0xff]  }
  0x9a   :  { %3152 = vmatpush1.bf16.msra.mxu0 %v6365_v59  ;;  %v6460_v59 = vld [vmem:[#allocation4 + $0x134] ss:$48 sps:$4 sm:$0xff]  }
  0x9b   :  { %3125 = vmatpush2.bf16.msra.mxu1 %v6362_v58  ;;  %3153 = vmatprep.subr.bf16.mxu0 %v6373_v61  ;;  %v6455_v58 = vld [vmem:[#allocation4 + $0x790] ss:$48 sps:$4 sm:$0xff]  }
  0x9c   :  { %3126 = vmatprep.subr.bf16.mxu1 %v6370_v60  ;;  %v6463_v60 = vld [vmem:[#allocation4 + $0x734] ss:$48 sps:$4 sm:$0xff]   ;;  %v6458_v61 = vld [vmem:[#allocation4 + $0x130] ss:$48 sps:$4 sm:$0xff]  }
  0x9e   :  { %3154 = vmatpush1.bf16.msra.mxu0 %v6371_v63  ;;  %v6464_v63 = vld [vmem:[#allocation4 + $0xd0] ss:$48 sps:$4 sm:$0xff]  }
  0x9f   :  { %3127 = vmatpush2.bf16.msra.mxu1 %v6368_v62  ;;  %3155 = vmatprep.subr.bf16.mxu0 %v6379_v1  ;;  %v6469_v62 = vld [vmem:[#allocation4 + $0x6d4] ss:$48 sps:$4 sm:$0xff]  }
  0xa0   :  { %3128 = vmatprep.subr.bf16.mxu1 %v6376_v0  ;;  %v6467_v0 = vld [vmem:[#allocation4 + $0x6d0] ss:$48 sps:$4 sm:$0xff]   ;;  %v6472_v1 = vld [vmem:[#allocation4 + $0x74] ss:$48 sps:$4 sm:$0xff]  }
  0xa2   :  { %3156 = vmatpush1.bf16.msra.mxu0 %v6377_v3  ;;  %v6470_v3 = vld [vmem:[#allocation4 + $0x70] ss:$48 sps:$4 sm:$0xff]  }
  0xa3   :  { %3129 = vmatpush2.bf16.msra.mxu1 %v6374_v2  ;;  %3157 = vmatprep.subr.bf16.mxu0 %v6385_v7  ;;  %v6475_v2 = vld [vmem:[#allocation4 + $0x674] ss:$48 sps:$4 sm:$0xff]  }
  0xa4   :  { %3130 = vmatprep.subr.bf16.mxu1 %v6382_v6  ;;  %v6473_v6 = vld [vmem:[#allocation4 + $0x670] ss:$48 sps:$4 sm:$0xff]   ;;  %v6478_v7 = vld [vmem:[#allocation4 + $0x14] ss:$48 sps:$4 sm:$0xff]  }
  0xa6   :  { %3158 = vmatpush1.bf16.msra.mxu0 %v6383_v9  ;;  %v6476_v9 = vld [vmem:[#allocation4 + $0x10] ss:$48 sps:$4 sm:$0xff]  }
  0xa7   :  { %3131 = vmatpush2.bf16.msra.mxu1 %v6380_v8  ;;  %3159 = vmatprep.subr.bf16.mxu0 %v6388_v10  ;;  %v6481_v8 = vld [vmem:[#allocation4 + $0x614] ss:$48 sps:$4 sm:$0xff]   ;;  %v6479_v10 = vld [vmem:[#allocation4 + $0x610] ss:$48 sps:$4 sm:$0xff]  }
  0xa8   :  { %3186 = vmatprep.subr.bf16.mxu1 %v6391_v11  ;;  %v6484_v11 = vld [vmem:[#allocation4 + $0x5b4] ss:$48 sps:$4 sm:$0xff]  }
  0xaa   :  { %3133 = vmatmul.mubr.bf16.vlgmr.msra.gmra.mxu1 %v7036_v4  ;;  %3160 = vmatpush2.bf16.msra.mxu0 %v6386_v12  ;;  %v6407_v4 = vld [vmem:[#allocation4 + $0xd88] ss:$48 sps:$4 sm:$0xff]   ;;  %v6487_v12 = vld [vmem:[#allocation4 + $0xbb4] ss:$48 sps:$4 sm:$0xff]  }
  0xab   :  { %3187 = vmatpush1.bf16.msra.mxu1 %v6389_v13  ;;  %3161 = vmatprep.subr.bf16.mxu0 %v6394_v15  ;;  %v6482_v13 = vld [vmem:[#allocation4 + $0x5b0] ss:$48 sps:$4 sm:$0xff]  }
  0xac   :  { %3188 = vmatprep.subr.bf16.mxu1 %v6397_v16  ;;  %3218 = vmatprep.mubr.bf16.mxu1 %v7360_v14  ;;  %v6485_v15 = vld [vmem:[#allocation4 + $0xbb0] ss:$48 sps:$4 sm:$0xff]   ;;  %v6490_v16 = vld [vmem:[#allocation4 + $0x554] ss:$48 sps:$4 sm:$0xff]  }
  0xae   :  { %3162 = vmatpush2.bf16.msra.mxu0 %v6392_v17  ;;  %v6493_v17 = vld [vmem:[#allocation4 + $0xb54] ss:$48 sps:$4 sm:$0xff]  }
  0xaf   :  { %3189 = vmatpush1.bf16.msra.mxu1 %v6395_v18  ;;  %3163 = vmatprep.subr.bf16.mxu0 %v6400_v19  ;;  %v6488_v18 = vld [vmem:[#allocation4 + $0x550] ss:$48 sps:$4 sm:$0xff]  }
  0xb0   :  { %3190 = vmatprep.subr.bf16.mxu1 %v6403_v20  ;;  %v6491_v19 = vld [vmem:[#allocation4 + $0xb50] ss:$48 sps:$4 sm:$0xff]   ;;  %v6496_v20 = vld [vmem:[#allocation4 + $0x4f4] ss:$48 sps:$4 sm:$0xff]  }
  0xb2   :  { %3164 = vmatpush2.bf16.msra.mxu0 %v6398_v21  ;;  %v6499_v21 = vld [vmem:[#allocation4 + $0xaf4] ss:$48 sps:$4 sm:$0xff]  }
  0xb3   :  { %3191 = vmatpush1.bf16.msra.mxu1 %v6401_v22  ;;  %3165 = vmatprep.subr.bf16.mxu0 %v6406_v23  ;;  %v6494_v22 = vld [vmem:[#allocation4 + $0x4f0] ss:$48 sps:$4 sm:$0xff]  }
  0xb4   :  { %3192 = vmatprep.subr.bf16.mxu1 %v6409_v24  ;;  %v6497_v23 = vld [vmem:[#allocation4 + $0xaf0] ss:$48 sps:$4 sm:$0xff]   ;;  %v6502_v24 = vld [vmem:[#allocation4 + $0x494] ss:$48 sps:$4 sm:$0xff]  }
  0xb6   :  { %3166 = vmatpush2.bf16.msra.mxu0 %v6404_v25  ;;  %v6505_v25 = vld [vmem:[#allocation4 + $0xa94] ss:$48 sps:$4 sm:$0xff]  }
  0xb7   :  { %3193 = vmatpush1.bf16.msra.mxu1 %v6407_v4  ;;  %3167 = vmatprep.subr.bf16.mxu0 %v6412_v26  ;;  %v6500_v4 = vld [vmem:[#allocation4 + $0x490] ss:$48 sps:$4 sm:$0xff]  }
  0xb8   :  { %3194 = vmatprep.subr.bf16.mxu1 %v6415_v27  ;;  %v6503_v26 = vld [vmem:[#allocation4 + $0xa90] ss:$48 sps:$4 sm:$0xff]   ;;  %v6508_v27 = vld [vmem:[#allocation4 + $0x434] ss:$48 sps:$4 sm:$0xff]  }
  0xba   :  { %3168 = vmatpush2.bf16.msra.mxu0 %v6410_v28  ;;  %v6511_v28 = vld [vmem:[#allocation4 + $0xa34] ss:$48 sps:$4 sm:$0xff]  }
  0xbb   :  { %3195 = vmatpush1.bf16.msra.mxu1 %v6413_v29  ;;  %3169 = vmatprep.subr.bf16.mxu0 %v6418_v30  ;;  %v6506_v29 = vld [vmem:[#allocation4 + $0x430] ss:$48 sps:$4 sm:$0xff]  }
  0xbc   :  { %3196 = vmatprep.subr.bf16.mxu1 %v6421_v31  ;;  %v6509_v30 = vld [vmem:[#allocation4 + $0xa30] ss:$48 sps:$4 sm:$0xff]   ;;  %v6514_v31 = vld [vmem:[#allocation4 + $0x3d4] ss:$48 sps:$4 sm:$0xff]  }
  0xbe   :  { %3170 = vmatpush2.bf16.msra.mxu0 %v6416_v32  ;;  %v6517_v32 = vld [vmem:[#allocation4 + $0x9d4] ss:$48 sps:$4 sm:$0xff]  }
  0xbf   :  { %3197 = vmatpush1.bf16.msra.mxu1 %v6419_v33  ;;  %3171 = vmatprep.subr.bf16.mxu0 %v6424_v34  ;;  %v6512_v33 = vld [vmem:[#allocation4 + $0x3d0] ss:$48 sps:$4 sm:$0xff]  }
  0xc0   :  { %3198 = vmatprep.subr.bf16.mxu1 %v6427_v35  ;;  %v6515_v34 = vld [vmem:[#allocation4 + $0x9d0] ss:$48 sps:$4 sm:$0xff]   ;;  %v6520_v35 = vld [vmem:[#allocation4 + $0x374] ss:$48 sps:$4 sm:$0xff]  }
  0xc2   :  { %3172 = vmatpush2.bf16.msra.mxu0 %v6422_v36  ;;  %v6523_v36 = vld [vmem:[#allocation4 + $0x974] ss:$48 sps:$4 sm:$0xff]  }
  0xc3   :  { %3199 = vmatpush1.bf16.msra.mxu1 %v6425_v37  ;;  %3173 = vmatprep.subr.bf16.mxu0 %v6430_v38  ;;  %v6518_v37 = vld [vmem:[#allocation4 + $0x370] ss:$48 sps:$4 sm:$0xff]  }
  0xc4   :  { %3200 = vmatprep.subr.bf16.mxu1 %v6433_v40  ;;  %v6521_v38 = vld [vmem:[#allocation4 + $0x970] ss:$48 sps:$4 sm:$0xff]   ;;  %v6526_v40 = vld [vmem:[#allocation4 + $0x314] ss:$48 sps:$4 sm:$0xff]  }
  0xc6   :  { %3174 = vmatpush2.bf16.msra.mxu0 %v6428_v41  ;;  %v6529_v41 = vld [vmem:[#allocation4 + $0x914] ss:$48 sps:$4 sm:$0xff]  }
  0xc7   :  { %3201 = vmatpush1.bf16.msra.mxu1 %v6431_v42  ;;  %3229 = vmatprep.subr.bf16.mxu0 %v6436_v43  ;;  %v6524_v42 = vld [vmem:[#allocation4 + $0x310] ss:$48 sps:$4 sm:$0xff]  }
  0xc8   :  { %3272 = vmatprep.subr.bf16.mxu1 %v6439_v44  ;;  %v6527_v43 = vld [vmem:[#allocation4 + $0x910] ss:$48 sps:$4 sm:$0xff]   ;;  %v6532_v44 = vld [vmem:[#allocation4 + $0xeb4] ss:$48 sps:$4 sm:$0xff]  }
  0xc9   :  { %3176 = vmatmul.mubr.bf16.vlgmr.msra.gmra.mxu0 %v7038_v5  ;;  %v6457_v5 = vld [vmem:[#allocation4 + $0x794] ss:$48 sps:$4 sm:$0xff]  }
  0xca   :  { %3219 = vmatmul.mubr.bf16.vlgmr.msra.gmra.mxu1 %v7044_v39  ;;  %3230 = vmatpush1.bf16.msra.mxu0 %v6434_v45  ;;  %v6452_v39 = vld [vmem:[#allocation4 + $0x190] ss:$48 sps:$4 sm:$0xff]   ;;  %v6535_v45 = vld [vmem:[#allocation4 + $0x2bc] ss:$48 sps:$4 sm:$0xff]  }
  0xcb   :  { %3273 = vmatpush1.bf16.msra.mxu1 %v6437_v46  ;;  %3231 = vmatprep.subr.bf16.mxu0 %v6442_v47  ;;  %v6530_v46 = vld [vmem:[#allocation4 + $0xeb0] ss:$48 sps:$4 sm:$0xff]   ;;  %v6533_v47 = vld [vmem:[#allocation4 + $0x2b8] ss:$48 sps:$4 sm:$0xff]  }
  0xcc   :  { %3274 = vmatprep.subr.bf16.mxu1 %v6445_v49  ;;  %3261 = vmatprep.mubr.bf16.mxu0 %v7030_v48  ;;  %v6461_v48 = vld [vmem:[#allocation4 + $0x730] ss:$48 sps:$4 sm:$0xff]   ;;  %v6538_v49 = vld [vmem:[#allocation4 + $0xe54] ss:$48 sps:$4 sm:$0xff]  }
  0xcd   :  { %3304 = vmatprep.mubr.bf16.mxu1 %v7032_v50  ;;  %v6466_v50 = vld [vmem:[#allocation4 + $0xd4] ss:$48 sps:$4 sm:$0xff]  }
  0xce   :  { %3232 = vmatpush1.bf16.msra.mxu0 %v6440_v51  ;;  %v6541_v51 = vld [vmem:[#allocation4 + $0x25c] ss:$48 sps:$4 sm:$0xff]  }
  0xcf   :  { %3275 = vmatpush1.bf16.msra.mxu1 %v6443_v52  ;;  %3233 = vmatprep.subr.bf16.mxu0 %v6448_v53  ;;  %v7054_v52 = vld [vmem:[#allocation2] ss:$20 sps:$4 sm:$0xff]   ;;  %v7057_v53 = vld [vmem:[#allocation2 + $0x8] ss:$20 sps:$4 sm:$0xff]  }
  0xd0   :  { %3276 = vmatprep.subr.bf16.mxu1 %v6451_v54  ;;  %v6536_v54 = vld [vmem:[#allocation4 + $0xe50] ss:$48 sps:$4 sm:$0xff]  }
  0xd2   :  { %3234 = vmatpush1.bf16.msra.mxu0 %v6446_v55  ;;  %v6539_v55 = vld [vmem:[#allocation4 + $0x258] ss:$48 sps:$4 sm:$0xff]  }
  0xd3   :  { %3277 = vmatpush1.bf16.msra.mxu1 %v6449_v56  ;;  %3235 = vmatprep.subr.bf16.mxu0 %v6454_v57  ;;  %v6544_v56 = vld [vmem:[#allocation4 + $0xdf4] ss:$48 sps:$4 sm:$0xff]   ;;  %v6547_v57 = vld [vmem:[#allocation4 + $0x1fc] ss:$48 sps:$4 sm:$0xff]  }
  0xd4   :  { %3278 = vmatprep.subr.bf16.mxu1 %v6457_v5  ;;  %v7061_v5 = vld [vmem:[#allocation2 + $0x4] ss:$20 sps:$4 sm:$0xff]  }
  0xd6   :  { %3236 = vmatpush1.bf16.msra.mxu0 %v6452_v39  ;;  %v6542_v39 = vld [vmem:[#allocation4 + $0xdf0] ss:$48 sps:$4 sm:$0xff]  }
  0xd7   :  { %3279 = vmatpush1.bf16.msra.mxu1 %v6455_v58  ;;  %3237 = vmatprep.subr.bf16.mxu0 %v6460_v59  ;;  %v6545_v58 = vld [vmem:[#allocation4 + $0x1f8] ss:$48 sps:$4 sm:$0xff]   ;;  %v6550_v59 = vld [vmem:[#allocation4 + $0xd94] ss:$48 sps:$4 sm:$0xff]  }
  0xd8   :  { %3280 = vmatprep.subr.bf16.mxu1 %v6463_v60  ;;  %v6553_v60 = vld [vmem:[#allocation4 + $0x19c] ss:$48 sps:$4 sm:$0xff]  }
  0xda   :  { %3238 = vmatpush1.bf16.msra.mxu0 %v6458_v61  ;;  %v6548_v61 = vld [vmem:[#allocation4 + $0xd90] ss:$48 sps:$4 sm:$0xff]  }
  0xdb   :  { %3281 = vmatpush1.bf16.msra.mxu1 %v6461_v48  ;;  %3239 = vmatprep.subr.bf16.mxu0 %v6466_v50  ;;  %v6551_v48 = vld [vmem:[#allocation4 + $0x198] ss:$48 sps:$4 sm:$0xff]   ;;  %v6556_v50 = vld [vmem:[#allocation4 + $0xd34] ss:$48 sps:$4 sm:$0xff]  }
  0xdc   :  { %3282 = vmatprep.subr.bf16.mxu1 %v6469_v62  ;;  %v6559_v62 = vld [vmem:[#allocation4 + $0x13c] ss:$48 sps:$4 sm:$0xff]  }
  0xde   :  { %3240 = vmatpush1.bf16.msra.mxu0 %v6464_v63  ;;  %v6554_v63 = vld [vmem:[#allocation4 + $0xd30] ss:$48 sps:$4 sm:$0xff]  }
  0xdf   :  { %3283 = vmatpush1.bf16.msra.mxu1 %v6467_v0  ;;  %3241 = vmatprep.subr.bf16.mxu0 %v6472_v1  ;;  %v6557_v0 = vld [vmem:[#allocation4 + $0x138] ss:$48 sps:$4 sm:$0xff]   ;;  %v6562_v1 = vld [vmem:[#allocation4 + $0xcd4] ss:$48 sps:$4 sm:$0xff]  }
  0xe0   :  { %3284 = vmatprep.subr.bf16.mxu1 %v6475_v2  ;;  %v6565_v2 = vld [vmem:[#allocation4 + $0xdc] ss:$48 sps:$4 sm:$0xff]  }
  0xe2   :  { %3242 = vmatpush1.bf16.msra.mxu0 %v6470_v3  ;;  %v6560_v3 = vld [vmem:[#allocation4 + $0xcd0] ss:$48 sps:$4 sm:$0xff]  }
  0xe3   :  { %3285 = vmatpush1.bf16.msra.mxu1 %v6473_v6  ;;  %3243 = vmatprep.subr.bf16.mxu0 %v6478_v7  ;;  %v6563_v6 = vld [vmem:[#allocation4 + $0xd8] ss:$48 sps:$4 sm:$0xff]   ;;  %v6568_v7 = vld [vmem:[#allocation4 + $0xc74] ss:$48 sps:$4 sm:$0xff]  }
  0xe4   :  { %3286 = vmatprep.subr.bf16.mxu1 %v6481_v8  ;;  %v6571_v8 = vld [vmem:[#allocation4 + $0x7c] ss:$48 sps:$4 sm:$0xff]  }
  0xe6   :  { %3244 = vmatpush1.bf16.msra.mxu0 %v6476_v9  ;;  %v6566_v9 = vld [vmem:[#allocation4 + $0xc70] ss:$48 sps:$4 sm:$0xff]  }
  0xe7   :  { %3287 = vmatpush1.bf16.msra.mxu1 %v6479_v10  ;;  %3245 = vmatprep.subr.bf16.mxu0 %v6484_v11  ;;  %v6569_v10 = vld [vmem:[#allocation4 + $0x78] ss:$48 sps:$4 sm:$0xff]   ;;  %v6574_v11 = vld [vmem:[#allocation4 + $0xc14] ss:$48 sps:$4 sm:$0xff]  }
  0xe8   :  { %3288 = vmatprep.subr.bf16.mxu1 %v6487_v12  ;;  %v6577_v12 = vld [vmem:[#allocation4 + $0x1c] ss:$48 sps:$4 sm:$0xff]  }
  0xea   :  { %3246 = vmatpush2.bf16.msra.mxu0 %v6482_v13  ;;  %v6572_v13 = vld [vmem:[#allocation4 + $0xc10] ss:$48 sps:$4 sm:$0xff]  }
  0xeb   :  { %3289 = vmatpush2.bf16.msra.mxu1 %v6485_v15  ;;  %3247 = vmatprep.subr.bf16.mxu0 %v6490_v16  ;;  %v6575_v15 = vld [vmem:[#allocation4 + $0x18] ss:$48 sps:$4 sm:$0xff]   ;;  %v6580_v16 = vld [vmem:[#allocation4 + $0x5bc] ss:$48 sps:$4 sm:$0xff]  }
  0xec   :  { %3290 = vmatprep.subr.bf16.mxu1 %v6493_v17  ;;  %v6583_v17 = vld [vmem:[#allocation4 + $0x8bc] ss:$48 sps:$4 sm:$0xff]  }
  0xee   :  { %3248 = vmatpush2.bf16.msra.mxu0 %v6488_v18  ;;  %v6578_v18 = vld [vmem:[#allocation4 + $0x5b8] ss:$48 sps:$4 sm:$0xff]  }
  0xef   :  { %3291 = vmatpush2.bf16.msra.mxu1 %v6491_v19  ;;  %3249 = vmatprep.subr.bf16.mxu0 %v6496_v20  ;;  %v6581_v19 = vld [vmem:[#allocation4 + $0x8b8] ss:$48 sps:$4 sm:$0xff]   ;;  %v6586_v20 = vld [vmem:[#allocation4 + $0x55c] ss:$48 sps:$4 sm:$0xff]  }
  0xf0   :  { %3292 = vmatprep.subr.bf16.mxu1 %v6499_v21  ;;  %v6589_v21 = vld [vmem:[#allocation4 + $0x85c] ss:$48 sps:$4 sm:$0xff]  }
  0xf2   :  { %3250 = vmatpush2.bf16.msra.mxu0 %v6494_v22 }
  0xf3   :  { %3293 = vmatpush2.bf16.msra.mxu1 %v6497_v23  ;;  %3251 = vmatprep.subr.bf16.mxu0 %v6502_v24  ;;  %v7064_v24 = vld [vmem:[#allocation2 + $0x10] ss:$20 sps:$4 sm:$0xff]  }
  0xf4   :  { %3294 = vmatprep.subr.bf16.mxu1 %v6505_v25  ;;  %v6584_v25 = vld [vmem:[#allocation4 + $0x558] ss:$48 sps:$4 sm:$0xff]  }
  0xf6   :  { %3252 = vmatpush2.bf16.msra.mxu0 %v6500_v4 }
  0xf7   :  { %3295 = vmatpush2.bf16.msra.mxu1 %v6503_v26  ;;  %3253 = vmatprep.subr.bf16.mxu0 %v6508_v27  ;;  %v6587_v26 = vld [vmem:[#allocation4 + $0x858] ss:$48 sps:$4 sm:$0xff]   ;;  %v6592_v27 = vld [vmem:[#allocation4 + $0x4fc] ss:$48 sps:$4 sm:$0xff]  }
  0xf8   :  { %3296 = vmatprep.subr.bf16.mxu1 %v6511_v28 }
  0xfa   :  { %3254 = vmatpush2.bf16.msra.mxu0 %v6506_v29 }
  0xfb   :  { %3297 = vmatpush2.bf16.msra.mxu1 %v6509_v30  ;;  %3255 = vmatprep.subr.bf16.mxu0 %v6514_v31  ;;  %v6595_v30 = vld [vmem:[#allocation4 + $0x7fc] ss:$48 sps:$4 sm:$0xff]  }
  0xfc   :  { %3298 = vmatprep.subr.bf16.mxu1 %v6517_v32  ;;  %v7071_v32 = vld [vmem:[#allocation2 + $0xc] ss:$20 sps:$4 sm:$0xff]  }
  0xfe   :  { %3256 = vmatpush2.bf16.msra.mxu0 %v6512_v33  ;;  %v6590_v33 = vld [vmem:[#allocation4 + $0x4f8] ss:$48 sps:$4 sm:$0xff]  }
  0xff   :  { %3299 = vmatpush2.bf16.msra.mxu1 %v6515_v34  ;;  %3257 = vmatprep.subr.bf16.mxu0 %v6520_v35  ;;  %v6593_v34 = vld [vmem:[#allocation4 + $0x7f8] ss:$48 sps:$4 sm:$0xff]   ;;  %v6598_v35 = vld [vmem:[#allocation4 + $0x49c] ss:$48 sps:$4 sm:$0xff]  }
 0x100   :  { %3300 = vmatprep.subr.bf16.mxu1 %v6523_v36  ;;  %v6601_v36 = vld [vmem:[#allocation4 + $0x79c] ss:$48 sps:$4 sm:$0xff]  }
 0x102   :  { %3258 = vmatpush2.bf16.msra.mxu0 %v6518_v37  ;;  %v6596_v37 = vld [vmem:[#allocation4 + $0x498] ss:$48 sps:$4 sm:$0xff]  }
 0x103   :  { %3301 = vmatpush2.bf16.msra.mxu1 %v6521_v38  ;;  %3259 = vmatprep.subr.bf16.mxu0 %v6526_v40  ;;  %v6599_v38 = vld [vmem:[#allocation4 + $0x798] ss:$48 sps:$4 sm:$0xff]   ;;  %v6604_v40 = vld [vmem:[#allocation4 + $0x43c] ss:$48 sps:$4 sm:$0xff]  }
 0x104   :  { %3302 = vmatprep.subr.bf16.mxu1 %v6529_v41  ;;  %v6607_v41 = vld [vmem:[#allocation4 + $0x73c] ss:$48 sps:$4 sm:$0xff]  }
 0x106   :  { %3260 = vmatpush2.bf16.msra.mxu0 %v6524_v42  ;;  %v6602_v42 = vld [vmem:[#allocation4 + $0x438] ss:$48 sps:$4 sm:$0xff]  }
 0x107   :  { %3303 = vmatpush2.bf16.msra.mxu1 %v6527_v43  ;;  %3315 = vmatprep.subr.bf16.mxu0 %v6532_v44  ;;  %v6605_v43 = vld [vmem:[#allocation4 + $0x738] ss:$48 sps:$4 sm:$0xff]   ;;  %v6610_v44 = vld [vmem:[#allocation4 + $0x3dc] ss:$48 sps:$4 sm:$0xff]  }
 0x108   :  { %3358 = vmatprep.subr.bf16.mxu1 %v6535_v45  ;;  %v6613_v45 = vld [vmem:[#allocation4 + $0x6dc] ss:$48 sps:$4 sm:$0xff]  }
 0x109   :  { %3262 = vmatmul.mubr.bf16.vlgmr.msra.gmra.mxu0 %v7054_v52 }
 0x10a   :  { %3305 = vmatmul.mubr.bf16.vlgmr.msra.gmra.mxu1 %v7057_v53  ;;  %3316 = vmatpush1.bf16.msra.mxu0 %v6530_v46  ;;  %v6608_v46 = vld [vmem:[#allocation4 + $0x3d8] ss:$48 sps:$4 sm:$0xff]  }
 0x10b   :  { %3359 = vmatpush1.bf16.msra.mxu1 %v6533_v47  ;;  %3317 = vmatprep.subr.bf16.mxu0 %v6538_v49  ;;  %v6611_v47 = vld [vmem:[#allocation4 + $0x6d8] ss:$48 sps:$4 sm:$0xff]   ;;  %v6616_v49 = vld [vmem:[#allocation4 + $0x37c] ss:$48 sps:$4 sm:$0xff]  }
 0x10c   :  { %3360 = vmatprep.subr.bf16.mxu1 %v6541_v51  ;;  %3347 = vmatprep.mubr.bf16.mxu0 %v7360_v14  ;;  %v6619_v51 = vld [vmem:[#allocation4 + $0x67c] ss:$48 sps:$4 sm:$0xff]  }
 0x10d   :  { %3390 = vmatprep.mubr.bf16.mxu1 %v7061_v5 }
 0x10e   :  { %3318 = vmatpush1.bf16.msra.mxu0 %v6536_v54  ;;  %v6614_v54 = vld [vmem:[#allocation4 + $0x378] ss:$48 sps:$4 sm:$0xff]  }
 0x10f   :  { %3361 = vmatpush1.bf16.msra.mxu1 %v6539_v55  ;;  %3319 = vmatprep.subr.bf16.mxu0 %v6544_v56  ;;  %v6617_v55 = vld [vmem:[#allocation4 + $0x678] ss:$48 sps:$4 sm:$0xff]   ;;  %v6622_v56 = vld [vmem:[#allocation4 + $0x31c] ss:$48 sps:$4 sm:$0xff]  }
 0x110   :  { %3362 = vmatprep.subr.bf16.mxu1 %v6547_v57  ;;  %v6625_v57 = vld [vmem:[#allocation4 + $0x61c] ss:$48 sps:$4 sm:$0xff]  }
 0x112   :  { %3320 = vmatpush1.bf16.msra.mxu0 %v6542_v39  ;;  %v6620_v39 = vld [vmem:[#allocation4 + $0x318] ss:$48 sps:$4 sm:$0xff]  }
 0x113   :  { %3363 = vmatpush1.bf16.msra.mxu1 %v6545_v58  ;;  %3321 = vmatprep.subr.bf16.mxu0 %v6550_v59  ;;  %v6623_v58 = vld [vmem:[#allocation4 + $0x618] ss:$48 sps:$4 sm:$0xff]   ;;  %v6628_v59 = vld [vmem:[#allocation4 + $0xbbc] ss:$48 sps:$4 sm:$0xff]  }
 0x114   :  { %3364 = vmatprep.subr.bf16.mxu1 %v6553_v60  ;;  %v6631_v60 = vld [vmem:[#allocation4 + $0xebc] ss:$48 sps:$4 sm:$0xff]  }
 0x116   :  { %3322 = vmatpush1.bf16.msra.mxu0 %v6548_v61  ;;  %v6626_v61 = vld [vmem:[#allocation4 + $0xbb8] ss:$48 sps:$4 sm:$0xff]  }
 0x117   :  { %3365 = vmatpush1.bf16.msra.mxu1 %v6551_v48  ;;  %3323 = vmatprep.subr.bf16.mxu0 %v6556_v50  ;;  %v6629_v48 = vld [vmem:[#allocation4 + $0xeb8] ss:$48 sps:$4 sm:$0xff]   ;;  %v6634_v50 = vld [vmem:[#allocation4 + $0xb5c] ss:$48 sps:$4 sm:$0xff]  }
 0x118   :  { %3366 = vmatprep.subr.bf16.mxu1 %v6559_v62  ;;  %v6637_v62 = vld [vmem:[#allocation4 + $0xe5c] ss:$48 sps:$4 sm:$0xff]  }
 0x11a   :  { %3324 = vmatpush1.bf16.msra.mxu0 %v6554_v63  ;;  %v6632_v63 = vld [vmem:[#allocation4 + $0xb58] ss:$48 sps:$4 sm:$0xff]  }
 0x11b   :  { %3367 = vmatpush1.bf16.msra.mxu1 %v6557_v0  ;;  %3325 = vmatprep.subr.bf16.mxu0 %v6562_v1  ;;  %v6635_v0 = vld [vmem:[#allocation4 + $0xe58] ss:$48 sps:$4 sm:$0xff]   ;;  %v6640_v1 = vld [vmem:[#allocation4 + $0xafc] ss:$48 sps:$4 sm:$0xff]  }
 0x11c   :  { %3368 = vmatprep.subr.bf16.mxu1 %v6565_v2  ;;  %v6643_v2 = vld [vmem:[#allocation4 + $0xdfc] ss:$48 sps:$4 sm:$0xff]  }
 0x11e   :  { %3326 = vmatpush1.bf16.msra.mxu0 %v6560_v3  ;;  %v6638_v3 = vld [vmem:[#allocation4 + $0xaf8] ss:$48 sps:$4 sm:$0xff]  }
 0x11f   :  { %3369 = vmatpush1.bf16.msra.mxu1 %v6563_v6  ;;  %3327 = vmatprep.subr.bf16.mxu0 %v6568_v7  ;;  %v6641_v6 = vld [vmem:[#allocation4 + $0xdf8] ss:$48 sps:$4 sm:$0xff]   ;;  %v6646_v7 = vld [vmem:[#allocation4 + $0xa9c] ss:$48 sps:$4 sm:$0xff]  }
 0x120   :  { %3370 = vmatprep.subr.bf16.mxu1 %v6571_v8  ;;  %v6649_v8 = vld [vmem:[#allocation4 + $0xd9c] ss:$48 sps:$4 sm:$0xff]  }
 0x122   :  { %3328 = vmatpush1.bf16.msra.mxu0 %v6566_v9  ;;  %v6644_v9 = vld [vmem:[#allocation4 + $0xa98] ss:$48 sps:$4 sm:$0xff]  }
 0x123   :  { %3371 = vmatpush1.bf16.msra.mxu1 %v6569_v10  ;;  %3329 = vmatprep.subr.bf16.mxu0 %v6574_v11  ;;  %v6647_v10 = vld [vmem:[#allocation4 + $0xd98] ss:$48 sps:$4 sm:$0xff]   ;;  %v6652_v11 = vld [vmem:[#allocation4 + $0xa3c] ss:$48 sps:$4 sm:$0xff]  }
 0x124   :  { %3372 = vmatprep.subr.bf16.mxu1 %v6577_v12  ;;  %v6655_v12 = vld [vmem:[#allocation4 + $0xd3c] ss:$48 sps:$4 sm:$0xff]  }
 0x126   :  { %3330 = vmatpush1.bf16.msra.mxu0 %v6572_v13  ;;  %v6650_v13 = vld [vmem:[#allocation4 + $0xa38] ss:$48 sps:$4 sm:$0xff]  }
 0x127   :  { %3373 = vmatpush1.bf16.msra.mxu1 %v6575_v15  ;;  %3401 = vmatprep.subr.bf16.mxu0 %v6583_v17  ;;  %v6653_v15 = vld [vmem:[#allocation4 + $0xd38] ss:$48 sps:$4 sm:$0xff]   ;;  %v6661_v17 = vld [vmem:[#allocation4 + $0xcdc] ss:$48 sps:$4 sm:$0xff]  }
 0x128   :  { %3374 = vmatprep.subr.bf16.mxu1 %v6580_v16  ;;  %v6658_v16 = vld [vmem:[#allocation4 + $0x9dc] ss:$48 sps:$4 sm:$0xff]  }
 0x129   :  { %v3005_v22 = vpop.f32.mrf.mxu0  ;;  %3348 = vmatmul.mubr.bf16.vlgmr.msra.gmra.mxu0 %v7064_v24 }
 0x12a   :  { %v3048_v23 = vpop.f32.mrf.mxu1  ;;  %3402 = vmatpush1.bf16.msra.mxu0 %v6581_v19  ;;  %3433 = vmatprep.mubr.bf16.mxu0 %v7071_v32  ;;  %v6659_v19 = vld [vmem:[#allocation4 + $0xcd8] ss:$48 sps:$4 sm:$0xff]  }
 0x12b   :  { %v7067_v4 = vadd.f32 %v3048_v23, %v3005_v22  ;;  %3375 = vmatpush2.bf16.msra.mxu1 %v6578_v18  ;;  %v3007_v28 = vpop.f32.mrf.mxu0  ;;  %3403 = vmatprep.subr.bf16.mxu0 %v6589_v21  ;;  %v6656_v18 = vld [vmem:[#allocation4 + $0x9d8] ss:$48 sps:$4 sm:$0xff]   ;;  %v6667_v21 = vld [vmem:[#allocation4 + $0xc7c] ss:$48 sps:$4 sm:$0xff]  }
 0x12c   :  { %v3050_v29 = vpop.f32.mrf.mxu1  ;;  %3376 = vmatprep.subr.bf16.mxu1 %v6586_v20  ;;  %v6664_v20 = vld [vmem:[#allocation4 + $0x97c] ss:$48 sps:$4 sm:$0xff]   ;;  %v6662_v22 = vld [vmem:[#allocation4 + $0x978] ss:$48 sps:$4 sm:$0xff]  }
 0x12d   :  { %v7069_v31 = vadd.f32 %v3050_v29, %v3007_v28  ;;  %v6665_v23 = vld [vmem:[#allocation4 + $0xc78] ss:$48 sps:$4 sm:$0xff]   ;;  %v6676_v29 = vld [vmem:[#allocation4 + $0x2c4] ss:$48 sps:$4 sm:$0xff]  }
 0x12e   :  { %3404 = vmatpush1.bf16.msra.mxu0 %v6587_v26  ;;  %v6673_v26 = vld [vmem:[#allocation4 + $0xc1c] ss:$48 sps:$4 sm:$0xff]   ;;  %v6671_v28 = vld [vmem:[#allocation4 + $0xc18] ss:$48 sps:$4 sm:$0xff]  }
 0x12f   :  { %3377 = vmatpush2.bf16.msra.mxu1 %v6584_v25  ;;  %3405 = vmatprep.subr.bf16.mxu0 %v6595_v30  ;;  %v6670_v25 = vld [vmem:[#allocation4 + $0x91c] ss:$48 sps:$4 sm:$0xff]   ;;  %v6679_v30 = vld [vmem:[#allocation4 + $0x8c4] ss:$48 sps:$4 sm:$0xff]  }
 0x130   :  { %3378 = vmatprep.subr.bf16.mxu1 %v6592_v27  ;;  %v6668_v27 = vld [vmem:[#allocation4 + $0x918] ss:$48 sps:$4 sm:$0xff]  }
 0x132   :  { %3406 = vmatpush1.bf16.msra.mxu0 %v6593_v34  ;;  %v6677_v34 = vld [vmem:[#allocation4 + $0x8c0] ss:$48 sps:$4 sm:$0xff]  }
 0x133   :  { %3379 = vmatpush2.bf16.msra.mxu1 %v6590_v33  ;;  %3407 = vmatprep.subr.bf16.mxu0 %v6601_v36  ;;  %v6674_v33 = vld [vmem:[#allocation4 + $0x2c0] ss:$48 sps:$4 sm:$0xff]   ;;  %v6685_v36 = vld [vmem:[#allocation4 + $0x864] ss:$48 sps:$4 sm:$0xff]  }
 0x134   :  { %3380 = vmatprep.subr.bf16.mxu1 %v6598_v35  ;;  %v6682_v35 = vld [vmem:[#allocation4 + $0x264] ss:$48 sps:$4 sm:$0xff]  }
 0x136   :  { %3408 = vmatpush1.bf16.msra.mxu0 %v6599_v38  ;;  %v6683_v38 = vld [vmem:[#allocation4 + $0x860] ss:$48 sps:$4 sm:$0xff]  }
 0x137   :  { %3381 = vmatpush2.bf16.msra.mxu1 %v6596_v37  ;;  %3409 = vmatprep.subr.bf16.mxu0 %v6607_v41  ;;  %v6680_v37 = vld [vmem:[#allocation4 + $0x260] ss:$48 sps:$4 sm:$0xff]   ;;  %v6691_v41 = vld [vmem:[#allocation4 + $0x804] ss:$48 sps:$4 sm:$0xff]  }
 0x138   :  { %3382 = vmatprep.subr.bf16.mxu1 %v6604_v40  ;;  %v6688_v40 = vld [vmem:[#allocation4 + $0x204] ss:$48 sps:$4 sm:$0xff]  }
 0x13a   :  { %3410 = vmatpush1.bf16.msra.mxu0 %v6605_v43  ;;  %v6689_v43 = vld [vmem:[#allocation4 + $0x800] ss:$48 sps:$4 sm:$0xff]  }
 0x13b   :  { %3383 = vmatpush2.bf16.msra.mxu1 %v6602_v42  ;;  %3411 = vmatprep.subr.bf16.mxu0 %v6613_v45  ;;  %v6686_v42 = vld [vmem:[#allocation4 + $0x200] ss:$48 sps:$4 sm:$0xff]   ;;  %v6697_v45 = vld [vmem:[#allocation4 + $0x7a4] ss:$48 sps:$4 sm:$0xff]  }
 0x13c   :  { %3384 = vmatprep.subr.bf16.mxu1 %v6610_v44  ;;  %v6694_v44 = vld [vmem:[#allocation4 + $0x1a4] ss:$48 sps:$4 sm:$0xff]  }
 0x13e   :  { %3412 = vmatpush1.bf16.msra.mxu0 %v6611_v47  ;;  %v6695_v47 = vld [vmem:[#allocation4 + $0x7a0] ss:$48 sps:$4 sm:$0xff]  }
 0x13f   :  { %3385 = vmatpush2.bf16.msra.mxu1 %v6608_v46  ;;  %3413 = vmatprep.subr.bf16.mxu0 %v6619_v51  ;;  %v6692_v46 = vld [vmem:[#allocation4 + $0x1a0] ss:$48 sps:$4 sm:$0xff]   ;;  %v6703_v51 = vld [vmem:[#allocation4 + $0x744] ss:$48 sps:$4 sm:$0xff]  }
 0x140   :  { %3386 = vmatprep.subr.bf16.mxu1 %v6616_v49  ;;  %v6700_v49 = vld [vmem:[#allocation4 + $0x144] ss:$48 sps:$4 sm:$0xff]  }
 0x142   :  { %3414 = vmatpush1.bf16.msra.mxu0 %v6617_v55  ;;  %v6701_v55 = vld [vmem:[#allocation4 + $0x740] ss:$48 sps:$4 sm:$0xff]  }
 0x143   :  { %3387 = vmatpush2.bf16.msra.mxu1 %v6614_v54  ;;  %3415 = vmatprep.subr.bf16.mxu0 %v6625_v57  ;;  %v6698_v54 = vld [vmem:[#allocation4 + $0x140] ss:$48 sps:$4 sm:$0xff]   ;;  %v6709_v57 = vld [vmem:[#allocation4 + $0x6e4] ss:$48 sps:$4 sm:$0xff]  }
 0x144   :  { %3388 = vmatprep.subr.bf16.mxu1 %v6622_v56  ;;  %v6706_v56 = vld [vmem:[#allocation4 + $0xe4] ss:$48 sps:$4 sm:$0xff]  }
 0x146   :  { %3416 = vmatpush1.bf16.msra.mxu0 %v6623_v58  ;;  %v6707_v58 = vld [vmem:[#allocation4 + $0x6e0] ss:$48 sps:$4 sm:$0xff]  }
 0x147   :  { %3389 = vmatpush2.bf16.msra.mxu1 %v6620_v39  ;;  %3417 = vmatprep.subr.bf16.mxu0 %v6628_v59  ;;  %v6704_v39 = vld [vmem:[#allocation4 + $0xe0] ss:$48 sps:$4 sm:$0xff]   ;;  %v6712_v59 = vld [vmem:[#allocation4 + $0x84] ss:$48 sps:$4 sm:$0xff]  }
 0x148   :  { %3444 = vmatprep.subr.bf16.mxu1 %v6631_v60  ;;  %v6715_v60 = vld [vmem:[#allocation4 + $0x684] ss:$48 sps:$4 sm:$0xff]  }
 0x14a   :  { %3391 = vmatmul.mubr.bf16.vlgmr.msra.gmra.mxu1 %v7054_v52  ;;  %3418 = vmatpush2.bf16.msra.mxu0 %v6626_v61  ;;  %v6710_v61 = vld [vmem:[#allocation4 + $0x80] ss:$48 sps:$4 sm:$0xff]  }
 0x14b   :  { %3445 = vmatpush1.bf16.msra.mxu1 %v6629_v48  ;;  %3419 = vmatprep.subr.bf16.mxu0 %v6634_v50  ;;  %v6713_v48 = vld [vmem:[#allocation4 + $0x680] ss:$48 sps:$4 sm:$0xff]   ;;  %v6718_v50 = vld [vmem:[#allocation4 + $0x24] ss:$48 sps:$4 sm:$0xff]  }
 0x14c   :  { %3446 = vmatprep.subr.bf16.mxu1 %v6637_v62  ;;  %3476 = vmatprep.mubr.bf16.mxu1 %v7360_v14  ;;  %v6721_v62 = vld [vmem:[#allocation4 + $0x624] ss:$48 sps:$4 sm:$0xff]  }
 0x14e   :  { %3420 = vmatpush2.bf16.msra.mxu0 %v6632_v63  ;;  %v6716_v63 = vld [vmem:[#allocation4 + $0x20] ss:$48 sps:$4 sm:$0xff]  }
 0x14f   :  { %3447 = vmatpush1.bf16.msra.mxu1 %v6635_v0  ;;  %3421 = vmatprep.subr.bf16.mxu0 %v6640_v1  ;;  %v6719_v0 = vld [vmem:[#allocation4 + $0x620] ss:$48 sps:$4 sm:$0xff]   ;;  %v6724_v1 = vld [vmem:[#allocation4 + $0x5c4] ss:$48 sps:$4 sm:$0xff]  }
 0x150   :  { %3448 = vmatprep.subr.bf16.mxu1 %v6643_v2  ;;  %v6727_v2 = vld [vmem:[#allocation4 + $0xbc4] ss:$48 sps:$4 sm:$0xff]  }
 0x152   :  { %3422 = vmatpush2.bf16.msra.mxu0 %v6638_v3  ;;  %v6722_v3 = vld [vmem:[#allocation4 + $0x5c0] ss:$48 sps:$4 sm:$0xff]  }
 0x153   :  { %3449 = vmatpush1.bf16.msra.mxu1 %v6641_v6  ;;  %3423 = vmatprep.subr.bf16.mxu0 %v6646_v7  ;;  %v6725_v6 = vld [vmem:[#allocation4 + $0xbc0] ss:$48 sps:$4 sm:$0xff]   ;;  %v6730_v7 = vld [vmem:[#allocation4 + $0x564] ss:$48 sps:$4 sm:$0xff]  }
 0x154   :  { %3450 = vmatprep.subr.bf16.mxu1 %v6649_v8  ;;  %v6733_v8 = vld [vmem:[#allocation4 + $0xb64] ss:$48 sps:$4 sm:$0xff]  }
 0x156   :  { %3424 = vmatpush2.bf16.msra.mxu0 %v6644_v9  ;;  %v6728_v9 = vld [vmem:[#allocation4 + $0x560] ss:$48 sps:$4 sm:$0xff]  }
 0x157   :  { %3451 = vmatpush1.bf16.msra.mxu1 %v6647_v10  ;;  %3425 = vmatprep.subr.bf16.mxu0 %v6652_v11  ;;  %v6731_v10 = vld [vmem:[#allocation4 + $0xb60] ss:$48 sps:$4 sm:$0xff]   ;;  %v6736_v11 = vld [vmem:[#allocation4 + $0x504] ss:$48 sps:$4 sm:$0xff]  }
 0x158   :  { %3452 = vmatprep.subr.bf16.mxu1 %v6655_v12  ;;  %v6739_v12 = vld [vmem:[#allocation4 + $0xb04] ss:$48 sps:$4 sm:$0xff]  }
 0x15a   :  { %3426 = vmatpush2.bf16.msra.mxu0 %v6650_v13  ;;  %v6734_v13 = vld [vmem:[#allocation4 + $0x500] ss:$48 sps:$4 sm:$0xff]  }
 0x15b   :  { %3453 = vmatpush1.bf16.msra.mxu1 %v6653_v15  ;;  %3427 = vmatprep.subr.bf16.mxu0 %v6658_v16  ;;  %v6737_v15 = vld [vmem:[#allocation4 + $0xb00] ss:$48 sps:$4 sm:$0xff]   ;;  %v6742_v16 = vld [vmem:[#allocation4 + $0x4a4] ss:$48 sps:$4 sm:$0xff]  }
 0x15c   :  { %3454 = vmatprep.subr.bf16.mxu1 %v6661_v17  ;;  %v6745_v17 = vld [vmem:[#allocation4 + $0xaa4] ss:$48 sps:$4 sm:$0xff]  }
 0x15e   :  { %3428 = vmatpush2.bf16.msra.mxu0 %v6656_v18  ;;  %v6740_v18 = vld [vmem:[#allocation4 + $0x4a0] ss:$48 sps:$4 sm:$0xff]  }
 0x15f   :  { %3455 = vmatpush1.bf16.msra.mxu1 %v6659_v19  ;;  %3429 = vmatprep.subr.bf16.mxu0 %v6664_v20  ;;  %v6743_v19 = vld [vmem:[#allocation4 + $0xaa0] ss:$48 sps:$4 sm:$0xff]   ;;  %v6748_v20 = vld [vmem:[#allocation4 + $0x444] ss:$48 sps:$4 sm:$0xff]  }
 0x160   :  { %3456 = vmatprep.subr.bf16.mxu1 %v6667_v21  ;;  %v6751_v21 = vld [vmem:[#allocation4 + $0xa44] ss:$48 sps:$4 sm:$0xff]  }
 0x162   :  { %3430 = vmatpush2.bf16.msra.mxu0 %v6662_v22  ;;  %v6746_v22 = vld [vmem:[#allocation4 + $0x440] ss:$48 sps:$4 sm:$0xff]  }
 0x163   :  { %3457 = vmatpush1.bf16.msra.mxu1 %v6665_v23  ;;  %3431 = vmatprep.subr.bf16.mxu0 %v6670_v25  ;;  %v6749_v23 = vld [vmem:[#allocation4 + $0xa40] ss:$48 sps:$4 sm:$0xff]   ;;  %v6754_v25 = vld [vmem:[#allocation4 + $0x3e4] ss:$48 sps:$4 sm:$0xff]  }
 0x164   :  { %3458 = vmatprep.subr.bf16.mxu1 %v6673_v26  ;;  %v6757_v26 = vld [vmem:[#allocation4 + $0x9e4] ss:$48 sps:$4 sm:$0xff]  }
 0x166   :  { %3432 = vmatpush2.bf16.msra.mxu0 %v6668_v27  ;;  %v6752_v27 = vld [vmem:[#allocation4 + $0x3e0] ss:$48 sps:$4 sm:$0xff]  }
 0x167   :  { %3459 = vmatpush1.bf16.msra.mxu1 %v6671_v28  ;;  %3487 = vmatprep.subr.bf16.mxu0 %v6676_v29  ;;  %v6755_v28 = vld [vmem:[#allocation4 + $0x9e0] ss:$48 sps:$4 sm:$0xff]   ;;  %v6760_v29 = vld [vmem:[#allocation4 + $0x384] ss:$48 sps:$4 sm:$0xff]  }
 0x168   :  { %3530 = vmatprep.subr.bf16.mxu1 %v6679_v30  ;;  %v6763_v30 = vld [vmem:[#allocation4 + $0x984] ss:$48 sps:$4 sm:$0xff]  }
 0x169   :  { %3434 = vmatmul.mubr.bf16.vlgmr.msra.gmra.mxu0 %v7057_v53 }
 0x16a   :  { %3477 = vmatmul.mubr.bf16.vlgmr.msra.gmra.mxu1 %v7064_v24  ;;  %3488 = vmatpush1.bf16.msra.mxu0 %v6674_v33  ;;  %v6758_v33 = vld [vmem:[#allocation4 + $0x380] ss:$48 sps:$4 sm:$0xff]  }
 0x16b   :  { %3531 = vmatpush1.bf16.msra.mxu1 %v6677_v34  ;;  %3489 = vmatprep.subr.bf16.mxu0 %v6682_v35  ;;  %v6761_v34 = vld [vmem:[#allocation4 + $0x980] ss:$48 sps:$4 sm:$0xff]   ;;  %v6766_v35 = vld [vmem:[#allocation4 + $0x324] ss:$48 sps:$4 sm:$0xff]  }
 0x16c   :  { %3532 = vmatprep.subr.bf16.mxu1 %v6685_v36  ;;  %3519 = vmatprep.mubr.bf16.mxu0 %v7061_v5  ;;  %v6769_v36 = vld [vmem:[#allocation4 + $0x924] ss:$48 sps:$4 sm:$0xff]  }
 0x16d   :  { %3562 = vmatprep.mubr.bf16.mxu1 %v7071_v32 }
 0x16e   :  { %3490 = vmatpush1.bf16.msra.mxu0 %v6680_v37  ;;  %v6764_v37 = vld [vmem:[#allocation4 + $0x320] ss:$48 sps:$4 sm:$0xff]  }
 0x16f   :  { %3533 = vmatpush1.bf16.msra.mxu1 %v6683_v38  ;;  %3491 = vmatprep.subr.bf16.mxu0 %v6688_v40  ;;  %v6767_v38 = vld [vmem:[#allocation4 + $0x920] ss:$48 sps:$4 sm:$0xff]   ;;  %v6772_v40 = vld [vmem:[#allocation4 + $0xec4] ss:$48 sps:$4 sm:$0xff]  }
 0x170   :  { %3534 = vmatprep.subr.bf16.mxu1 %v6691_v41  ;;  %v6775_v41 = vld [vmem:[#allocation4 + $0x2cc] ss:$48 sps:$4 sm:$0xff]  }
 0x172   :  { %3492 = vmatpush1.bf16.msra.mxu0 %v6686_v42  ;;  %v6770_v42 = vld [vmem:[#allocation4 + $0xec0] ss:$48 sps:$4 sm:$0xff]  }
 0x173   :  { %3535 = vmatpush1.bf16.msra.mxu1 %v6689_v43  ;;  %3493 = vmatprep.subr.bf16.mxu0 %v6694_v44  ;;  %v6773_v43 = vld [vmem:[#allocation4 + $0x2c8] ss:$48 sps:$4 sm:$0xff]   ;;  %v6778_v44 = vld [vmem:[#allocation4 + $0xe64] ss:$48 sps:$4 sm:$0xff]  }
 0x174   :  { %3536 = vmatprep.subr.bf16.mxu1 %v6697_v45  ;;  %v6781_v45 = vld [vmem:[#allocation4 + $0x26c] ss:$48 sps:$4 sm:$0xff]  }
 0x176   :  { %3494 = vmatpush1.bf16.msra.mxu0 %v6692_v46  ;;  %v6776_v46 = vld [vmem:[#allocation4 + $0xe60] ss:$48 sps:$4 sm:$0xff]  }
 0x177   :  { %3537 = vmatpush1.bf16.msra.mxu1 %v6695_v47  ;;  %3495 = vmatprep.subr.bf16.mxu0 %v6700_v49  ;;  %v6779_v47 = vld [vmem:[#allocation4 + $0x268] ss:$48 sps:$4 sm:$0xff]   ;;  %v6784_v49 = vld [vmem:[#allocation4 + $0xe04] ss:$48 sps:$4 sm:$0xff]  }
 0x178   :  { %3538 = vmatprep.subr.bf16.mxu1 %v6703_v51  ;;  %v6787_v51 = vld [vmem:[#allocation4 + $0x20c] ss:$48 sps:$4 sm:$0xff]  }
 0x17a   :  { %3496 = vmatpush1.bf16.msra.mxu0 %v6698_v54  ;;  %v6782_v54 = vld [vmem:[#allocation4 + $0xe00] ss:$48 sps:$4 sm:$0xff]  }
 0x17b   :  { %3539 = vmatpush1.bf16.msra.mxu1 %v6701_v55  ;;  %3497 = vmatprep.subr.bf16.mxu0 %v6706_v56  ;;  %v6785_v55 = vld [vmem:[#allocation4 + $0x208] ss:$48 sps:$4 sm:$0xff]   ;;  %v6788_v56 = vld [vmem:[#allocation4 + $0xda0] ss:$48 sps:$4 sm:$0xff]  }
 0x17c   :  { %3540 = vmatprep.subr.bf16.mxu1 %v6709_v57  ;;  %v6791_v57 = vld [vmem:[#allocation4 + $0x1a8] ss:$48 sps:$4 sm:$0xff]  }
 0x17e   :  { %3498 = vmatpush1.bf16.msra.mxu0 %v6704_v39  ;;  %v6796_v39 = vld [vmem:[#allocation4 + $0xd44] ss:$48 sps:$4 sm:$0xff]  }
 0x17f   :  { %3541 = vmatpush1.bf16.msra.mxu1 %v6707_v58  ;;  %3499 = vmatprep.subr.bf16.mxu0 %v6712_v59  ;;  %v6799_v58 = vld [vmem:[#allocation4 + $0x14c] ss:$48 sps:$4 sm:$0xff]   ;;  %v6794_v59 = vld [vmem:[#allocation4 + $0xd40] ss:$48 sps:$4 sm:$0xff]  }
 0x180   :  { %3542 = vmatprep.subr.bf16.mxu1 %v6715_v60  ;;  %v6802_v60 = vld [vmem:[#allocation4 + $0xce4] ss:$48 sps:$4 sm:$0xff]  }
 0x182   :  { %3500 = vmatpush1.bf16.msra.mxu0 %v6710_v61  ;;  %v6805_v61 = vld [vmem:[#allocation4 + $0xec] ss:$48 sps:$4 sm:$0xff]  }
 0x183   :  { %3543 = vmatpush1.bf16.msra.mxu1 %v6713_v48  ;;  %3501 = vmatprep.subr.bf16.mxu0 %v6718_v50  ;;  %v6800_v48 = vld [vmem:[#allocation4 + $0xce0] ss:$48 sps:$4 sm:$0xff]   ;;  %v6803_v50 = vld [vmem:[#allocation4 + $0xe8] ss:$48 sps:$4 sm:$0xff]  }
 0x184   :  { %3544 = vmatprep.subr.bf16.mxu1 %v6721_v62  ;;  %v6808_v62 = vld [vmem:[#allocation4 + $0xc84] ss:$48 sps:$4 sm:$0xff]  }
 0x186   :  { %3502 = vmatpush1.bf16.msra.mxu0 %v6716_v63  ;;  %v6811_v63 = vld [vmem:[#allocation4 + $0x8c] ss:$48 sps:$4 sm:$0xff]  }
 0x187   :  { %3545 = vmatpush1.bf16.msra.mxu1 %v6719_v0  ;;  %3503 = vmatprep.subr.bf16.mxu0 %v6724_v1  ;;  %v6806_v0 = vld [vmem:[#allocation4 + $0xc80] ss:$48 sps:$4 sm:$0xff]   ;;  %v6809_v1 = vld [vmem:[#allocation4 + $0x88] ss:$48 sps:$4 sm:$0xff]  }
 0x188   :  { %3546 = vmatprep.subr.bf16.mxu1 %v6727_v2  ;;  %v6814_v2 = vld [vmem:[#allocation4 + $0xc24] ss:$48 sps:$4 sm:$0xff]  }
 0x18a   :  { %3504 = vmatpush2.bf16.msra.mxu0 %v6722_v3  ;;  %v6817_v3 = vld [vmem:[#allocation4 + $0x2c] ss:$48 sps:$4 sm:$0xff]  }
 0x18b   :  { %3547 = vmatpush2.bf16.msra.mxu1 %v6725_v6  ;;  %3505 = vmatprep.subr.bf16.mxu0 %v6730_v7  ;;  %v6812_v6 = vld [vmem:[#allocation4 + $0xc20] ss:$48 sps:$4 sm:$0xff]   ;;  %v6815_v7 = vld [vmem:[#allocation4 + $0x28] ss:$48 sps:$4 sm:$0xff]  }
 0x18c   :  { %3548 = vmatprep.subr.bf16.mxu1 %v6733_v8  ;;  %v6820_v8 = vld [vmem:[#allocation4 + $0x5cc] ss:$48 sps:$4 sm:$0xff]  }
 0x18e   :  { %3506 = vmatpush2.bf16.msra.mxu0 %v6728_v9  ;;  %v6823_v9 = vld [vmem:[#allocation4 + $0x8cc] ss:$48 sps:$4 sm:$0xff]  }
 0x18f   :  { %3549 = vmatpush2.bf16.msra.mxu1 %v6731_v10  ;;  %3507 = vmatprep.subr.bf16.mxu0 %v6736_v11  ;;  %v6818_v10 = vld [vmem:[#allocation4 + $0x5c8] ss:$48 sps:$4 sm:$0xff]  }
 0x190   :  { %3550 = vmatprep.subr.bf16.mxu1 %v6739_v12  ;;  %v6821_v11 = vld [vmem:[#allocation4 + $0x8c8] ss:$48 sps:$4 sm:$0xff]   ;;  %v6826_v12 = vld [vmem:[#allocation4 + $0x56c] ss:$48 sps:$4 sm:$0xff]  }
 0x192   :  { %3508 = vmatpush2.bf16.msra.mxu0 %v6734_v13  ;;  %v6829_v13 = vld [vmem:[#allocation4 + $0x86c] ss:$48 sps:$4 sm:$0xff]  }
 0x193   :  { %3551 = vmatpush2.bf16.msra.mxu1 %v6737_v15  ;;  %3509 = vmatprep.subr.bf16.mxu0 %v6742_v16  ;;  %v6824_v15 = vld [vmem:[#allocation4 + $0x568] ss:$48 sps:$4 sm:$0xff]  }
 0x194   :  { %3552 = vmatprep.subr.bf16.mxu1 %v6745_v17  ;;  %v6827_v16 = vld [vmem:[#allocation4 + $0x868] ss:$48 sps:$4 sm:$0xff]   ;;  %v6832_v17 = vld [vmem:[#allocation4 + $0x50c] ss:$48 sps:$4 sm:$0xff]  }
 0x196   :  { %3510 = vmatpush2.bf16.msra.mxu0 %v6740_v18  ;;  %v6835_v18 = vld [vmem:[#allocation4 + $0x80c] ss:$48 sps:$4 sm:$0xff]  }
 0x197   :  { %3553 = vmatpush2.bf16.msra.mxu1 %v6743_v19  ;;  %3511 = vmatprep.subr.bf16.mxu0 %v6748_v20  ;;  %v6830_v19 = vld [vmem:[#allocation4 + $0x508] ss:$48 sps:$4 sm:$0xff]  }
 0x198   :  { %3554 = vmatprep.subr.bf16.mxu1 %v6751_v21  ;;  %v6833_v20 = vld [vmem:[#allocation4 + $0x808] ss:$48 sps:$4 sm:$0xff]   ;;  %v6838_v21 = vld [vmem:[#allocation4 + $0x4ac] ss:$48 sps:$4 sm:$0xff]  }
 0x19a   :  { %3512 = vmatpush2.bf16.msra.mxu0 %v6746_v22  ;;  %v6841_v22 = vld [vmem:[#allocation4 + $0x7ac] ss:$48 sps:$4 sm:$0xff]  }
 0x19b   :  { %3555 = vmatpush2.bf16.msra.mxu1 %v6749_v23  ;;  %3513 = vmatprep.subr.bf16.mxu0 %v6754_v25  ;;  %v6839_v23 = vld [vmem:[#allocation4 + $0x7a8] ss:$48 sps:$4 sm:$0xff]   ;;  %v6844_v25 = vld [vmem:[#allocation4 + $0x44c] ss:$48 sps:$4 sm:$0xff]  }
 0x19c   :  { %3556 = vmatprep.subr.bf16.mxu1 %v6757_v26  ;;  %v6847_v26 = vld [vmem:[#allocation4 + $0x74c] ss:$48 sps:$4 sm:$0xff]  }
 0x19e   :  { %3514 = vmatpush2.bf16.msra.mxu0 %v6752_v27  ;;  %v6842_v27 = vld [vmem:[#allocation4 + $0x448] ss:$48 sps:$4 sm:$0xff]  }
 0x19f   :  { %3557 = vmatpush2.bf16.msra.mxu1 %v6755_v28  ;;  %3515 = vmatprep.subr.bf16.mxu0 %v6760_v29  ;;  %v6850_v28 = vld [vmem:[#allocation4 + $0x3ec] ss:$48 sps:$4 sm:$0xff]  }
 0x1a0   :  { %3558 = vmatprep.subr.bf16.mxu1 %v6763_v30  ;;  %v6853_v29 = vld [vmem:[#allocation4 + $0x6ec] ss:$48 sps:$4 sm:$0xff]   ;;  %v6848_v30 = vld [vmem:[#allocation4 + $0x3e8] ss:$48 sps:$4 sm:$0xff]  }
 0x1a2   :  { %3516 = vmatpush2.bf16.msra.mxu0 %v6758_v33  ;;  %v6851_v33 = vld [vmem:[#allocation4 + $0x6e8] ss:$48 sps:$4 sm:$0xff]  }
 0x1a3   :  { %3559 = vmatpush2.bf16.msra.mxu1 %v6761_v34  ;;  %3517 = vmatprep.subr.bf16.mxu0 %v6766_v35  ;;  %v6856_v34 = vld [vmem:[#allocation4 + $0x38c] ss:$48 sps:$4 sm:$0xff]  }
 0x1a4   :  { %3560 = vmatprep.subr.bf16.mxu1 %v6769_v36  ;;  %v6859_v35 = vld [vmem:[#allocation4 + $0x68c] ss:$48 sps:$4 sm:$0xff]   ;;  %v6854_v36 = vld [vmem:[#allocation4 + $0x388] ss:$48 sps:$4 sm:$0xff]  }
 0x1a6   :  { %3518 = vmatpush2.bf16.msra.mxu0 %v6764_v37  ;;  %v6857_v37 = vld [vmem:[#allocation4 + $0x688] ss:$48 sps:$4 sm:$0xff]  }
 0x1a7   :  { %3561 = vmatpush2.bf16.msra.mxu1 %v6767_v38  ;;  %3573 = vmatprep.subr.bf16.mxu0 %v6772_v40  ;;  %v6862_v38 = vld [vmem:[#allocation4 + $0x32c] ss:$48 sps:$4 sm:$0xff]  }
 0x1a8   :  { %3616 = vmatprep.subr.bf16.mxu1 %v6775_v41  ;;  %v6865_v40 = vld [vmem:[#allocation4 + $0x62c] ss:$48 sps:$4 sm:$0xff]   ;;  %v6860_v41 = vld [vmem:[#allocation4 + $0x328] ss:$48 sps:$4 sm:$0xff]  }
 0x1a9   :  { %3520 = vmatmul.mubr.bf16.vlgmr.msra.gmra.mxu0 %v7054_v52  ;;  %v6790_v52 = vld [vmem:[#allocation4 + $0xda4] ss:$48 sps:$4 sm:$0xff]  }
 0x1aa   :  { %3563 = vmatmul.mubr.bf16.vlgmr.msra.gmra.mxu1 %v7057_v53  ;;  %3574 = vmatpush1.bf16.msra.mxu0 %v6770_v42  ;;  %v6793_v53 = vld [vmem:[#allocation4 + $0x1ac] ss:$48 sps:$4 sm:$0xff]   ;;  %v6863_v42 = vld [vmem:[#allocation4 + $0x628] ss:$48 sps:$4 sm:$0xff]  }
 0x1ab   :  { %3617 = vmatpush1.bf16.msra.mxu1 %v6773_v43  ;;  %3575 = vmatprep.subr.bf16.mxu0 %v6778_v44  ;;  %v6868_v43 = vld [vmem:[#allocation4 + $0xbcc] ss:$48 sps:$4 sm:$0xff]  }
 0x1ac   :  { %3618 = vmatprep.subr.bf16.mxu1 %v6781_v45  ;;  %3605 = vmatprep.mubr.bf16.mxu0 %v7360_v14  ;;  %v6871_v44 = vld [vmem:[#allocation4 + $0xecc] ss:$48 sps:$4 sm:$0xff]   ;;  %v6866_v45 = vld [vmem:[#allocation4 + $0xbc8] ss:$48 sps:$4 sm:$0xff]  }
 0x1ad   :  { %3648 = vmatprep.mubr.bf16.mxu1 %v7061_v5  ;;  %v6797_v5 = vld [vmem:[#allocation4 + $0x148] ss:$48 sps:$4 sm:$0xff]  }
 0x1ae   :  { %3576 = vmatpush1.bf16.msra.mxu0 %v6776_v46  ;;  %v6869_v46 = vld [vmem:[#allocation4 + $0xec8] ss:$48 sps:$4 sm:$0xff]  }
 0x1af   :  { %3619 = vmatpush1.bf16.msra.mxu1 %v6779_v47  ;;  %3577 = vmatprep.subr.bf16.mxu0 %v6784_v49  ;;  %v6874_v47 = vld [vmem:[#allocation4 + $0xb6c] ss:$48 sps:$4 sm:$0xff]  }
 0x1b0   :  { %3620 = vmatprep.subr.bf16.mxu1 %v6787_v51  ;;  %v6877_v49 = vld [vmem:[#allocation4 + $0xe6c] ss:$48 sps:$4 sm:$0xff]  }
 0x1b1   :  { %v6919_v51 = vld [vmem:[#allocation2] ss:$20 sps:$4 sm:$0xff]  }
 0x1b2   :  { %3578 = vmatpush1.bf16.msra.mxu0 %v6782_v54  ;;  %v6872_v54 = vld [vmem:[#allocation4 + $0xb68] ss:$48 sps:$4 sm:$0xff]  }
 0x1b3   :  { %3621 = vmatpush1.bf16.msra.mxu1 %v6785_v55  ;;  %3579 = vmatprep.subr.bf16.mxu0 %v6790_v52  ;;  %v6875_v55 = vld [vmem:[#allocation4 + $0xe68] ss:$48 sps:$4 sm:$0xff]   ;;  %v6880_v52 = vld [vmem:[#allocation4 + $0xb0c] ss:$48 sps:$4 sm:$0xff]  }
 0x1b4   :  { %3622 = vmatprep.subr.bf16.mxu1 %v6793_v53  ;;  %v6883_v53 = vld [vmem:[#allocation4 + $0xe0c] ss:$48 sps:$4 sm:$0xff]  }
 0x1b6   :  { %3580 = vmatpush1.bf16.msra.mxu0 %v6788_v56  ;;  %v6878_v56 = vld [vmem:[#allocation4 + $0xb08] ss:$48 sps:$4 sm:$0xff]  }
 0x1b7   :  { %3623 = vmatpush1.bf16.msra.mxu1 %v6791_v57  ;;  %3581 = vmatprep.subr.bf16.mxu0 %v6796_v39  ;;  %v6881_v57 = vld [vmem:[#allocation4 + $0xe08] ss:$48 sps:$4 sm:$0xff]   ;;  %v6886_v39 = vld [vmem:[#allocation4 + $0xaac] ss:$48 sps:$4 sm:$0xff]  }
 0x1b8   :  { %3624 = vmatprep.subr.bf16.mxu1 %v6799_v58  ;;  %v6889_v58 = vld [vmem:[#allocation4 + $0xdac] ss:$48 sps:$4 sm:$0xff]  }
 0x1ba   :  { %3582 = vmatpush1.bf16.msra.mxu0 %v6794_v59  ;;  %v6884_v59 = vld [vmem:[#allocation4 + $0xaa8] ss:$48 sps:$4 sm:$0xff]  }
 0x1bb   :  { %3625 = vmatpush1.bf16.msra.mxu1 %v6797_v5  ;;  %3583 = vmatprep.subr.bf16.mxu0 %v6802_v60  ;;  %v6887_v5 = vld [vmem:[#allocation4 + $0xda8] ss:$48 sps:$4 sm:$0xff]   ;;  %v6892_v60 = vld [vmem:[#allocation4 + $0xa4c] ss:$48 sps:$4 sm:$0xff]  }
 0x1bc   :  { %3626 = vmatprep.subr.bf16.mxu1 %v6805_v61  ;;  %v6895_v61 = vld [vmem:[#allocation4 + $0xd4c] ss:$48 sps:$4 sm:$0xff]  }
 0x1be   :  { %3584 = vmatpush1.bf16.msra.mxu0 %v6800_v48  ;;  %v6890_v48 = vld [vmem:[#allocation4 + $0xa48] ss:$48 sps:$4 sm:$0xff]  }
 0x1bf   :  { %3627 = vmatpush1.bf16.msra.mxu1 %v6803_v50  ;;  %3585 = vmatprep.subr.bf16.mxu0 %v6808_v62  ;;  %v6893_v50 = vld [vmem:[#allocation4 + $0xd48] ss:$48 sps:$4 sm:$0xff]   ;;  %v6898_v62 = vld [vmem:[#allocation4 + $0x9ec] ss:$48 sps:$4 sm:$0xff]  }
 0x1c0   :  { %3628 = vmatprep.subr.bf16.mxu1 %v6811_v63  ;;  %v6901_v63 = vld [vmem:[#allocation4 + $0xcec] ss:$48 sps:$4 sm:$0xff]  }
 0x1c2   :  { %3586 = vmatpush1.bf16.msra.mxu0 %v6806_v0  ;;  %v6896_v0 = vld [vmem:[#allocation4 + $0x9e8] ss:$48 sps:$4 sm:$0xff]  }
 0x1c3   :  { %3629 = vmatpush1.bf16.msra.mxu1 %v6809_v1  ;;  %3587 = vmatprep.subr.bf16.mxu0 %v6814_v2  ;;  %v6899_v1 = vld [vmem:[#allocation4 + $0xce8] ss:$48 sps:$4 sm:$0xff]   ;;  %v6904_v2 = vld [vmem:[#allocation4 + $0x98c] ss:$48 sps:$4 sm:$0xff]  }
 0x1c4   :  { %3630 = vmatprep.subr.bf16.mxu1 %v6817_v3  ;;  %v6907_v3 = vld [vmem:[#allocation4 + $0xc8c] ss:$48 sps:$4 sm:$0xff]  }
 0x1c6   :  { %3588 = vmatpush1.bf16.msra.mxu0 %v6812_v6  ;;  %v6902_v6 = vld [vmem:[#allocation4 + $0x988] ss:$48 sps:$4 sm:$0xff]  }
 0x1c7   :  { %3631 = vmatpush1.bf16.msra.mxu1 %v6815_v7  ;;  %3659 = vmatprep.subr.bf16.mxu0 %v6823_v9  ;;  %v6905_v7 = vld [vmem:[#allocation4 + $0xc88] ss:$48 sps:$4 sm:$0xff]   ;;  %v6913_v9 = vld [vmem:[#allocation4 + $0xc2c] ss:$48 sps:$4 sm:$0xff]  }
 0x1c8   :  { %3632 = vmatprep.subr.bf16.mxu1 %v6820_v8  ;;  %v6910_v8 = vld [vmem:[#allocation4 + $0x92c] ss:$48 sps:$4 sm:$0xff]  }
 0x1c9   :  { %3606 = vmatmul.mubr.bf16.vlgmr.msra.gmra.mxu0 %v7064_v24  ;;  %v6836_v24 = vld [vmem:[#allocation4 + $0x4a8] ss:$48 sps:$4 sm:$0xff]  }
 0x1ca   :  { %3660 = vmatpush1.bf16.msra.mxu0 %v6821_v11  ;;  %3691 = vmatprep.mubr.bf16.mxu0 %v7071_v32  ;;  %v6845_v32 = vld [vmem:[#allocation4 + $0x748] ss:$48 sps:$4 sm:$0xff]  }
 0x1cb   :  { %3633 = vmatpush2.bf16.msra.mxu1 %v6818_v10  ;;  %3661 = vmatprep.subr.bf16.mxu0 %v6829_v13  ;;  %v6908_v10 = vld [vmem:[#allocation4 + $0x928] ss:$48 sps:$4 sm:$0xff]  }
 0x1cc   :  { %3634 = vmatprep.subr.bf16.mxu1 %v6826_v12  ;;  %v6911_v11 = vld [vmem:[#allocation4 + $0xc28] ss:$48 sps:$4 sm:$0xff]   ;;  %v6920_v12 = vld [vmem:[#allocation2 + $0x8] ss:$20 sps:$4 sm:$0xff]  }
 0x1cd   :  { %v6921_v13 = vld [vmem:[#allocation2 + $0x10] ss:$20 sps:$4 sm:$0xff]  }
 0x1ce   :  { %3662 = vmatpush1.bf16.msra.mxu0 %v6827_v16  ;;  %v3850_v16 = vld [vmem:[#allocation6 + $0x1e0] sm:$0xff] }
 0x1cf   :  { %3635 = vmatpush2.bf16.msra.mxu1 %v6824_v15  ;;  %3663 = vmatprep.subr.bf16.mxu0 %v6835_v18  ;;  %v3846_v15 = vld [vmem:[#allocation6 + $0x1c0] sm:$0xff] }
 0x1d0   :  { %3636 = vmatprep.subr.bf16.mxu1 %v6832_v17  ;;  %v5971_v17 = vcombine.low %v3846_v15, %v3850_v16  ;;  %v5972_v18 = vcombine.high %v3846_v15, %v3850_v16 }
 0x1d2   :  { %3664 = vmatpush1.bf16.msra.mxu0 %v6833_v20  ;;  %v3842_v20 = vld [vmem:[#allocation6 + $0x1a0] sm:$0xff] }
 0x1d3   :  { %3637 = vmatpush2.bf16.msra.mxu1 %v6830_v19  ;;  %3665 = vmatprep.subr.bf16.mxu0 %v6841_v22  ;;  %v3838_v19 = vld [vmem:[#allocation6 + $0x180] sm:$0xff] }
 0x1d4   :  { %3638 = vmatprep.subr.bf16.mxu1 %v6838_v21  ;;  %v5964_v21 = vcombine.high %v3838_v19, %v3842_v20  ;;  %v3830_v22 = vld [vmem:[#allocation6 + $0x140] sm:$0xff] }
 0x1d6   :  { %3666 = vmatpush1.bf16.msra.mxu0 %v6839_v23  ;;  %v5963_v23 = vcombine.low %v3838_v19, %v3842_v20 }
 0x1d7   :  { %3639 = vmatpush2.bf16.msra.mxu1 %v6836_v24  ;;  %3667 = vmatprep.subr.bf16.mxu0 %v6847_v26  ;;  %v3834_v24 = vld [vmem:[#allocation6 + $0x160] sm:$0xff] }
 0x1d8   :  { %3640 = vmatprep.subr.bf16.mxu1 %v6844_v25  ;;  %v5956_v25 = vcombine.high %v3830_v22, %v3834_v24  ;;  %v3822_v26 = vld [vmem:[#allocation6 + $0x100] sm:$0xff] }
 0x1da   :  { %3668 = vmatpush1.bf16.msra.mxu0 %v6845_v32  ;;  %v5955_v32 = vcombine.low %v3830_v22, %v3834_v24  ;;  %v3890_v22 = vld [vmem:[#allocation6 + $0x320] sm:$0xff] }
 0x1db   :  { %3641 = vmatpush2.bf16.msra.mxu1 %v6842_v27  ;;  %3669 = vmatprep.subr.bf16.mxu0 %v6853_v29  ;;  %v3826_v27 = vld [vmem:[#allocation6 + $0x120] sm:$0xff] }
 0x1dc   :  { %3642 = vmatprep.subr.bf16.mxu1 %v6850_v28  ;;  %v5948_v28 = vcombine.high %v3822_v26, %v3826_v27  ;;  %v5947_v29 = vcombine.low %v3822_v26, %v3826_v27 }
 0x1de   :  { %3670 = vmatpush1.bf16.msra.mxu0 %v6851_v33  ;;  %v3818_v33 = vld [vmem:[#allocation6 + $0xe0] sm:$0xff] }
 0x1df   :  { %3643 = vmatpush2.bf16.msra.mxu1 %v6848_v30  ;;  %3671 = vmatprep.subr.bf16.mxu0 %v6859_v35  ;;  %v3814_v30 = vld [vmem:[#allocation6 + $0xc0] sm:$0xff] }
 0x1e0   :  { %3644 = vmatprep.subr.bf16.mxu1 %v6856_v34  ;;  %v5940_v34 = vcombine.high %v3814_v30, %v3818_v33  ;;  %v5939_v35 = vcombine.low %v3814_v30, %v3818_v33 }
 0x1e2   :  { %3672 = vmatpush1.bf16.msra.mxu0 %v6857_v37  ;;  %v3810_v37 = vld [vmem:[#allocation6 + $0xa0] sm:$0xff] }
 0x1e3   :  { %3645 = vmatpush2.bf16.msra.mxu1 %v6854_v36  ;;  %3673 = vmatprep.subr.bf16.mxu0 %v6865_v40  ;;  %v3806_v36 = vld [vmem:[#allocation6 + $0x80] sm:$0xff] }
 0x1e4   :  { %3646 = vmatprep.subr.bf16.mxu1 %v6862_v38  ;;  %v5932_v38 = vcombine.high %v3806_v36, %v3810_v37  ;;  %v5931_v40 = vcombine.low %v3806_v36, %v3810_v37  ;;  %v3942_v37 = vld [vmem:[#allocation6 + $0x4c0] sm:$0xff] }
 0x1e6   :  { %3674 = vmatpush1.bf16.msra.mxu0 %v6863_v42  ;;  %v3798_v42 = vld [vmem:[#allocation6 + $0x40] sm:$0xff] }
 0x1e7   :  { %3647 = vmatpush2.bf16.msra.mxu1 %v6860_v41  ;;  %3675 = vmatprep.subr.bf16.mxu0 %v6868_v43  ;;  %v7088_v41 = vpop.f32.mrf.mxu0  ;;  %v3802_v43 = vld [vmem:[#allocation6 + $0x60] sm:$0xff] }
 0x1e8   :  { %3702 = vmatprep.subr.bf16.mxu1 %v6871_v44  ;;  %v3790_v44 = vld [vmem:[#allocation6] sm:$0xff] }
 0x1ea   :  { %3649 = vmatmul.mubr.bf16.vlgmr.msra.gmra.mxu1 %v6919_v51  ;;  %3676 = vmatpush2.bf16.msra.mxu0 %v6866_v45  ;;  %v5923_v45 = vcombine.low %v3798_v42, %v3802_v43  ;;  %v3910_v51 = vld [vmem:[#allocation6 + $0x3c0] sm:$0xff] }
 0x1eb   :  { %3703 = vmatpush1.bf16.msra.mxu1 %v6869_v46  ;;  %3677 = vmatprep.subr.bf16.mxu0 %v6874_v47  ;;  %v3794_v46 = vld [vmem:[#allocation6 + $0x20] sm:$0xff]  ;;  %v5924_v47 = vcombine.high %v3798_v42, %v3802_v43 }
 0x1ec   :  { %3704 = vmatprep.subr.bf16.mxu1 %v6877_v49  ;;  %3734 = vmatprep.mubr.bf16.mxu1 %v7360_v14  ;;  %v5916_v49 = vcombine.high %v3790_v44, %v3794_v46 }
 0x1ee   :  { %3678 = vmatpush2.bf16.msra.mxu0 %v6872_v54  ;;  %v3974_v54 = vld [vmem:[#allocation6 + $0x5c0] sm:$0xff] }
 0x1ef   :  { %3705 = vmatpush1.bf16.msra.mxu1 %v6875_v55  ;;  %3679 = vmatprep.subr.bf16.mxu0 %v6880_v52  ;;  %v3978_v55 = vld [vmem:[#allocation6 + $0x5e0] sm:$0xff] }
 0x1f0   :  { %3706 = vmatprep.subr.bf16.mxu1 %v6883_v53  ;;  %v3914_v52 = vld [vmem:[#allocation6 + $0x3e0] sm:$0xff]  ;;  %v6099_v53 = vcombine.low %v3974_v54, %v3978_v55 }
 0x1f2   :  { %3680 = vmatpush2.bf16.msra.mxu0 %v6878_v56  ;;  %v3966_v56 = vld [vmem:[#allocation6 + $0x580] sm:$0xff] }
 0x1f3   :  { %3707 = vmatpush1.bf16.msra.mxu1 %v6881_v57  ;;  %3681 = vmatprep.subr.bf16.mxu0 %v6886_v39  ;;  %v3970_v57 = vld [vmem:[#allocation6 + $0x5a0] sm:$0xff]  ;;  %v7090_v39 = vpop.f32.mrf.mxu1 }
 0x1f4   :  { %3708 = vmatprep.subr.bf16.mxu1 %v6889_v58  ;;  %v7092_v58 = vpop.f32.mrf.mxu0 }
 0x1f6   :  { %3682 = vmatpush2.bf16.msra.mxu0 %v6884_v59  ;;  %v6100_v59 = vcombine.high %v3974_v54, %v3978_v55  ;;  %v3938_v54 = vld [vmem:[#allocation6 + $0x4a0] sm:$0xff] }
 0x1f7   :  { %3709 = vmatpush1.bf16.msra.mxu1 %v6887_v5  ;;  %3683 = vmatprep.subr.bf16.mxu0 %v6892_v60  ;;  %v5915_v5 = vcombine.low %v3790_v44, %v3794_v46  ;;  %v6092_v60 = vcombine.high %v3966_v56, %v3970_v57  ;;  %v3870_v46 = vld [vmem:[#allocation6 + $0x280] sm:$0xff] }
 0x1f8   :  { %3710 = vmatprep.subr.bf16.mxu1 %v6895_v61  ;;  %v3958_v61 = vld [vmem:[#allocation6 + $0x540] sm:$0xff] }
 0x1fa   :  { %3684 = vmatpush2.bf16.msra.mxu0 %v6890_v48  ;;  %v3962_v48 = vld [vmem:[#allocation6 + $0x560] sm:$0xff] }
 0x1fb   :  { %3711 = vmatpush1.bf16.msra.mxu1 %v6893_v50  ;;  %3685 = vmatprep.subr.bf16.mxu0 %v6898_v62  ;;  %v7094_v50 = vpop.f32.mrf.mxu0  ;;  %v6036_v62 = vcombine.high %v3910_v51, %v3914_v52  ;;  %v6083_v15 = vcombine.low %v3958_v61, %v3962_v48 }
 0x1fc   :  { %3712 = vmatprep.subr.bf16.mxu1 %v6901_v63  ;;  %v3902_v63 = vld [vmem:[#allocation6 + $0x380] sm:$0xff] }
 0x1fe   :  { %3686 = vmatpush2.bf16.msra.mxu0 %v6896_v0  ;;  %v3906_v0 = vld [vmem:[#allocation6 + $0x3a0] sm:$0xff] }
 0x1ff   :  { %3713 = vmatpush1.bf16.msra.mxu1 %v6899_v1  ;;  %3687 = vmatprep.subr.bf16.mxu0 %v6904_v2  ;;  %v6091_v1 = vcombine.low %v3966_v56, %v3970_v57  ;;  %v7096_v2 = vpop.f32.mrf.mxu1 }
 0x200   :  { %3714 = vmatprep.subr.bf16.mxu1 %v6907_v3  ;;  %v6084_v3 = vcombine.high %v3958_v61, %v3962_v48  ;;  %v3926_v61 = vld [vmem:[#allocation6 + $0x440] sm:$0xff] }
 0x201   :  { %v3930_v48 = vld [vmem:[#allocation6 + $0x460] sm:$0xff] }
 0x202   :  { %3688 = vmatpush2.bf16.msra.mxu0 %v6902_v6  ;;  %v6035_v6 = vcombine.low %v3910_v51, %v3914_v52  ;;  %v3934_v51 = vld [vmem:[#allocation6 + $0x480] sm:$0xff] }
 0x203   :  { %3715 = vmatpush1.bf16.msra.mxu1 %v6905_v7  ;;  %3689 = vmatprep.subr.bf16.mxu0 %v6910_v8  ;;  %v3950_v7 = vld [vmem:[#allocation6 + $0x500] sm:$0xff]  ;;  %v6060_v52 = vcombine.high %v3934_v51, %v3938_v54 }
 0x204   :  { %3716 = vmatprep.subr.bf16.mxu1 %v6913_v9  ;;  %v3954_v8 = vld [vmem:[#allocation6 + $0x520] sm:$0xff]  ;;  %v7098_v9 = vpop.f32.mrf.mxu0 }
 0x205   :  { %v6076_v16 = vcombine.high %v3950_v7, %v3954_v8  ;;  %v6075_v24 = vcombine.low %v3950_v7, %v3954_v8  ;;  %v3858_v7 = vld [vmem:[#allocation6 + $0x220] sm:$0xff] }
 0x206   :  { %3690 = vmatpush2.bf16.msra.mxu0 %v6908_v10  ;;  %v7100_v10 = vpop.f32.mrf.mxu1 }
 0x207   :  { %3717 = vmatpush1.bf16.msra.mxu1 %v6911_v11  ;;  %4942 = vmatprep.subr.bf16.mxu0 %v5972_v18  ;;  %v6028_v11 = vcombine.high %v3902_v63, %v3906_v0  ;;  %v7102_v18 = vpop.f32.mrf.mxu0 }
 0x208   :  { %4985 = vmatprep.subr.bf16.mxu1 %v6100_v59  ;;  %v7104_v19 = vpop.f32.mrf.mxu1  ;;  %v3862_v59 = vld [vmem:[#allocation6 + $0x240] sm:$0xff] }
 0x209   :  { %3692 = vmatmul.mubr.bf16.vlgmr.msra.gmra.mxu0 %v6920_v12  ;;  %v3894_v12 = vld [vmem:[#allocation6 + $0x340] sm:$0xff] }
 0x20a   :  { %3735 = vmatmul.mubr.bf16.vlgmr.msra.gmra.mxu1 %v6921_v13  ;;  %4943 = vmatpush1.bf16.msra.mxu0 %v5971_v17  ;;  %v3898_v13 = vld [vmem:[#allocation6 + $0x360] sm:$0xff]  ;;  %v6027_v17 = vcombine.low %v3902_v63, %v3906_v0  ;;  %v7108_v26 = vpop.f32.mrf.mxu1  ;;  %v6052_v0 = vcombine.high %v3926_v61, %v3930_v48 }
 0x20b   :  { %5017 = vmatprep.mubr.bf16.mxu1 %v7360_v14  ;;  %4944 = vmatprep.subr.bf16.mxu0 %v5964_v21  ;;  %v6020_v20 = vcombine.high %v3894_v12, %v3898_v13  ;;  %v3886_v21 = vld [vmem:[#allocation6 + $0x300] sm:$0xff] }
 0x20c   :  { %4986 = vmatpush1.bf16.msra.mxu1 %v6099_v53  ;;  %v6012_v27 = vcombine.high %v3886_v21, %v3890_v22  ;;  %v6059_v53 = vcombine.low %v3934_v51, %v3938_v54 }
 0x20d   :  { %4987 = vmatprep.subr.bf16.mxu1 %v6092_v60 }
 0x20e   :  { %4945 = vmatpush1.bf16.msra.mxu0 %v5963_v23  ;;  %v6019_v23 = vcombine.low %v3894_v12, %v3898_v13  ;;  %v3922_v12 = vld [vmem:[#allocation6 + $0x420] sm:$0xff] }
 0x20f   :  { %4946 = vmatprep.subr.bf16.mxu0 %v5956_v25  ;;  %v7106_v25 = vpop.f32.mrf.mxu0 }
 0x210   :  { %4988 = vmatpush1.bf16.msra.mxu1 %v6091_v1  ;;  %v6051_v1 = vcombine.low %v3926_v61, %v3930_v48 }
 0x211   :  { %4989 = vmatprep.subr.bf16.mxu1 %v6084_v3 }
 0x212   :  { %4947 = vmatpush1.bf16.msra.mxu0 %v5955_v32  ;;  %v7110_v32 = vpop.f32.mrf.mxu0 }
 0x213   :  { %4948 = vmatprep.subr.bf16.mxu0 %v5948_v28  ;;  %v6011_v28 = vcombine.low %v3886_v21, %v3890_v22  ;;  %v7134_v21 = vld [vmem:[#allocation6 + $0x5c8] sm:$0xff] }
 0x214   :  { %4990 = vmatpush1.bf16.msra.mxu1 %v6083_v15  ;;  %v7116_v33 = vpop.f32.mrf.mxu0  ;;  %7367 = vst [vmem:[#allocation10_spill] sm:$0xff] %v7134_v21  ;;  %v7136_v22 = vld [vmem:[#allocation6 + $0x5e8] sm:$0xff] }
 0x215   :  { %4991 = vmatprep.subr.bf16.mxu1 %v6076_v16  ;;  %7368 = vst [vmem:[#allocation11_spill] sm:$0xff] %v7136_v22 }
 0x216   :  { %4949 = vmatpush1.bf16.msra.mxu0 %v5947_v29  ;;  %v7112_v29 = vpop.f32.mrf.mxu1 }
 0x217   :  { %4950 = vmatprep.subr.bf16.mxu0 %v5940_v34  ;;  %v3878_v34 = vld [vmem:[#allocation6 + $0x2c0] sm:$0xff] }
 0x218   :  { %4992 = vmatpush1.bf16.msra.mxu1 %v6075_v24  ;;  %v7114_v30 = vpop.f32.mrf.mxu1  ;;  %v6102_v24 = vcombine.high %v7134_v21, %v7136_v22 }
 0x21a   :  { %4951 = vmatpush1.bf16.msra.mxu0 %v5939_v35  ;;  %v3882_v35 = vld [vmem:[#allocation6 + $0x2e0] sm:$0xff]  ;;  %v7118_v44 = vpop.f32.mrf.mxu1 }
 0x21b   :  { %4952 = vmatprep.subr.bf16.mxu0 %v5932_v38  ;;  %v6004_v36 = vcombine.high %v3878_v34, %v3882_v35  ;;  %v3946_v38 = vld [vmem:[#allocation6 + $0x4e0] sm:$0xff] }
 0x21c   :  { %v6068_v42 = vcombine.high %v3942_v37, %v3946_v38  ;;  %v6067_v43 = vcombine.low %v3942_v37, %v3946_v38  ;;  %v7122_v56 = vpop.f32.mrf.mxu1 }
 0x21d   :  { %7366 = vst [vmem:[#allocation9_spill] sm:$0xff] %v7122_v56 }
 0x21e   :  { %4953 = vmatpush1.bf16.msra.mxu0 %v5931_v40  ;;  %v6003_v40 = vcombine.low %v3878_v34, %v3882_v35  ;;  %4993 = vmatprep.subr.bf16.mxu1 %v6068_v42  ;;  %v7128_v3 = vpop.f32.mrf.mxu1  ;;  %v3053_v35 = vadd.f32 %v7090_v39, %v7088_v41 }
 0x21f   :  { %4954 = vmatprep.subr.bf16.mxu0 %v5924_v47  ;;  %v3874_v47 = vld [vmem:[#allocation6 + $0x2a0] sm:$0xff]  ;;  %4994 = vmatpush1.bf16.msra.mxu1 %v6067_v43 }
 0x220   :  { %v5995_v55 = vcombine.low %v3870_v46, %v3874_v47  ;;  %4995 = vmatprep.subr.bf16.mxu1 %v6060_v52  ;;  %v7130_v13 = vpop.f32.mrf.mxu1 }
 0x222   :  { %4955 = vmatpush1.bf16.msra.mxu0 %v5923_v45  ;;  %v7120_v45 = vpop.f32.mrf.mxu0 }
 0x223   :  { %4956 = vmatprep.subr.bf16.mxu0 %v5916_v49  ;;  %v5996_v49 = vcombine.high %v3870_v46, %v3874_v47  ;;  %4996 = vmatpush1.bf16.msra.mxu1 %v6059_v53 }
 0x224   :  { %v7124_v57 = vpop.f32.mrf.mxu0  ;;  %4997 = vmatprep.subr.bf16.mxu1 %v6052_v0 }
 0x226   :  { %4957 = vmatpush1.bf16.msra.mxu0 %v5915_v5  ;;  %v3866_v5 = vld [vmem:[#allocation6 + $0x260] sm:$0xff] }
 0x227   :  { %4958 = vmatprep.subr.bf16.mxu0 %v6036_v62  ;;  %v5988_v60 = vcombine.high %v3862_v59, %v3866_v5  ;;  %v7126_v62 = vpop.f32.mrf.mxu0  ;;  %v5987_v63 = vcombine.low %v3862_v59, %v3866_v5  ;;  %4998 = vmatpush1.bf16.msra.mxu1 %v6051_v1 }
 0x229   :  { %v7132_v15 = vpop.f32.mrf.mxu0 }
 0x22a   :  { %4959 = vmatpush2.bf16.msra.mxu0 %v6035_v6  ;;  %v3854_v6 = vld [vmem:[#allocation6 + $0x200] sm:$0xff] }
 0x22b   :  { %4960 = vmatprep.subr.bf16.mxu0 %v6028_v11  ;;  %v5980_v8 = vcombine.high %v3854_v6, %v3858_v7  ;;  %v3918_v11 = vld [vmem:[#allocation6 + $0x400] sm:$0xff]  ;;  %v5979_v16 = vcombine.low %v3854_v6, %v3858_v7  ;;  %v7146_v34 = vpop.f32.mrf.mxu0 }
 0x22e   :  { %4961 = vmatpush2.bf16.msra.mxu0 %v6027_v17  ;;  %v6044_v17 = vcombine.high %v3918_v11, %v3922_v12 }
 0x22f   :  { %4962 = vmatprep.subr.bf16.mxu0 %v6020_v20  ;;  %v6043_v20 = vcombine.low %v3918_v11, %v3922_v12 }
 0x230   :  { %4999 = vmatprep.subr.bf16.mxu1 %v6044_v17  ;;  %v3180_v17 = vadd.f32 %v7116_v33, %v7104_v19  ;;  %v3092_v19 = vadd.f32 %v7094_v50, %v7067_v4  ;;  %v3096_v33 = vadd.f32 %v7102_v18, %v3053_v35  ;;  %v3055_v35 = vadd.f32 %v7096_v2, %v7092_v58 }
 0x231   :  { %5000 = vmatpush1.bf16.msra.mxu1 %v6043_v20  ;;  %v3184_v20 = vadd.f32 %v7124_v57, %v7112_v29 }
 0x232   :  { %4963 = vmatpush2.bf16.msra.mxu0 %v6019_v23  ;;  %v7140_v23 = vld [vmem:[#allocation6 + $0x1c8] sm:$0xff]  ;;  %v3223_v22 = vadd.f32 %v7118_v44, %v3180_v17  ;;  %v3745_v44 = vmax.f32 %v3092_v19, 0.0 }
 0x233   :  { %4964 = vmatprep.subr.bf16.mxu0 %v6012_v27  ;;  %7369 = vst [vmem:[#allocation12_spill] sm:$0xff] %v7140_v23  ;;  %v7142_v27 = vld [vmem:[#allocation6 + $0x1e8] sm:$0xff]  ;;  %v3227_v21 = vadd.f32 %v7128_v3, %v3184_v20 }
 0x234   :  { %7370 = vst [vmem:[#allocation13_spill] sm:$0xff] %v7142_v27  ;;  %v3748_v41 = vmax.f32 %v3223_v22, 0.0 }
 0x235   :  { %v3760_v39 = vmax.f32 %v3227_v21, 0.0  ;;  %v3094_v21 = vadd.f32 %v7098_v9, %v7069_v31  ;;  %v3098_v31 = vadd.f32 %v7106_v25, %v3055_v35  ;;  %v3182_v9 = vadd.f32 %v7120_v45, %v7108_v26 }
 0x236   :  { %4965 = vmatpush2.bf16.msra.mxu0 %v6011_v28  ;;  %v7144_v28 = vpop.f32.mrf.mxu1 }
 0x237   :  { %4966 = vmatprep.subr.bf16.mxu0 %v6004_v36  ;;  %v5974_v36 = vcombine.high %v7140_v23, %v7142_v27  ;;  %v3309_v58 = vadd.f32 %v7144_v28, %v7132_v15 }
 0x238   :  { %v7154_v38 = vpop.f32.mrf.mxu1 }
 0x239   :  { %5028 = vmatprep.subr.bf16.mxu1 %v5974_v36  ;;  %v3311_v19 = vadd.f32 %v7154_v38, %v7146_v34 }
 0x23a   :  { %4967 = vmatpush2.bf16.msra.mxu0 %v6003_v40  ;;  %v7156_v40 = vpop.f32.mrf.mxu0  ;;  %v7160_v43 = vpop.f32.mrf.mxu1 }
 0x23b   :  { %4968 = vmatprep.subr.bf16.mxu0 %v5996_v49 }
 0x23c   :  { %v7158_v42 = vpop.f32.mrf.mxu0  ;;  %v3392_v47 = vpop.f32.mrf.mxu1 }
 0x23e   :  { %4969 = vmatpush2.bf16.msra.mxu0 %v5995_v55  ;;  %v7162_v46 = vpop.f32.mrf.mxu0  ;;  %v3394_v51 = vpop.f32.mrf.mxu1 }
 0x23f   :  { %4970 = vmatprep.subr.bf16.mxu0 %v5988_v60  ;;  %v3352_v15 = vadd.f32 %v7162_v46, %v3309_v58 }
 0x240   :  { %v7164_v49 = vpop.f32.mrf.mxu0  ;;  %v3396_v55 = vpop.f32.mrf.mxu1 }
 0x242   :  { %4971 = vmatpush2.bf16.msra.mxu0 %v5987_v63  ;;  %v7166_v54 = vpop.f32.mrf.mxu0  ;;  %v3398_v53 = vpop.f32.mrf.mxu1 }
 0x243   :  { %4972 = vmatprep.subr.bf16.mxu0 %v5980_v8 }
 0x244   :  { %v3435_v52 = vpop.f32.mrf.mxu0  ;;  %v3478_v59 = vpop.f32.mrf.mxu1 }
 0x246   :  { %4973 = vmatpush2.bf16.msra.mxu0 %v5979_v16  ;;  %v3437_v5 = vpop.f32.mrf.mxu0  ;;  %v7168_v60 = vpop.f32.mrf.mxu1 }
 0x247   :  { %5071 = vmatprep.subr.bf16.mxu0 %v6102_v24  ;;  %v3436_v24 = vadd.f32 %v3435_v52, %v3392_v47 }
 0x248   :  { %v3439_v61 = vpop.f32.mrf.mxu0  ;;  %v3482_v48 = vpop.f32.mrf.mxu1 }
 0x249   :  { %v3440_v14 = vadd.f32 %v3439_v61, %v3396_v55  ;;  %v3479_v56 = vadd.f32 %v3478_v59, %v3436_v24 }
 0x24a   :  { %v3441_v63 = vpop.f32.mrf.mxu0  ;;  %v7172_v1 = vpop.f32.mrf.mxu1 }
 0x24b   :  { %v3483_v57 = vadd.f32 %v3482_v48, %v3440_v14  ;;  %v3751_v61 = vmax.f32 %v3479_v56, 0.0  ;;  %v3438_v56 = vadd.f32 %v3437_v5, %v3394_v51  ;;  %v3178_v48 = vadd.f32 %v7110_v32, %v7100_v10 }
 0x24c   :  { %v3313_v10 = vadd.f32 %v7160_v43, %v7156_v40 }
 0x24d   :  { %v3763_v3 = vmax.f32 %v3483_v57, 0.0  ;;  %v3221_v25 = vadd.f32 %v7114_v30, %v3178_v48 }
 0x24e   :  { %v3356_v28 = vadd.f32 %v7166_v54, %v3313_v10  ;;  %v3959_v10 = vld [vmem:[#allocation6 + $0x548] sm:$0xff] }
 0x269   :  { %v7170_v0 = vpop.f32.mrf.mxu0 }
 0x26a   :  { %v7174_v6 = vpop.f32.mrf.mxu1 }
 0x26b   :  { %v3523_v7 = vpop.f32.mrf.mxu0  ;;  %v3565_v26 = vadd.f32 %v7174_v6, %v7170_v0 }
 0x26c   :  { %v3566_v8 = vpop.f32.mrf.mxu1 }
 0x26d   :  { %v7176_v11 = vpop.f32.mrf.mxu0  ;;  %v3567_v37 = vadd.f32 %v3566_v8, %v3523_v7  ;;  %v3757_v8 = vmax.f32 %v3096_v33, 0.0  ;;  %v3442_v33 = vadd.f32 %v3441_v63, %v3398_v53 }
 0x26e   :  { %v7178_v12 = vpop.f32.mrf.mxu1 }
 0x26f   :  { %7371 = vst [vmem:[#allocation14_spill] sm:$0xff] %v7178_v12  ;;  %v3527_v16 = vpop.f32.mrf.mxu0  ;;  %v3772_v17 = vmax.f32 %v3757_v8, %v3760_v39  ;;  %v3485_v40 = vadd.f32 %v7172_v1, %v3442_v33  ;;  %v3839_v33 = vld [vmem:[#allocation6 + $0x188] sm:$0xff] }
 0x270   :  { %v3570_v27 = vpop.f32.mrf.mxu1 }
 0x271   :  { %v3571_v47 = vadd.f32 %v3570_v27, %v3527_v16  ;;  %v3307_v16 = vadd.f32 %v7130_v13, %v7126_v62  ;;  %v3354_v62 = vadd.f32 %v7164_v49, %v3311_v19  ;;  %v3481_v13 = vadd.f32 %v7168_v60, %v3438_v56  ;;  %v3971_v19 = vld [vmem:[#allocation6 + $0x5a8] sm:$0xff] }
 0x272   :  { %v3764_v8 = vmax.f32 %v3485_v40, 0.0 }
 0x273   :  { %v3350_v32 = vadd.f32 %v7158_v42, %v3307_v16  ;;  %v3967_v16 = vld [vmem:[#allocation6 + $0x588] sm:$0xff] }
 0x275   :  { %v3749_v6 = vmax.f32 %v3350_v32, 0.0  ;;  %v3963_v32 = vld [vmem:[#allocation6 + $0x568] sm:$0xff] }
 0x276   :  { %v7372_v42 = vld [vmem:[#allocation14_spill] sm:$0xff]  ;;  %v6086_v40 = vcombine.high %v3959_v10, %v3963_v32 }
 0x277   :  { %v3569_v43 = vadd.f32 %v7372_v42, %v7176_v11  ;;  %v3750_v11 = vmax.f32 %v3352_v15, 0.0 }
 0x289   :  { %v7184_v36 = vpop.f32.mrf.mxu0 }
 0x28a   :  { %v3608_v5 = vadd.f32 %v7184_v36, %v3565_v26  ;;  %v6093_v26 = vcombine.low %v3967_v16, %v3971_v19 }
 0x28b   :  { %v3609_v23 = vpop.f32.mrf.mxu0 }
 0x28c   :  { %v3610_v12 = vadd.f32 %v3609_v23, %v3567_v37  ;;  %v3769_v37 = vmax.f32 %v3745_v44, %v3748_v41  ;;  %v3752_v41 = vmax.f32 %v3481_v13, 0.0  ;;  %v3762_v44 = vmax.f32 %v3356_v28, 0.0  ;;  %v3835_v13 = vld [vmem:[#allocation6 + $0x168] sm:$0xff] }
 0x28d   :  { %v7192_v29 = vpop.f32.mrf.mxu0  ;;  %v3753_v36 = vmax.f32 %v3608_v5, 0.0  ;;  %v3827_v5 = vld [vmem:[#allocation6 + $0x128] sm:$0xff] }
 0x28e   :  { %v3754_v55 = vmax.f32 %v3610_v12, 0.0  ;;  %v3746_v12 = vmax.f32 %v3094_v21, 0.0  ;;  %v3612_v54 = vadd.f32 %v7192_v29, %v3569_v43  ;;  %v3951_v43 = vld [vmem:[#allocation6 + $0x508] sm:$0xff] }
 0x28f   :  { %v3613_v52 = vpop.f32.mrf.mxu0 }
 0x290   :  { %v3614_v7 = vadd.f32 %v3613_v52, %v3571_v47  ;;  %v3775_v59 = vmax.f32 %v3751_v61, %v3754_v55  ;;  %v7373_v55 = vld [vmem:[#allocation9_spill] sm:$0xff]  ;;  %v3761_v52 = vmax.f32 %v3354_v62, 0.0  ;;  %v3831_v62 = vld [vmem:[#allocation6 + $0x148] sm:$0xff] }
 0x291   :  { %v3225_v0 = vadd.f32 %v7373_v55, %v3182_v9  ;;  %v5958_v42 = vcombine.high %v3831_v62, %v3835_v13 }
 0x292   :  { %v3766_v23 = vmax.f32 %v3614_v7, 0.0  ;;  %v3781_v50 = vmax.f32 %v3769_v37, %v3775_v59  ;;  %v3758_v7 = vmax.f32 %v3098_v31, 0.0 }
 0x294   :  { %v3778_v4 = vmax.f32 %v3763_v3, %v3766_v23 }
 0x296   :  { %v3784_v20 = vmax.f32 %v3772_v17, %v3778_v4  ;;  %v3747_v17 = vmax.f32 %v3221_v25, 0.0  ;;  %v3759_v4 = vmax.f32 %v3225_v0, 0.0 }
 0x298   :  { %v7195_v24 = vpack.c.bf16 %v3784_v20, %v3781_v50  ;;  %v3770_v50 = vmax.f32 %v3746_v12, %v3749_v6  ;;  %v3773_v20 = vmax.f32 %v3758_v7, %v3761_v52  ;;  %v3771_v21 = vmax.f32 %v3747_v17, %v3750_v11  ;;  %v3943_v6 = vld [vmem:[#allocation6 + $0x4c8] sm:$0xff] }
 0x299   :  { %v3774_v56 = vmax.f32 %v3759_v4, %v3762_v44  ;;  %v6094_v12 = vcombine.high %v3967_v16, %v3971_v19  ;;  %v3947_v52 = vld [vmem:[#allocation6 + $0x4e8] sm:$0xff] }
 0x29a   :  { %v3935_v7 = vld [vmem:[#allocation6 + $0x488] sm:$0xff] }
 0x29b   :  { %v3939_v11 = vld [vmem:[#allocation6 + $0x4a8] sm:$0xff] }
 0x29c   :  { %v3807_v44 = vld [vmem:[#allocation6 + $0x88] sm:$0xff] }
 0x29d   :  { %v3931_v17 = vld [vmem:[#allocation6 + $0x468] sm:$0xff] }
 0x29e   :  { %v3799_v4 = vld [vmem:[#allocation6 + $0x48] sm:$0xff] }
 0x2aa   :  { %v3650_v14 = vpop.f32.mrf.mxu1 }
 0x2ac   :  { %v3652_v18 = vpop.f32.mrf.mxu1 }
 0x2ae   :  { %v3654_v27 = vpop.f32.mrf.mxu1 }
 0x2b0   :  { %v3656_v22 = vpop.f32.mrf.mxu1 }
 0x2c9   :  { %v3693_v57 = vpop.f32.mrf.mxu0 }
 0x2ca   :  { %v3736_v47 = vpop.f32.mrf.mxu1  ;;  %v3694_v2 = vadd.f32 %v3693_v57, %v3650_v14  ;;  %v3765_v14 = vmax.f32 %v3612_v54, 0.0  ;;  %v3843_v57 = vld [vmem:[#allocation6 + $0x1a8] sm:$0xff] }
 0x2cb   :  { %v3695_v34 = vpop.f32.mrf.mxu0  ;;  %v5965_v28 = vcombine.low %v3839_v33, %v3843_v57 }
 0x2cc   :  { %v3738_v38 = vpop.f32.mrf.mxu1  ;;  %v3737_v45 = vadd.f32 %v3736_v47, %v3694_v2  ;;  %v3696_v51 = vadd.f32 %v3695_v34, %v3652_v18  ;;  %v5966_v2 = vcombine.high %v3839_v33, %v3843_v57  ;;  %v7374_v34 = vld [vmem:[#allocation10_spill] sm:$0xff]  ;;  %v3848_v33 = vld [vmem:[#allocation6 + $0x1d0] sm:$0xff] }
 0x2cd   :  { %v3697_v49 = vpop.f32.mrf.mxu0  ;;  %v3852_v57 = vld [vmem:[#allocation6 + $0x1f0] sm:$0xff] }
 0x2ce   :  { %v3740_v53 = vpop.f32.mrf.mxu1  ;;  %v3755_v60 = vmax.f32 %v3737_v45, 0.0  ;;  %v3739_v30 = vadd.f32 %v3738_v38, %v3696_v51  ;;  %v3698_v63 = vadd.f32 %v3697_v49, %v3654_v27  ;;  %v7375_v38 = vld [vmem:[#allocation11_spill] sm:$0xff]  ;;  %v7377_v45 = vld [vmem:[#allocation12_spill] sm:$0xff]  ;;  %v7378_v51 = vld [vmem:[#allocation13_spill] sm:$0xff] }
 0x2cf   :  { %v3699_v46 = vpop.f32.mrf.mxu0  ;;  %v7376_v25 = vcombine.low %v7374_v34, %v7375_v38  ;;  %v7379_v15 = vcombine.low %v7377_v45, %v7378_v51  ;;  %v3955_v49 = vld [vmem:[#allocation6 + $0x528] sm:$0xff] }
 0x2d0   :  { %v3756_v39 = vmax.f32 %v3739_v30, 0.0  ;;  %v3741_v1 = vadd.f32 %v3740_v53, %v3698_v63  ;;  %v3700_v61 = vadd.f32 %v3699_v46, %v3656_v22  ;;  %v3742_v3 = vpop.f32.mrf.mxu1  ;;  %v3776_v59 = vmax.f32 %v3752_v41, %v3755_v60  ;;  %v3823_v53 = vld [vmem:[#allocation6 + $0x108] sm:$0xff] }
 0x2d1   :  { %v7380_v60 = vmov 0   ;;  %v6085_v30 = vcombine.low %v3959_v10, %v3963_v32  ;;  %v5957_v63 = vcombine.low %v3831_v62, %v3835_v13  ;;  %v6078_v55 = vcombine.high %v3951_v43, %v3955_v49  ;;  %v3815_v41 = vld [vmem:[#allocation6 + $0xc8] sm:$0xff]  ;;  %v3840_v62 = vld [vmem:[#allocation6 + $0x190] sm:$0xff] }
 0x2d2   :  { %v3767_v23 = vmax.f32 %v3741_v1, 0.0  ;;  %v3743_v37 = vadd.f32 %v3742_v3, %v3700_v61  ;;  %v3777_v18 = vmax.f32 %v3753_v36, %v3756_v39  ;;  %v3782_v22 = vmax.f32 %v3770_v50, %v3776_v59  ;;  %v3819_v46 = vld [vmem:[#allocation6 + $0xe8] sm:$0xff]  ;;  %v3844_v13 = vld [vmem:[#allocation6 + $0x1b0] sm:$0xff] }
 0x2d3   :  { %v5950_v0 = vcombine.high %v3823_v53, %v3827_v5  ;;  %v6077_v54 = vcombine.low %v3951_v43, %v3955_v49  ;;  %v5949_v39 = vcombine.low %v3823_v53, %v3827_v5  ;;  %v6070_v1 = vcombine.high %v3943_v6, %v3947_v52  ;;  %v3803_v50 = vld [vmem:[#allocation6 + $0x68] sm:$0xff] }
 0x2d4   :  { %v3779_v27 = vmax.f32 %v3764_v8, %v3767_v23  ;;  %v3768_v29 = vmax.f32 %v3743_v37, 0.0  ;;  %v3783_v47 = vmax.f32 %v3771_v21, %v3777_v18  ;;  %v5942_v61 = vcombine.high %v3815_v41, %v3819_v46  ;;  %v3811_v8 = vld [vmem:[#allocation6 + $0xa8] sm:$0xff] }
 0x2d5   :  { %v6069_v3 = vcombine.low %v3943_v6, %v3947_v52  ;;  %v5941_v36 = vcombine.low %v3815_v41, %v3819_v46  ;;  %v6062_v59 = vcombine.high %v3935_v7, %v3939_v11  ;;  %v5934_v23 = vcombine.high %v3807_v44, %v3811_v8  ;;  %v3927_v37 = vld [vmem:[#allocation6 + $0x448] sm:$0xff] }
 0x2d6   :  { %v3785_v35 = vmax.f32 %v3773_v20, %v3779_v27  ;;  %v3780_v48 = vmax.f32 %v3765_v14, %v3768_v29  ;;  %v6061_v20 = vcombine.low %v3935_v7, %v3939_v11  ;;  %v5933_v14 = vcombine.low %v3807_v44, %v3811_v8  ;;  %v3919_v29 = vld [vmem:[#allocation6 + $0x408] sm:$0xff] }
 0x2d7   :  { %v6054_v18 = vcombine.high %v3927_v37, %v3931_v17  ;;  %v5926_v27 = vcombine.high %v3799_v4, %v3803_v50  ;;  %v3923_v21 = vld [vmem:[#allocation6 + $0x428] sm:$0xff]  ;;  %v5976_v10 = vcombine.high %v3848_v33, %v3852_v57  ;;  %v5968_v45 = vcombine.high %v3840_v62, %v3844_v13 }
 0x2d8   :  { %v7228_v31 = vpack.c.bf16 %v3785_v35, %v3782_v22  ;;  %v3786_v9 = vmax.f32 %v3774_v56, %v3780_v48  ;;  %v3791_v56 = vld [vmem:[#allocation6 + $0x8] sm:$0xff]  ;;  %v6053_v35 = vcombine.low %v3927_v37, %v3931_v17  ;;  %v5925_v48 = vcombine.low %v3799_v4, %v3803_v50 }
 0x2d9   :  { %v3795_v22 = vld [vmem:[#allocation6 + $0x28] sm:$0xff]  ;;  %v6046_v16 = vcombine.high %v3919_v29, %v3923_v21  ;;  %v5967_v43 = vcombine.low %v3840_v62, %v3844_v13 }
 0x2da   :  { %v7230_v58 = vpack.c.bf16 %v3786_v9, %v3783_v47  ;;  %4974 = vmatprep.mubr.bf16.mxu0 %v7228_v31  ;;  %v5918_v19 = vcombine.high %v3791_v56, %v3795_v22  ;;  %v3911_v47 = vld [vmem:[#allocation6 + $0x3c8] sm:$0xff] }
 0x2db   :  { %4975 = vmatmul.mubr.bf16.vlgmr.msra.gmra.mxu0 %v7195_v24  ;;  %v3915_v9 = vld [vmem:[#allocation6 + $0x3e8] sm:$0xff] }
 0x2dc   :  { %5072 = vmatpush1.bf16.msra.mxu0 %v7376_v25  ;;  %5018 = vmatmul.mubr.bf16.vlgmr.msra.gmra.mxu1 %v7230_v58  ;;  %v6038_v32 = vcombine.high %v3911_v47, %v3915_v9  ;;  %v3903_v34 = vld [vmem:[#allocation6 + $0x388] sm:$0xff]  ;;  %v5975_v25 = vcombine.low %v3848_v33, %v3852_v57 }
 0x2dd   :  { %5029 = vmatpush1.bf16.msra.mxu1 %v7379_v15  ;;  %5060 = vmatprep.mubr.bf16.mxu1 %v7228_v31  ;;  %v3907_v38 = vld [vmem:[#allocation6 + $0x3a8] sm:$0xff]  ;;  %v3832_v15 = vld [vmem:[#allocation6 + $0x150] sm:$0xff] }
 0x2de   :  { %5073 = vmatprep.subr.bf16.mxu0 %v6094_v12  ;;  %5030 = vmatprep.subr.bf16.mxu1 %v5966_v2  ;;  %v6045_v12 = vcombine.low %v3919_v29, %v3923_v21  ;;  %v5917_v2 = vcombine.low %v3791_v56, %v3795_v22  ;;  %v6030_v51 = vcombine.high %v3903_v34, %v3907_v38 }
 0x2df   :  { %5103 = vmatprep.mubr.bf16.mxu0 %v7380_v60  ;;  %v6029_v49 = vcombine.low %v3903_v34, %v3907_v38 }
 0x2e0   :  { %5074 = vmatpush1.bf16.msra.mxu0 %v6093_v26  ;;  %v6037_v26 = vcombine.low %v3911_v47, %v3915_v9 }
 0x2e1   :  { %5031 = vmatpush1.bf16.msra.mxu1 %v5965_v28  ;;  %5075 = vmatprep.subr.bf16.mxu0 %v6086_v40  ;;  %v3836_v28 = vld [vmem:[#allocation6 + $0x170] sm:$0xff]  ;;  %v3895_v40 = vld [vmem:[#allocation6 + $0x348] sm:$0xff] }
 0x2e2   :  { %5032 = vmatprep.subr.bf16.mxu1 %v5958_v42  ;;  %v3899_v42 = vld [vmem:[#allocation6 + $0x368] sm:$0xff]  ;;  %v5960_v53 = vcombine.high %v3832_v15, %v3836_v28  ;;  %v5959_v6 = vcombine.low %v3832_v15, %v3836_v28 }
 0x2e3   :  { %v6022_v5 = vcombine.high %v3895_v40, %v3899_v42  ;;  %v6021_v52 = vcombine.low %v3895_v40, %v3899_v42 }
 0x2e4   :  { %5076 = vmatpush1.bf16.msra.mxu0 %v6085_v30  ;;  %v3824_v30 = vld [vmem:[#allocation6 + $0x110] sm:$0xff] }
 0x2e5   :  { %5033 = vmatpush1.bf16.msra.mxu1 %v5957_v63  ;;  %5077 = vmatprep.subr.bf16.mxu0 %v6078_v55  ;;  %v3828_v63 = vld [vmem:[#allocation6 + $0x130] sm:$0xff]  ;;  %v3887_v55 = vld [vmem:[#allocation6 + $0x308] sm:$0xff] }
 0x2e6   :  { %5034 = vmatprep.subr.bf16.mxu1 %v5950_v0  ;;  %v3891_v0 = vld [vmem:[#allocation6 + $0x328] sm:$0xff]  ;;  %v5952_v41 = vcombine.high %v3824_v30, %v3828_v63  ;;  %v5951_v7 = vcombine.low %v3824_v30, %v3828_v63 }
 0x2e7   :  { %v6014_v46 = vcombine.high %v3887_v55, %v3891_v0  ;;  %v6013_v11 = vcombine.low %v3887_v55, %v3891_v0 }
 0x2e8   :  { %5078 = vmatpush1.bf16.msra.mxu0 %v6077_v54  ;;  %v3816_v54 = vld [vmem:[#allocation6 + $0xd0] sm:$0xff] }
 0x2e9   :  { %5035 = vmatpush1.bf16.msra.mxu1 %v5949_v39  ;;  %5079 = vmatprep.subr.bf16.mxu0 %v6070_v1  ;;  %v3820_v39 = vld [vmem:[#allocation6 + $0xf0] sm:$0xff]  ;;  %v3879_v1 = vld [vmem:[#allocation6 + $0x2c8] sm:$0xff] }
 0x2ea   :  { %5036 = vmatprep.subr.bf16.mxu1 %v5942_v61  ;;  %v3883_v61 = vld [vmem:[#allocation6 + $0x2e8] sm:$0xff]  ;;  %v5944_v44 = vcombine.high %v3816_v54, %v3820_v39  ;;  %v5943_v37 = vcombine.low %v3816_v54, %v3820_v39 }
 0x2eb   :  { %v6006_v8 = vcombine.high %v3879_v1, %v3883_v61  ;;  %v6005_v17 = vcombine.low %v3879_v1, %v3883_v61 }
 0x2ec   :  { %5080 = vmatpush1.bf16.msra.mxu0 %v6069_v3  ;;  %v3808_v3 = vld [vmem:[#allocation6 + $0x90] sm:$0xff] }
 0x2ed   :  { %5037 = vmatpush1.bf16.msra.mxu1 %v5941_v36  ;;  %5081 = vmatprep.subr.bf16.mxu0 %v6062_v59  ;;  %v3812_v36 = vld [vmem:[#allocation6 + $0xb0] sm:$0xff]  ;;  %v3871_v59 = vld [vmem:[#allocation6 + $0x288] sm:$0xff] }
 0x2ee   :  { %5038 = vmatprep.subr.bf16.mxu1 %v5934_v23  ;;  %v3875_v23 = vld [vmem:[#allocation6 + $0x2a8] sm:$0xff]  ;;  %v5936_v4 = vcombine.high %v3808_v3, %v3812_v36  ;;  %v5935_v29 = vcombine.low %v3808_v3, %v3812_v36 }
 0x2ef   :  { %v5998_v50 = vcombine.high %v3871_v59, %v3875_v23  ;;  %v5997_v21 = vcombine.low %v3871_v59, %v3875_v23 }
 0x2f0   :  { %5082 = vmatpush1.bf16.msra.mxu0 %v6061_v20  ;;  %v3800_v20 = vld [vmem:[#allocation6 + $0x50] sm:$0xff] }
 0x2f1   :  { %5039 = vmatpush1.bf16.msra.mxu1 %v5933_v14  ;;  %5083 = vmatprep.subr.bf16.mxu0 %v6054_v18  ;;  %v3804_v14 = vld [vmem:[#allocation6 + $0x70] sm:$0xff]  ;;  %v3863_v18 = vld [vmem:[#allocation6 + $0x248] sm:$0xff] }
 0x2f2   :  { %5040 = vmatprep.subr.bf16.mxu1 %v5926_v27  ;;  %v3867_v27 = vld [vmem:[#allocation6 + $0x268] sm:$0xff]  ;;  %v5928_v56 = vcombine.high %v3800_v20, %v3804_v14  ;;  %v5927_v33 = vcombine.low %v3800_v20, %v3804_v14 }
 0x2f3   :  { %v5990_v22 = vcombine.high %v3863_v18, %v3867_v27  ;;  %v5989_v57 = vcombine.low %v3863_v18, %v3867_v27 }
 0x2f4   :  { %5084 = vmatpush1.bf16.msra.mxu0 %v6053_v35  ;;  %v3792_v35 = vld [vmem:[#allocation6 + $0x10] sm:$0xff] }
 0x2f5   :  { %5041 = vmatpush1.bf16.msra.mxu1 %v5925_v48  ;;  %5085 = vmatprep.subr.bf16.mxu0 %v6046_v16  ;;  %v3796_v48 = vld [vmem:[#allocation6 + $0x30] sm:$0xff]  ;;  %v3855_v16 = vld [vmem:[#allocation6 + $0x208] sm:$0xff] }
 0x2f6   :  { %5042 = vmatprep.subr.bf16.mxu1 %v5918_v19  ;;  %v3859_v19 = vld [vmem:[#allocation6 + $0x228] sm:$0xff]  ;;  %v5920_v47 = vcombine.high %v3792_v35, %v3796_v48  ;;  %v5919_v62 = vcombine.low %v3792_v35, %v3796_v48 }
 0x2f7   :  { %v5982_v9 = vcombine.high %v3855_v16, %v3859_v19  ;;  %v5981_v13 = vcombine.low %v3855_v16, %v3859_v19 }
 0x2f8   :  { %5086 = vmatpush1.bf16.msra.mxu0 %v6045_v12  ;;  %v3912_v12 = vld [vmem:[#allocation6 + $0x3d0] sm:$0xff] }
 0x2f9   :  { %5043 = vmatpush1.bf16.msra.mxu1 %v5917_v2  ;;  %5114 = vmatprep.subr.bf16.mxu0 %v5976_v10  ;;  %v3916_v2 = vld [vmem:[#allocation6 + $0x3f0] sm:$0xff] }
 0x2fa   :  { %5044 = vmatprep.subr.bf16.mxu1 %v6038_v32  ;;  %v3976_v10 = vld [vmem:[#allocation6 + $0x5d0] sm:$0xff]  ;;  %v6040_v34 = vcombine.high %v3912_v12, %v3916_v2  ;;  %v6039_v15 = vcombine.low %v3912_v12, %v3916_v2 }
 0x2fb   :  { %5104 = vmatmul.mubr.bf16.vlgmr.msra.gmra.mxu0 %v7230_v58  ;;  %v3980_v32 = vld [vmem:[#allocation6 + $0x5f0] sm:$0xff] }
 0x2fc   :  { %5115 = vmatpush1.bf16.msra.mxu0 %v5975_v25  ;;  %5146 = vmatprep.mubr.bf16.mxu0 %v7228_v31  ;;  %v6104_v38 = vcombine.high %v3976_v10, %v3980_v32  ;;  %v3904_v25 = vld [vmem:[#allocation6 + $0x390] sm:$0xff]  ;;  %v6103_v28 = vcombine.low %v3976_v10, %v3980_v32 }
 0x2fd   :  { %5045 = vmatpush2.bf16.msra.mxu1 %v6037_v26  ;;  %5116 = vmatprep.subr.bf16.mxu0 %v5968_v45  ;;  %v3908_v26 = vld [vmem:[#allocation6 + $0x3b0] sm:$0xff] }
 0x2fe   :  { %5046 = vmatprep.subr.bf16.mxu1 %v6030_v51  ;;  %v3968_v45 = vld [vmem:[#allocation6 + $0x590] sm:$0xff]  ;;  %v6032_v40 = vcombine.high %v3904_v25, %v3908_v26  ;;  %v6031_v30 = vcombine.low %v3904_v25, %v3908_v26 }
 0x2ff   :  { %v3972_v51 = vld [vmem:[#allocation6 + $0x5b0] sm:$0xff] }
 0x300   :  { %5117 = vmatpush1.bf16.msra.mxu0 %v5967_v43  ;;  %v6096_v42 = vcombine.high %v3968_v45, %v3972_v51  ;;  %v3896_v43 = vld [vmem:[#allocation6 + $0x350] sm:$0xff]  ;;  %v6095_v63 = vcombine.low %v3968_v45, %v3972_v51 }
 0x301   :  { %5047 = vmatpush2.bf16.msra.mxu1 %v6029_v49  ;;  %5118 = vmatprep.subr.bf16.mxu0 %v5960_v53  ;;  %v3900_v49 = vld [vmem:[#allocation6 + $0x370] sm:$0xff] }
 0x302   :  { %5048 = vmatprep.subr.bf16.mxu1 %v6022_v5  ;;  %v3960_v53 = vld [vmem:[#allocation6 + $0x550] sm:$0xff]  ;;  %v6024_v55 = vcombine.high %v3896_v43, %v3900_v49  ;;  %v6023_v54 = vcombine.low %v3896_v43, %v3900_v49 }
 0x303   :  { %v3964_v5 = vld [vmem:[#allocation6 + $0x570] sm:$0xff] }
 0x304   :  { %5119 = vmatpush1.bf16.msra.mxu0 %v5959_v6  ;;  %v6088_v0 = vcombine.high %v3960_v53, %v3964_v5  ;;  %v3888_v6 = vld [vmem:[#allocation6 + $0x310] sm:$0xff]  ;;  %v6087_v39 = vcombine.low %v3960_v53, %v3964_v5 }
 0x305   :  { %5049 = vmatpush2.bf16.msra.mxu1 %v6021_v52  ;;  %5120 = vmatprep.subr.bf16.mxu0 %v5952_v41  ;;  %v3892_v52 = vld [vmem:[#allocation6 + $0x330] sm:$0xff] }
 0x306   :  { %5050 = vmatprep.subr.bf16.mxu1 %v6014_v46  ;;  %v3952_v41 = vld [vmem:[#allocation6 + $0x510] sm:$0xff]  ;;  %v6016_v1 = vcombine.high %v3888_v6, %v3892_v52  ;;  %v6015_v3 = vcombine.low %v3888_v6, %v3892_v52 }
 0x307   :  { %v3956_v46 = vld [vmem:[#allocation6 + $0x530] sm:$0xff] }
 0x308   :  { %5121 = vmatpush1.bf16.msra.mxu0 %v5951_v7  ;;  %v6080_v61 = vcombine.high %v3952_v41, %v3956_v46  ;;  %v3880_v7 = vld [vmem:[#allocation6 + $0x2d0] sm:$0xff]  ;;  %v6079_v36 = vcombine.low %v3952_v41, %v3956_v46 }
 0x309   :  { %5051 = vmatpush2.bf16.msra.mxu1 %v6013_v11  ;;  %5122 = vmatprep.subr.bf16.mxu0 %v5944_v44  ;;  %v3884_v11 = vld [vmem:[#allocation6 + $0x2f0] sm:$0xff] }
 0x30a   :  { %5052 = vmatprep.subr.bf16.mxu1 %v6006_v8  ;;  %v3944_v44 = vld [vmem:[#allocation6 + $0x4d0] sm:$0xff]  ;;  %v6008_v59 = vcombine.high %v3880_v7, %v3884_v11  ;;  %v6007_v20 = vcombine.low %v3880_v7, %v3884_v11 }
 0x30b   :  { %v3948_v8 = vld [vmem:[#allocation6 + $0x4f0] sm:$0xff] }
 0x30c   :  { %5123 = vmatpush1.bf16.msra.mxu0 %v5943_v37  ;;  %v6072_v23 = vcombine.high %v3944_v44, %v3948_v8  ;;  %v3872_v37 = vld [vmem:[#allocation6 + $0x290] sm:$0xff]  ;;  %v6071_v14 = vcombine.low %v3944_v44, %v3948_v8 }
 0x30d   :  { %5053 = vmatpush2.bf16.msra.mxu1 %v6005_v17  ;;  %5124 = vmatprep.subr.bf16.mxu0 %v5936_v4  ;;  %v3876_v17 = vld [vmem:[#allocation6 + $0x2b0] sm:$0xff] }
 0x30e   :  { %5054 = vmatprep.subr.bf16.mxu1 %v5998_v50  ;;  %v3936_v4 = vld [vmem:[#allocation6 + $0x490] sm:$0xff]  ;;  %v6000_v18 = vcombine.high %v3872_v37, %v3876_v17  ;;  %v5999_v35 = vcombine.low %v3872_v37, %v3876_v17 }
 0x30f   :  { %v3940_v50 = vld [vmem:[#allocation6 + $0x4b0] sm:$0xff] }
 0x310   :  { %5125 = vmatpush1.bf16.msra.mxu0 %v5935_v29  ;;  %v6064_v27 = vcombine.high %v3936_v4, %v3940_v50  ;;  %v3864_v29 = vld [vmem:[#allocation6 + $0x250] sm:$0xff]  ;;  %v6063_v48 = vcombine.low %v3936_v4, %v3940_v50  ;;  %v3937_v4 = vld [vmem:[#allocation6 + $0x498] sm:$0xff] }
 0x311   :  { %5055 = vmatpush2.bf16.msra.mxu1 %v5997_v21  ;;  %5126 = vmatprep.subr.bf16.mxu0 %v5928_v56  ;;  %v3868_v21 = vld [vmem:[#allocation6 + $0x270] sm:$0xff]  ;;  %v3941_v50 = vld [vmem:[#allocation6 + $0x4b8] sm:$0xff] }
 0x312   :  { %5056 = vmatprep.subr.bf16.mxu1 %v5990_v22  ;;  %v3928_v56 = vld [vmem:[#allocation6 + $0x450] sm:$0xff]  ;;  %v5992_v16 = vcombine.high %v3864_v29, %v3868_v21  ;;  %v5991_v12 = vcombine.low %v3864_v29, %v3868_v21  ;;  %v6066_v29 = vcombine.high %v3937_v4, %v3941_v50 }
 0x313   :  { %v3932_v22 = vld [vmem:[#allocation6 + $0x470] sm:$0xff] }
 0x314   :  { %5127 = vmatpush1.bf16.msra.mxu0 %v5927_v33  ;;  %v6056_v19 = vcombine.high %v3928_v56, %v3932_v22  ;;  %v3856_v33 = vld [vmem:[#allocation6 + $0x210] sm:$0xff]  ;;  %v6055_v2 = vcombine.low %v3928_v56, %v3932_v22  ;;  %v3929_v56 = vld [vmem:[#allocation6 + $0x458] sm:$0xff] }
 0x315   :  { %5057 = vmatpush2.bf16.msra.mxu1 %v5989_v57  ;;  %5128 = vmatprep.subr.bf16.mxu0 %v5920_v47  ;;  %v3860_v57 = vld [vmem:[#allocation6 + $0x230] sm:$0xff]  ;;  %v3933_v22 = vld [vmem:[#allocation6 + $0x478] sm:$0xff] }
 0x316   :  { %5058 = vmatprep.subr.bf16.mxu1 %v5982_v9  ;;  %v3920_v47 = vld [vmem:[#allocation6 + $0x410] sm:$0xff]  ;;  %v5984_v10 = vcombine.high %v3856_v33, %v3860_v57  ;;  %v5983_v25 = vcombine.low %v3856_v33, %v3860_v57  ;;  %v6058_v33 = vcombine.high %v3929_v56, %v3933_v22 }
 0x317   :  { %v3924_v9 = vld [vmem:[#allocation6 + $0x430] sm:$0xff] }
 0x318   :  { %5129 = vmatpush1.bf16.msra.mxu0 %v5919_v62  ;;  %v6048_v32 = vcombine.high %v3920_v47, %v3924_v9  ;;  %v3977_v62 = vld [vmem:[#allocation6 + $0x5d8] sm:$0xff]  ;;  %v6047_v26 = vcombine.low %v3920_v47, %v3924_v9 }
 0x319   :  { %5059 = vmatpush2.bf16.msra.mxu1 %v5981_v13  ;;  %5130 = vmatprep.subr.bf16.mxu0 %v6040_v34  ;;  %v3981_v13 = vld [vmem:[#allocation6 + $0x5f8] sm:$0xff] }
 0x31a   :  { %5157 = vmatprep.subr.bf16.mxu1 %v6104_v38  ;;  %v3849_v34 = vld [vmem:[#allocation6 + $0x1d8] sm:$0xff]  ;;  %v6106_v45 = vcombine.high %v3977_v62, %v3981_v13  ;;  %v6105_v43 = vcombine.low %v3977_v62, %v3981_v13 }
 0x31b   :  { %v3853_v38 = vld [vmem:[#allocation6 + $0x1f8] sm:$0xff] }
 0x31c   :  { %5061 = vmatmul.mubr.bf16.vlgmr.msra.gmra.mxu1 %v7195_v24  ;;  %5131 = vmatpush2.bf16.msra.mxu0 %v6039_v15  ;;  %v5978_v51 = vcombine.high %v3849_v34, %v3853_v38  ;;  %v3969_v15 = vld [vmem:[#allocation6 + $0x598] sm:$0xff]  ;;  %v5977_v49 = vcombine.low %v3849_v34, %v3853_v38 }
 0x31d   :  { %5158 = vmatpush1.bf16.msra.mxu1 %v6103_v28  ;;  %5132 = vmatprep.subr.bf16.mxu0 %v6032_v40  ;;  %v3973_v28 = vld [vmem:[#allocation6 + $0x5b8] sm:$0xff] }
 0x31e   :  { %5159 = vmatprep.subr.bf16.mxu1 %v6096_v42  ;;  %5189 = vmatprep.mubr.bf16.mxu1 %v7380_v60  ;;  %v3841_v40 = vld [vmem:[#allocation6 + $0x198] sm:$0xff]  ;;  %v6098_v53 = vcombine.high %v3969_v15, %v3973_v28  ;;  %v6097_v6 = vcombine.low %v3969_v15, %v3973_v28 }
 0x31f   :  { %v3845_v42 = vld [vmem:[#allocation6 + $0x1b8] sm:$0xff] }
 0x320   :  { %5133 = vmatpush2.bf16.msra.mxu0 %v6031_v30  ;;  %v5970_v5 = vcombine.high %v3841_v40, %v3845_v42  ;;  %v3961_v30 = vld [vmem:[#allocation6 + $0x558] sm:$0xff]  ;;  %v5969_v52 = vcombine.low %v3841_v40, %v3845_v42 }
 0x321   :  { %5160 = vmatpush1.bf16.msra.mxu1 %v6095_v63  ;;  %5134 = vmatprep.subr.bf16.mxu0 %v6024_v55  ;;  %v3965_v63 = vld [vmem:[#allocation6 + $0x578] sm:$0xff] }
 0x322   :  { %5161 = vmatprep.subr.bf16.mxu1 %v6088_v0  ;;  %v3833_v55 = vld [vmem:[#allocation6 + $0x158] sm:$0xff]  ;;  %v6090_v41 = vcombine.high %v3961_v30, %v3965_v63  ;;  %v6089_v7 = vcombine.low %v3961_v30, %v3965_v63 }
 0x323   :  { %v3837_v0 = vld [vmem:[#allocation6 + $0x178] sm:$0xff] }
 0x324   :  { %5135 = vmatpush2.bf16.msra.mxu0 %v6023_v54  ;;  %v5962_v46 = vcombine.high %v3833_v55, %v3837_v0  ;;  %v3953_v54 = vld [vmem:[#allocation6 + $0x518] sm:$0xff]  ;;  %v5961_v11 = vcombine.low %v3833_v55, %v3837_v0 }
 0x325   :  { %5162 = vmatpush1.bf16.msra.mxu1 %v6087_v39  ;;  %5136 = vmatprep.subr.bf16.mxu0 %v6016_v1  ;;  %v3957_v39 = vld [vmem:[#allocation6 + $0x538] sm:$0xff] }
 0x326   :  { %5163 = vmatprep.subr.bf16.mxu1 %v6080_v61  ;;  %v3825_v1 = vld [vmem:[#allocation6 + $0x118] sm:$0xff]  ;;  %v6082_v44 = vcombine.high %v3953_v54, %v3957_v39 }
 0x327   :  { %v3829_v61 = vld [vmem:[#allocation6 + $0x138] sm:$0xff] }
 0x328   :  { %5137 = vmatpush2.bf16.msra.mxu0 %v6015_v3  ;;  %v5954_v8 = vcombine.high %v3825_v1, %v3829_v61  ;;  %v3949_v3 = vld [vmem:[#allocation6 + $0x4f8] sm:$0xff]  ;;  %v5953_v37 = vcombine.low %v3825_v1, %v3829_v61 }
 0x329   :  { %5164 = vmatpush1.bf16.msra.mxu1 %v6079_v36  ;;  %5138 = vmatprep.subr.bf16.mxu0 %v6008_v59  ;;  %v3817_v36 = vld [vmem:[#allocation6 + $0xd8] sm:$0xff] }
 0x32a   :  { %5165 = vmatprep.subr.bf16.mxu1 %v6072_v23  ;;  %v3821_v59 = vld [vmem:[#allocation6 + $0xf8] sm:$0xff]  ;;  %v6081_v23 = vcombine.low %v3953_v54, %v3957_v39 }
 0x32b   :  { %v3921_v47 = vld [vmem:[#allocation6 + $0x418] sm:$0xff] }
 0x32c   :  { %5139 = vmatpush2.bf16.msra.mxu0 %v6007_v20  ;;  %v3809_v20 = vld [vmem:[#allocation6 + $0x98] sm:$0xff] }
 0x32d   :  { %5166 = vmatpush1.bf16.msra.mxu1 %v6071_v14  ;;  %5140 = vmatprep.subr.bf16.mxu0 %v6000_v18  ;;  %v3813_v14 = vld [vmem:[#allocation6 + $0xb8] sm:$0xff] }
 0x32e   :  { %5167 = vmatprep.subr.bf16.mxu1 %v6064_v27  ;;  %v5945_v27 = vcombine.low %v3817_v36, %v3821_v59  ;;  %v5938_v21 = vcombine.high %v3809_v20, %v3813_v14  ;;  %v3925_v9 = vld [vmem:[#allocation6 + $0x438] sm:$0xff] }
 0x32f   :  { %v6050_v62 = vcombine.high %v3921_v47, %v3925_v9  ;;  %v3913_v34 = vld [vmem:[#allocation6 + $0x3d8] sm:$0xff] }
 0x330   :  { %5141 = vmatpush2.bf16.msra.mxu0 %v5999_v35  ;;  %v3801_v35 = vld [vmem:[#allocation6 + $0x58] sm:$0xff] }
 0x331   :  { %5168 = vmatpush1.bf16.msra.mxu1 %v6063_v48  ;;  %5142 = vmatprep.subr.bf16.mxu0 %v5992_v16  ;;  %v3805_v48 = vld [vmem:[#allocation6 + $0x78] sm:$0xff]  ;;  %v6065_v16 = vcombine.low %v3937_v4, %v3941_v50 }
 0x332   :  { %5169 = vmatprep.subr.bf16.mxu1 %v6056_v19  ;;  %v5937_v19 = vcombine.low %v3809_v20, %v3813_v14  ;;  %v5930_v57 = vcombine.high %v3801_v35, %v3805_v48  ;;  %v3917_v38 = vld [vmem:[#allocation6 + $0x3f8] sm:$0xff]  ;;  %v5341_v20 = vld [vmem:[%s7358_s3 + $0xd8] sm:$0xff] }
 0x333   :  { %v3909_v15 = vld [vmem:[#allocation6 + $0x3b8] sm:$0xff]  ;;  %v6041_v28 = vcombine.low %v3913_v34, %v3917_v38  ;;  %v5325_v14 = vld [vmem:[%s7358_s3 + $0x58] sm:$0xff] }
 0x334   :  { %5143 = vmatpush2.bf16.msra.mxu0 %v5991_v12  ;;  %v3793_v12 = vld [vmem:[#allocation6 + $0x18] sm:$0xff] }
 0x335   :  { %5170 = vmatpush1.bf16.msra.mxu1 %v6055_v2  ;;  %5144 = vmatprep.subr.bf16.mxu0 %v5984_v10  ;;  %v3797_v2 = vld [vmem:[#allocation6 + $0x38] sm:$0xff]  ;;  %v6057_v10 = vcombine.low %v3929_v56, %v3933_v22 }
 0x336   :  { %5171 = vmatprep.subr.bf16.mxu1 %v6048_v32  ;;  %v5929_v32 = vcombine.low %v3801_v35, %v3805_v48  ;;  %v5922_v13 = vcombine.high %v3793_v12, %v3797_v2  ;;  %v3897_v42 = vld [vmem:[#allocation6 + $0x358] sm:$0xff]  ;;  %v5337_v35 = vld [vmem:[%s7358_s3 + $0xb8] sm:$0xff] }
 0x337   :  { %v3893_v30 = vld [vmem:[#allocation6 + $0x338] sm:$0xff]  ;;  %v5321_v48 = vld [vmem:[%s7358_s3 + $0x38] sm:$0xff] }
 0x338   :  { %5145 = vmatpush2.bf16.msra.mxu0 %v5983_v25  ;;  %v6049_v25 = vcombine.low %v3921_v47, %v3925_v9  ;;  %v3881_v0 = vld [vmem:[#allocation6 + $0x2d8] sm:$0xff] }
 0x339   :  { %5172 = vmatpush1.bf16.msra.mxu1 %v6047_v26  ;;  %5243 = vmatprep.subr.bf16.mxu0 %v6106_v45  ;;  %v5921_v26 = vcombine.low %v3793_v12, %v3797_v2  ;;  %v6042_v45 = vcombine.high %v3913_v34, %v3917_v38  ;;  %v3865_v1 = vld [vmem:[#allocation6 + $0x258] sm:$0xff]  ;;  %v5333_v12 = vld [vmem:[%s7358_s3 + $0x98] sm:$0xff] }
 0x33a   :  { %5200 = vmatprep.subr.bf16.mxu1 %v5978_v51  ;;  %v3905_v51 = vld [vmem:[#allocation6 + $0x398] sm:$0xff]  ;;  %v5317_v2 = vld [vmem:[%s7358_s3 + $0x18] sm:$0xff] }
 0x33b   :  { %5147 = vmatmul.mubr.bf16.vlgmr.msra.gmra.mxu0 %v7195_v24  ;;  %v6034_v40 = vcombine.high %v3905_v51, %v3909_v15  ;;  %v3869_v61 = vld [vmem:[#allocation6 + $0x278] sm:$0xff] }
 0x33c   :  { %5190 = vmatmul.mubr.bf16.vlgmr.msra.gmra.mxu1 %v7230_v58  ;;  %5244 = vmatpush1.bf16.msra.mxu0 %v6105_v43  ;;  %v3901_v43 = vld [vmem:[#allocation6 + $0x378] sm:$0xff] }
 0x33d   :  { %5201 = vmatpush1.bf16.msra.mxu1 %v5977_v49  ;;  %5232 = vmatprep.mubr.bf16.mxu1 %v7228_v31  ;;  %v3945_v31 = vld [vmem:[#allocation6 + $0x4d8] sm:$0xff]  ;;  %v6033_v49 = vcombine.low %v3905_v51, %v3909_v15  ;;  %v6025_v63 = vcombine.low %v3897_v42, %v3901_v43 }
 0x33e   :  { %5245 = vmatprep.subr.bf16.mxu0 %v6098_v53  ;;  %5202 = vmatprep.subr.bf16.mxu1 %v5970_v5  ;;  %v6074_v17 = vcombine.high %v3945_v31, %v3949_v3  ;;  %v6073_v18 = vcombine.low %v3945_v31, %v3949_v3  ;;  %v6026_v53 = vcombine.high %v3897_v42, %v3901_v43  ;;  %v3889_v5 = vld [vmem:[#allocation6 + $0x318] sm:$0xff] }
 0x33f   :  { %5275 = vmatprep.mubr.bf16.mxu0 %v7380_v60  ;;  %v5946_v60 = vcombine.high %v3817_v36, %v3821_v59  ;;  %v6018_v55 = vcombine.high %v3889_v5, %v3893_v30  ;;  %v5993_v31 = vcombine.low %v3865_v1, %v3869_v61  ;;  %v5345_v59 = vld [vmem:[%s7358_s3 + $0xf8] sm:$0xff]  ;;  %v5342_v4 = vld [vmem:[%s7358_s3 + $0xe0] sm:$0xff] }
 0x340   :  { %5246 = vmatpush1.bf16.msra.mxu0 %v6097_v6  ;;  %v3885_v6 = vld [vmem:[#allocation6 + $0x2f8] sm:$0xff] }
 0x341   :  { %5203 = vmatpush1.bf16.msra.mxu1 %v5969_v52  ;;  %5247 = vmatprep.subr.bf16.mxu0 %v6090_v41  ;;  %v6017_v52 = vcombine.low %v3889_v5, %v3893_v30  ;;  %v6010_v41 = vcombine.high %v3881_v0, %v3885_v6  ;;  %v6009_v54 = vcombine.low %v3881_v0, %v3885_v6  ;;  %v5326_v50 = vld [vmem:[%s7358_s3 + $0x60] sm:$0xff] }
 0x342   :  { %5204 = vmatprep.subr.bf16.mxu1 %v5962_v46  ;;  %v3873_v46 = vld [vmem:[#allocation6 + $0x298] sm:$0xff] }
 0x343   :  { %v5338_v56 = vld [vmem:[%s7358_s3 + $0xc0] sm:$0xff] }
 0x344   :  { %5248 = vmatpush1.bf16.msra.mxu0 %v6089_v7  ;;  %v5322_v22 = vld [vmem:[%s7358_s3 + $0x40] sm:$0xff] }
 0x345   :  { %5205 = vmatpush1.bf16.msra.mxu1 %v5961_v11  ;;  %5249 = vmatprep.subr.bf16.mxu0 %v6082_v44  ;;  %v5994_v11 = vcombine.high %v3865_v1, %v3869_v61  ;;  %v3857_v44 = vld [vmem:[#allocation6 + $0x218] sm:$0xff] }
 0x346   :  { %5206 = vmatprep.subr.bf16.mxu1 %v5954_v8  ;;  %v3861_v8 = vld [vmem:[#allocation6 + $0x238] sm:$0xff] }
 0x347   :  { %v5986_v3 = vcombine.high %v3857_v44, %v3861_v8  ;;  %v5985_v36 = vcombine.low %v3857_v44, %v3861_v8  ;;  %v5334_v47 = vld [vmem:[%s7358_s3 + $0xa0] sm:$0xff] }
 0x348   :  { %5250 = vmatpush1.bf16.msra.mxu0 %v6081_v23  ;;  %v5329_v23 = vld [vmem:[%s7358_s3 + $0x78] sm:$0xff]  ;;  %v5318_v9 = vld [vmem:[%s7358_s3 + $0x20] sm:$0xff] }
 0x349   :  { %5207 = vmatpush1.bf16.msra.mxu1 %v5953_v37  ;;  %5251 = vmatprep.subr.bf16.mxu0 %v6074_v17  ;;  %v5344_v37 = vld [vmem:[%s7358_s3 + $0xf0] sm:$0xff]  ;;  %v5330_v34 = vld [vmem:[%s7358_s3 + $0x80] sm:$0xff] }
 0x34a   :  { %5208 = vmatprep.subr.bf16.mxu1 %v5946_v60  ;;  %v5328_v17 = vld [vmem:[%s7358_s3 + $0x70] sm:$0xff]  ;;  %v5327_v60 = vld [vmem:[%s7358_s3 + $0x68] sm:$0xff]  ;;  %v5314_v38 = vld [vmem:[%s7358_s3] sm:$0xff] }
 0x34c   :  { %5252 = vmatpush1.bf16.msra.mxu0 %v6073_v18  ;;  %v5340_v18 = vld [vmem:[%s7358_s3 + $0xd0] sm:$0xff] }
 0x34d   :  { %5209 = vmatpush1.bf16.msra.mxu1 %v5945_v27  ;;  %5253 = vmatprep.subr.bf16.mxu0 %v6066_v29  ;;  %v5324_v27 = vld [vmem:[%s7358_s3 + $0x50] sm:$0xff]  ;;  %v5339_v29 = vld [vmem:[%s7358_s3 + $0xc8] sm:$0xff] }
 0x34e   :  { %5210 = vmatprep.subr.bf16.mxu1 %v5938_v21  ;;  %v5323_v21 = vld [vmem:[%s7358_s3 + $0x48] sm:$0xff] }
 0x350   :  { %5254 = vmatpush1.bf16.msra.mxu0 %v6065_v16  ;;  %v5336_v16 = vld [vmem:[%s7358_s3 + $0xb0] sm:$0xff] }
 0x351   :  { %5211 = vmatpush1.bf16.msra.mxu1 %v5937_v19  ;;  %5255 = vmatprep.subr.bf16.mxu0 %v6058_v33  ;;  %v5320_v19 = vld [vmem:[%s7358_s3 + $0x30] sm:$0xff]  ;;  %v5335_v33 = vld [vmem:[%s7358_s3 + $0xa8] sm:$0xff] }
 0x352   :  { %5212 = vmatprep.subr.bf16.mxu1 %v5930_v57  ;;  %v5319_v57 = vld [vmem:[%s7358_s3 + $0x28] sm:$0xff] }
 0x354   :  { %5256 = vmatpush1.bf16.msra.mxu0 %v6057_v10  ;;  %v5332_v10 = vld [vmem:[%s7358_s3 + $0x90] sm:$0xff] }
 0x355   :  { %5213 = vmatpush1.bf16.msra.mxu1 %v5929_v32  ;;  %5257 = vmatprep.subr.bf16.mxu0 %v6050_v62  ;;  %v5316_v32 = vld [vmem:[%s7358_s3 + $0x10] sm:$0xff]  ;;  %v5331_v62 = vld [vmem:[%s7358_s3 + $0x88] sm:$0xff] }
 0x356   :  { %5214 = vmatprep.subr.bf16.mxu1 %v5922_v13  ;;  %v5315_v13 = vld [vmem:[%s7358_s3 + $0x8] sm:$0xff] }
 0x358   :  { %5258 = vmatpush1.bf16.msra.mxu0 %v6049_v25 }
 0x359   :  { %5215 = vmatpush1.bf16.msra.mxu1 %v5921_v26  ;;  %6107 = vmatprep.subr.mxu0 %v5345_v59 }
 0x35a   :  { %5216 = vmatprep.subr.bf16.mxu1 %v6042_v45 }
 0x35b   :  { %5276 = vmatmul.mubr.bf16.vlgmr.msra.gmra.mxu0 %v7230_v58  ;;  %v3877_v58 = vld [vmem:[#allocation6 + $0x2b8] sm:$0xff] }
 0x35c   :  { %v6002_v39 = vcombine.high %v3873_v46, %v3877_v58  ;;  %v6001_v7 = vcombine.low %v3873_v46, %v3877_v58  ;;  %6108 = vmatpush3.msra.mxu0 %v5329_v23 }
 0x35d   :  { %5217 = vmatpush2.bf16.msra.mxu1 %v6041_v28  ;;  %6109 = vmatprep.subr.mxu0 %v5344_v37 }
 0x35e   :  { %5218 = vmatprep.subr.bf16.mxu1 %v6034_v40  ;;  %6110 = vmatpush3.msra.mxu0 %v5328_v17 }
 0x361   :  { %5219 = vmatpush2.bf16.msra.mxu1 %v6033_v49 }
 0x362   :  { %5220 = vmatprep.subr.bf16.mxu1 %v6026_v53 }
 0x365   :  { %5221 = vmatpush2.bf16.msra.mxu1 %v6025_v63 }
 0x366   :  { %5222 = vmatprep.subr.bf16.mxu1 %v6018_v55 }
 0x369   :  { %5223 = vmatpush2.bf16.msra.mxu1 %v6017_v52 }
 0x36a   :  { %5224 = vmatprep.subr.bf16.mxu1 %v6010_v41 }
 0x36d   :  { %5225 = vmatpush2.bf16.msra.mxu1 %v6009_v54 }
 0x36e   :  { %5226 = vmatprep.subr.bf16.mxu1 %v6002_v39 }
 0x371   :  { %5227 = vmatpush2.bf16.msra.mxu1 %v6001_v7 }
 0x372   :  { %5228 = vmatprep.subr.bf16.mxu1 %v5994_v11 }
 0x375   :  { %5229 = vmatpush2.bf16.msra.mxu1 %v5993_v31 }
 0x376   :  { %5230 = vmatprep.subr.bf16.mxu1 %v5986_v3 }
 0x379   :  { %5231 = vmatpush2.bf16.msra.mxu1 %v5985_v36 }
 0x37a   :  { %6145 = vmatprep.subr.mxu1 %v5345_v59 }
 0x37c   :  { %5233 = vmatmul.mubr.bf16.vlgmr.msra.gmra.mxu1 %v7195_v24  ;;  %v5343_v24 = vld [vmem:[%s7358_s3 + $0xe8] sm:$0xff] }
 0x37d   :  { %6161 = vmatpush3.msra.mxu1 %v5329_v23  ;;  %6111 = vmatprep.subr.mxu0 %v5343_v24 }
 0x37e   :  { %6146 = vmatprep.subr.mxu1 %v5344_v37  ;;  %6112 = vmatpush3.msra.mxu0 %v5327_v60 }
 0x37f   :  { %6162 = vmatpush3.msra.mxu1 %v5328_v17  ;;  %6113 = vmatprep.subr.mxu0 %v5342_v4 }
 0x380   :  { %6147 = vmatprep.subr.mxu1 %v5343_v24  ;;  %6114 = vmatpush3.msra.mxu0 %v5326_v50 }
 0x381   :  { %6163 = vmatpush3.msra.mxu1 %v5327_v60  ;;  %6115 = vmatprep.subr.mxu0 %v5341_v20 }
 0x382   :  { %6148 = vmatprep.subr.mxu1 %v5342_v4  ;;  %6116 = vmatpush3.msra.mxu0 %v5325_v14 }
 0x383   :  { %6164 = vmatpush3.msra.mxu1 %v5326_v50  ;;  %6117 = vmatprep.subr.mxu0 %v5340_v18 }
 0x384   :  { %6149 = vmatprep.subr.mxu1 %v5341_v20  ;;  %6118 = vmatpush3.msra.mxu0 %v5324_v27 }
 0x385   :  { %6165 = vmatpush3.msra.mxu1 %v5325_v14  ;;  %6119 = vmatprep.subr.mxu0 %v5339_v29 }
 0x386   :  { %6150 = vmatprep.subr.mxu1 %v5340_v18  ;;  %6120 = vmatpush3.msra.mxu0 %v5323_v21 }
 0x387   :  { %6166 = vmatpush3.msra.mxu1 %v5324_v27  ;;  %6121 = vmatprep.subr.mxu0 %v5338_v56 }
 0x388   :  { %6151 = vmatprep.subr.mxu1 %v5339_v29  ;;  %6122 = vmatpush3.msra.mxu0 %v5322_v22 }
 0x389   :  { %6167 = vmatpush3.msra.mxu1 %v5323_v21  ;;  %6123 = vmatprep.subr.mxu0 %v5337_v35 }
 0x38a   :  { %6152 = vmatprep.subr.mxu1 %v5338_v56  ;;  %6124 = vmatpush3.msra.mxu0 %v5321_v48 }
 0x38b   :  { %6168 = vmatpush3.msra.mxu1 %v5322_v22  ;;  %6125 = vmatprep.subr.mxu0 %v5336_v16 }
 0x38c   :  { %6153 = vmatprep.subr.mxu1 %v5337_v35  ;;  %6126 = vmatpush3.msra.mxu0 %v5320_v19 }
 0x38d   :  { %6169 = vmatpush3.msra.mxu1 %v5321_v48  ;;  %6127 = vmatprep.subr.mxu0 %v5335_v33 }
 0x38e   :  { %6154 = vmatprep.subr.mxu1 %v5336_v16  ;;  %6128 = vmatpush3.msra.mxu0 %v5319_v57 }
 0x38f   :  { %6170 = vmatpush3.msra.mxu1 %v5320_v19  ;;  %6129 = vmatprep.subr.mxu0 %v5334_v47 }
 0x390   :  { %6155 = vmatprep.subr.mxu1 %v5335_v33  ;;  %6130 = vmatpush3.msra.mxu0 %v5318_v9 }
 0x391   :  { %6171 = vmatpush3.msra.mxu1 %v5319_v57  ;;  %6131 = vmatprep.subr.mxu0 %v5333_v12 }
 0x392   :  { %6156 = vmatprep.subr.mxu1 %v5334_v47  ;;  %6132 = vmatpush3.msra.mxu0 %v5317_v2 }
 0x393   :  { %6172 = vmatpush3.msra.mxu1 %v5318_v9  ;;  %6133 = vmatprep.subr.mxu0 %v5332_v10 }
 0x394   :  { %6157 = vmatprep.subr.mxu1 %v5333_v12  ;;  %6134 = vmatpush3.msra.mxu0 %v5316_v32 }
 0x395   :  { %6173 = vmatpush3.msra.mxu1 %v5317_v2  ;;  %6135 = vmatprep.subr.mxu0 %v5331_v62 }
 0x396   :  { %6158 = vmatprep.subr.mxu1 %v5332_v10  ;;  %6136 = vmatpush3.msra.mxu0 %v5315_v13 }
 0x397   :  { %6174 = vmatpush3.msra.mxu1 %v5316_v32  ;;  %6137 = vmatprep.subr.mxu0 %v5330_v34 }
 0x398   :  { %6159 = vmatprep.subr.mxu1 %v5331_v62  ;;  %6138 = vmatpush3.msra.mxu0 %v5314_v38 }
 0x399   :  { %6175 = vmatpush3.msra.mxu1 %v5315_v13 }
 0x39a   :  { %6160 = vmatprep.subr.mxu1 %v5330_v34 }
 0x39b   :  { %6176 = vmatpush3.msra.mxu1 %v5314_v38  ;;  %v4976_v25 = vpop.f32.mrf.mxu0 }
 0x39c   :  { %v5019_v45 = vpop.f32.mrf.mxu1 }
 0x39d   :  { %v4978_v26 = vpop.f32.mrf.mxu0  ;;  %v5020_v23 = vadd.f32 %v5019_v45, %v4976_v25 }
 0x39e   :  { %v5021_v15 = vpop.f32.mrf.mxu1 }
 0x39f   :  { %v4980_v51 = vpop.f32.mrf.mxu0  ;;  %v5022_v61 = vadd.f32 %v5021_v15, %v4978_v26  ;;  %v5286_v19 = vmax.f32 %v5020_v23, 0.0 }
 0x3a0   :  { %v5023_v40 = vpop.f32.mrf.mxu1 }
 0x3a1   :  { %v4982_v28 = vpop.f32.mrf.mxu0  ;;  %v5287_v37 = vmax.f32 %v5022_v61, 0.0  ;;  %v5024_v33 = vadd.f32 %v5023_v40, %v4980_v51 }
 0x3a2   :  { %v5025_v43 = vpop.f32.mrf.mxu1 }
 0x3a3   :  { %v5026_v4 = vadd.f32 %v5025_v43, %v4982_v28  ;;  %v5294_v28 = vmax.f32 %v5024_v33, 0.0 }
 0x3a5   :  { %v5295_v25 = vmax.f32 %v5026_v4, 0.0 }
 0x3bb   :  { %v5105_v42 = vpop.f32.mrf.mxu0 }
 0x3bd   :  { %v5107_v49 = vpop.f32.mrf.mxu0 }
 0x3bf   :  { %v5109_v5 = vpop.f32.mrf.mxu0 }
 0x3c1   :  { %v5111_v63 = vpop.f32.mrf.mxu0 }
 0x3dc   :  { %v5062_v53 = vpop.f32.mrf.mxu1 }
 0x3dd   :  { %v5106_v8 = vadd.f32 %v5105_v42, %v5062_v53 }
 0x3de   :  { %v5064_v30 = vpop.f32.mrf.mxu1 }
 0x3df   :  { %v5108_v7 = vadd.f32 %v5107_v49, %v5064_v30  ;;  %v5288_v18 = vmax.f32 %v5106_v8, 0.0 }
 0x3e0   :  { %v5066_v55 = vpop.f32.mrf.mxu1 }
 0x3e1   :  { %v5289_v17 = vmax.f32 %v5108_v7, 0.0  ;;  %v5110_v27 = vadd.f32 %v5109_v5, %v5066_v55  ;;  %v5302_v13 = vmax.f32 %v5286_v19, %v5288_v18 }
 0x3e2   :  { %v5068_v6 = vpop.f32.mrf.mxu1 }
 0x3e3   :  { %v5112_v50 = vadd.f32 %v5111_v63, %v5068_v6  ;;  %v5303_v57 = vmax.f32 %v5287_v37, %v5289_v17  ;;  %v5296_v34 = vmax.f32 %v5110_v27, 0.0 }
 0x3e5   :  { %v5297_v2 = vmax.f32 %v5112_v50, 0.0  ;;  %v5304_v40 = vmax.f32 %v5294_v28, %v5296_v34 }
 0x3e7   :  { %v5305_v49 = vmax.f32 %v5295_v25, %v5297_v2 }
 0x3fb   :  { %v5148_v0 = vpop.f32.mrf.mxu0 }
 0x3fc   :  { %v5191_v41 = vpop.f32.mrf.mxu1 }
 0x3fd   :  { %v5150_v52 = vpop.f32.mrf.mxu0  ;;  %v5192_v31 = vadd.f32 %v5191_v41, %v5148_v0 }
 0x3fe   :  { %v5193_v58 = vpop.f32.mrf.mxu1 }
 0x3ff   :  { %v5152_v46 = vpop.f32.mrf.mxu0  ;;  %v5194_v36 = vadd.f32 %v5193_v58, %v5150_v52  ;;  %v5290_v29 = vmax.f32 %v5192_v31, 0.0 }
 0x400   :  { %v5195_v39 = vpop.f32.mrf.mxu1 }
 0x401   :  { %v5154_v54 = vpop.f32.mrf.mxu0  ;;  %v5196_v21 = vadd.f32 %v5195_v39, %v5152_v46  ;;  %v5291_v22 = vmax.f32 %v5194_v36, 0.0 }
 0x402   :  { %v5197_v11 = vpop.f32.mrf.mxu1 }
 0x403   :  { %v5198_v35 = vadd.f32 %v5197_v11, %v5154_v54  ;;  %v5298_v38 = vmax.f32 %v5196_v21, 0.0 }
 0x405   :  { %v5299_v26 = vmax.f32 %v5198_v35, 0.0 }
 0x41b   :  { %v5277_v1 = vpop.f32.mrf.mxu0 }
 0x41d   :  { %v5279_v44 = vpop.f32.mrf.mxu0 }
 0x41f   :  { %v5281_v24 = vpop.f32.mrf.mxu0 }
 0x421   :  { %v5283_v47 = vpop.f32.mrf.mxu0 }
 0x43c   :  { %v5234_v3 = vpop.f32.mrf.mxu1 }
 0x43d   :  { %v5278_v59 = vadd.f32 %v5277_v1, %v5234_v3 }
 0x43e   :  { %v5236_v60 = vpop.f32.mrf.mxu1 }
 0x43f   :  { %v5292_v20 = vmax.f32 %v5278_v59, 0.0  ;;  %v5280_v14 = vadd.f32 %v5279_v44, %v5236_v60 }
 0x440   :  { %v5238_v56 = vpop.f32.mrf.mxu1 }
 0x441   :  { %v5293_v48 = vmax.f32 %v5280_v14, 0.0  ;;  %v5282_v16 = vadd.f32 %v5281_v24, %v5238_v56  ;;  %v5306_v9 = vmax.f32 %v5290_v29, %v5292_v20 }
 0x442   :  { %v5240_v12 = vpop.f32.mrf.mxu1 }
 0x443   :  { %v5307_v10 = vmax.f32 %v5291_v22, %v5293_v48  ;;  %v5300_v32 = vmax.f32 %v5282_v16, 0.0  ;;  %v5284_v62 = vadd.f32 %v5283_v47, %v5240_v12  ;;  %v5310_v42 = vmax.f32 %v5302_v13, %v5306_v9 }
 0x445   :  { %v5301_v45 = vmax.f32 %v5284_v62, 0.0  ;;  %v5311_v15 = vmax.f32 %v5303_v57, %v5307_v10  ;;  %v5308_v43 = vmax.f32 %v5298_v38, %v5300_v32 }
 0x447   :  { %v5309_v51 = vmax.f32 %v5299_v26, %v5301_v45  ;;  %5410 = vmatprep.mubr.f32.mxu0 %v5311_v15  ;;  %v5312_v5 = vmax.f32 %v5304_v40, %v5308_v43 }
 0x448   :  { %5411 = vmatmul.mubr.f32.vlgmr.msra.gmra.mxu0 %v5310_v42 }
 0x449   :  { %v5313_v53 = vmax.f32 %v5305_v49, %v5309_v51 }
 0x44b   :  { %5415 = vmatprep.mubr.f32.mxu1 %v5313_v53 }
 0x44c   :  { %5416 = vmatmul.mubr.f32.vlgmr.msra.gmra.mxu1 %v5312_v5 }
 0x508   :  { %v6139_v30 = vpop.f32.mrf.mxu0 }
 0x50a   :  { %v6140_v63 = vpop.f32.mrf.mxu0 }
 0x50b   :  { %v6141_v55 = vadd.f32 %v6140_v63, %v6139_v30 }
 0x50c   :  { %v6142_v0 = vpop.f32.mrf.mxu1 }
 0x50d   :  { %5422 = vst.msk [vmem:[%s7359_s4] sm:$0xff] %vm5421_vm0, %v6141_v55 }
 0x50e   :  { %v6143_v6 = vpop.f32.mrf.mxu1 }
 0x50f   :  { %v6144_v52 = vadd.f32 %v6143_v6, %v6142_v0 }
 0x511   :  { %5423 = vst.msk [vmem:[%s7359_s4 + $0x8] sm:$0xff] %vm5421_vm0, %v6144_v52 }
 0x512   :  { %5428 = vsyncpa [#allocation3], 1 }
 0x513   :  { %5429 = vsyncpa [#allocation5], 1 }

</bundles_post_ra>
